<compile_context>
chip_gen: v6e
topology: v6e:2x2x1
jax: 0.10.0
libtpu: 0.0.40
codegen_flags: <defaults>
</compile_context>

<pallas_src>
import math
import jax
import jax.numpy as jnp
from jax.experimental import pallas as pl
from jax.experimental.pallas import tpu as pltpu

_LOG_2PI = math.log(2.0 * math.pi)
_INV_SQRT2 = 1.0 / math.sqrt(2.0)


def _gelu(v):
    # exact (erf-based) GELU, matching torch.nn.GELU() default
    return 0.5 * v * (1.0 + jax.lax.erf(v * _INV_SQRT2))


def _linear(x, w_ref, b_ref):
    return jnp.dot(x, w_ref[...], preferred_element_type=jnp.float32) + b_ref[...]


def make_vae_kernel(input_size, latent_dim):
    D, L = input_size, latent_dim

    def vae_kernel(
        # per-tile inputs
        x_ref, eps_z_ref, eps_x_ref,
        # encoder params (resident in VMEM)
        ew1_ref, eb1_ref, ew2_ref, eb2_ref, ewh_ref, ebh_ref,
        # decoder params (resident in VMEM)
        dw1_ref, db1_ref, dw2_ref, db2_ref, dwh_ref, dbh_ref,
        # outputs
        xhat_ref, loss_ref,
    ):
        x = x_ref[...]
        eps_z = eps_z_ref[...]
        eps_x = eps_x_ref[...]

        # ---------------- Encoder ----------------
        h = _gelu(_linear(x, ew1_ref, eb1_ref))        # (TB, H)
        h = _gelu(_linear(h, ew2_ref, eb2_ref))        # (TB, H2)
        enc_head = _linear(h, ewh_ref, ebh_ref)        # (TB, 2L)  fused mu | log_sigma
        mu = enc_head[:, :L]
        log_sigma = enc_head[:, L:]
        sigma = jnp.exp(log_sigma)
        z = mu + sigma * eps_z                         # reparameterization

        # kl = sum_last( log q(z|x) - log p(z) ); the 0.5*log(2pi) terms cancel
        kl_terms = 0.5 * z * z - 0.5 * eps_z * eps_z - log_sigma    # (TB, L)

        # ---------------- Decoder ----------------
        d = _gelu(_linear(z, dw1_ref, db1_ref))        # (TB, H2)
        d = _gelu(_linear(d, dw2_ref, db2_ref))        # (TB, H)
        dec_head = _linear(d, dwh_ref, dbh_ref)        # (TB, 2D)  fused mu_p | logsig_p
        mu_p = dec_head[:, :D]
        logsig_p = dec_head[:, D:]
        sigma_p = jnp.exp(logsig_p)
        inv_sigma_p = jnp.exp(-logsig_p)               # EUP exp instead of a VPU divide

        xhat_ref[...] = (mu_p + sigma_p * eps_x).astype(xhat_ref.dtype)

        # log p(x|z) under Normal(mu_p, sigma_p)
        r = (x - mu_p) * inv_sigma_p
        lp_terms = -logsig_p - 0.5 * _LOG_2PI - 0.5 * r * r         # (TB, D)

        # Single fused MXU reduction:
        #   loss_row = [5,...,5 | -1,...,-1] @ concat(kl_terms, lp_terms)^T   -> (1, TB)
        # This does the per-row feature sum, the 5*kl - logp combination, and the
        # column->row transpose in one op, so the loss store is a full-lane store.
        terms = jnp.concatenate([kl_terms, lp_terms], axis=-1)      # (TB, L + D)
        w = jnp.concatenate(
            [jnp.full((1, L), 5.0, jnp.float32), jnp.full((1, D), -1.0, jnp.float32)],
            axis=-1,
        )                                                           # (1, L + D)
        loss_row = jax.lax.dot_general(
            w, terms,
            dimension_numbers=(((1,), (1,)), ((), ())),             # w @ terms.T
            precision=jax.lax.Precision.HIGHEST,
            preferred_element_type=jnp.float32,
        )                                                           # (1, TB)
        loss_ref[...] = loss_row.astype(loss_ref.dtype)

    return vae_kernel


def _round_up(n, m):
    return ((n + m - 1) // m) * m


def vae_forward(x, eps_z, eps_x, params, *, block_b=256):
    """Run the fused VAE forward. Returns (xhat (B, D), vae_loss (B,))."""
    B, D = x.shape
    L = eps_z.shape[1]

    # Batch tile: multiple of 8 (sublane); 256 feeds the 256-wide MXU on v6e/v7x and keeps the
    # lane-dense (1, TB) loss block a multiple of 128.
    TB = min(block_b, _round_up(B, 8))
    Bp = _round_up(B, TB)
    if Bp != B:
        pad = ((0, Bp - B), (0, 0))
        x_p = jnp.pad(x, pad)
        eps_z_p = jnp.pad(eps_z, pad)
        eps_x_p = jnp.pad(eps_x, pad)
    else:
        x_p, eps_z_p, eps_x_p = x, eps_z, eps_x
    grid = (Bp // TB,)

    # Fuse the paired head projections into single matmuls (halves MXU pushes for the heads).
    ewh = jnp.concatenate([params["ewmu"], params["ewls"]], axis=1)   # (H2, 2L)
    ebh = jnp.concatenate([params["ebmu"], params["ebls"]], axis=1)   # (1, 2L)
    dwh = jnp.concatenate([params["dwmu"], params["dwls"]], axis=1)   # (H, 2D)
    dbh = jnp.concatenate([params["dbmu"], params["dbls"]], axis=1)   # (1, 2D)

    weights = [
        params["ew1"], params["eb1"], params["ew2"], params["eb2"], ewh, ebh,
        params["dw1"], params["db1"], params["dw2"], params["db2"], dwh, dbh,
    ]

    def row_spec(width):               # batch-tiled activation/noise/output
        return pl.BlockSpec((TB, width), lambda i: (i, 0))

    def resident_spec(arr):            # constant block index -> stays in VMEM across the grid
        return pl.BlockSpec(arr.shape, lambda i: (0, 0))

    in_specs = [row_spec(D), row_spec(L), row_spec(D)] + [resident_spec(w) for w in weights]
    out_specs = (
        row_spec(D),                                   # xhat
        pl.BlockSpec((1, TB), lambda i: (0, i)),       # loss: lane-dense row per tile
    )
    out_shape = (
        jax.ShapeDtypeStruct((Bp, D), jnp.float32),
        jax.ShapeDtypeStruct((1, Bp), jnp.float32),
    )

    xhat, loss = pl.pallas_call(
        make_vae_kernel(D, L),
        grid=grid,
        in_specs=in_specs,
        out_specs=out_specs,
        out_shape=out_shape,
        compiler_params=pltpu.CompilerParams(
            dimension_semantics=("parallel",),   # independent batch tiles -> v7x megacore
            vmem_limit_bytes=32 * 1024 * 1024,   # explicit; safe on v7x's 64 MiB VMEM
        ),
    )(x_p, eps_z_p, eps_x_p, *weights)

    return xhat[:B], loss[0, :B]


def _init_linear(key, fan_in, fan_out):
    # mimic torch.nn.Linear default init: U(-1/sqrt(fan_in), 1/sqrt(fan_in))
    kw, kb = jax.random.split(key)
    bound = 1.0 / math.sqrt(fan_in)
    w = jax.random.uniform(kw, (fan_in, fan_out), jnp.float32, -bound, bound)
    b = jax.random.uniform(kb, (1, fan_out), jnp.float32, -bound, bound)
    return w, b


def init_vae_params(key, input_size, hidden_dim, latent_dim):
    hidden_dim2 = round(hidden_dim / 4)
    keys = jax.random.split(key, 8)
    p = {}
    # encoder
    p["ew1"], p["eb1"] = _init_linear(keys[0], input_size, hidden_dim)
    p["ew2"], p["eb2"] = _init_linear(keys[1], hidden_dim, hidden_dim2)
    p["ewmu"], p["ebmu"] = _init_linear(keys[2], hidden_dim2, latent_dim)
    p["ewls"], p["ebls"] = _init_linear(keys[3], hidden_dim2, latent_dim)
    # decoder
    p["dw1"], p["db1"] = _init_linear(keys[4], latent_dim, hidden_dim2)
    p["dw2"], p["db2"] = _init_linear(keys[5], hidden_dim2, hidden_dim)
    p["dwmu"], p["dbmu"] = _init_linear(keys[6], hidden_dim, input_size)
    p["dwls"], p["dbls"] = _init_linear(keys[7], hidden_dim, input_size)
    return p


def vae_reference(x, eps_z, eps_x, p):
    """Pure-JAX reference mirroring the PyTorch forward (dropout = 0 path)."""
    h = _gelu(x @ p["ew1"] + p["eb1"])
    h = _gelu(h @ p["ew2"] + p["eb2"])
    mu = h @ p["ewmu"] + p["ebmu"]
    log_sigma = h @ p["ewls"] + p["ebls"]
    sigma = jnp.exp(log_sigma)
    z = mu + sigma * eps_z
    kl = jnp.sum(0.5 * z * z - 0.5 * eps_z * eps_z - log_sigma, axis=-1)
    d = _gelu(z @ p["dw1"] + p["db1"])
    d = _gelu(d @ p["dw2"] + p["db2"])
    mu_p = d @ p["dwmu"] + p["dbmu"]
    logsig_p = d @ p["dwls"] + p["dbls"]
    sigma_p = jnp.exp(logsig_p)
    xhat = mu_p + sigma_p * eps_x
    r = (x - mu_p) / sigma_p
    logprob_x = jnp.sum(-logsig_p - 0.5 * _LOG_2PI - 0.5 * r * r, axis=-1)
    return xhat, 5.0 * kl - logprob_x


if __name__ == "__main__":
    input_size = 16
    hidden_dim = 32
    latent_dim = 4
    batch = 512   # two batch tiles of 256 -> exercises the pipelined / parallel grid
    # dropout = 0.0 path of the PyTorch forward is what this kernel implements

    root = jax.random.PRNGKey(0)
    k_param, k_x, k_ez, k_ex = jax.random.split(root, 4)

    params = init_vae_params(k_param, input_size, hidden_dim, latent_dim)
    x = jax.random.normal(k_x, (batch, input_size), jnp.float32)
    eps_z = jax.random.normal(k_ez, (batch, latent_dim), jnp.float32)
    eps_x = jax.random.normal(k_ex, (batch, input_size), jnp.float32)

    xhat, vae_loss = vae_forward(x, eps_z, eps_x, params)
    jax.block_until_ready((xhat, vae_loss))

    assert xhat.shape == (batch, input_size)
    assert vae_loss.shape == (batch,)
    assert bool(jnp.all(jnp.isfinite(xhat))) and bool(jnp.all(jnp.isfinite(vae_loss)))

    # Loose-tolerance check against a pure-JAX reference (in-kernel MXU precision may differ
    # slightly from XLA's fp32 path; the tolerance only needs to catch structural errors).
    xhat_want, loss_want = vae_reference(x, eps_z, eps_x, params)
    assert bool(jnp.allclose(xhat, xhat_want, rtol=1e-1, atol=1e-1))
    assert bool(jnp.allclose(vae_loss, loss_want, rtol=1e-1, atol=1e-1))

    print("KERNEL_OK")
</pallas_src>

<mosaic_0001>
module attributes {stable_mosaic.version = 11 : i64} {
  func.func @vae_kernel(%arg0: i32, %arg1: memref<256x16xf32, #tpu.memory_space<vmem>>, %arg2: memref<256x4xf32, #tpu.memory_space<vmem>>, %arg3: memref<256x16xf32, #tpu.memory_space<vmem>>, %arg4: memref<16x32xf32, #tpu.memory_space<vmem>>, %arg5: memref<1x32xf32, #tpu.memory_space<vmem>>, %arg6: memref<32x8xf32, #tpu.memory_space<vmem>>, %arg7: memref<1x8xf32, #tpu.memory_space<vmem>>, %arg8: memref<8x8xf32, #tpu.memory_space<vmem>>, %arg9: memref<1x8xf32, #tpu.memory_space<vmem>>, %arg10: memref<4x8xf32, #tpu.memory_space<vmem>>, %arg11: memref<1x8xf32, #tpu.memory_space<vmem>>, %arg12: memref<8x32xf32, #tpu.memory_space<vmem>>, %arg13: memref<1x32xf32, #tpu.memory_space<vmem>>, %arg14: memref<32x32xf32, #tpu.memory_space<vmem>>, %arg15: memref<1x32xf32, #tpu.memory_space<vmem>>, %arg16: memref<256x16xf32, #tpu.memory_space<vmem>>, %arg17: memref<1x256xf32, #tpu.memory_space<vmem>>) attributes {dimension_semantics = [#tpu.dimension_semantics<parallel>], iteration_bounds = array<i64: 2>, scalar_prefetch = 0 : i64, scratch_operands = 0 : i64, tpu.core_type = #tpu.core_type<tc>, window_params = [{transform_indices = @transform_0, window_bounds = array<i64: 256, 16>}, {transform_indices = @transform_1, window_bounds = array<i64: 256, 4>}, {transform_indices = @transform_2, window_bounds = array<i64: 256, 16>}, {pipeline_mode = #tpu.pipeline_mode<synchronous>, transform_indices = @transform_3, window_bounds = array<i64: 16, 32>}, {pipeline_mode = #tpu.pipeline_mode<synchronous>, transform_indices = @transform_4, window_bounds = array<i64: 1, 32>}, {pipeline_mode = #tpu.pipeline_mode<synchronous>, transform_indices = @transform_5, window_bounds = array<i64: 32, 8>}, {pipeline_mode = #tpu.pipeline_mode<synchronous>, transform_indices = @transform_6, window_bounds = array<i64: 1, 8>}, {pipeline_mode = #tpu.pipeline_mode<synchronous>, transform_indices = @transform_7, window_bounds = array<i64: 8, 8>}, {pipeline_mode = #tpu.pipeline_mode<synchronous>, transform_indices = @transform_8, window_bounds = array<i64: 1, 8>}, {pipeline_mode = #tpu.pipeline_mode<synchronous>, transform_indices = @transform_9, window_bounds = array<i64: 4, 8>}, {pipeline_mode = #tpu.pipeline_mode<synchronous>, transform_indices = @transform_10, window_bounds = array<i64: 1, 8>}, {pipeline_mode = #tpu.pipeline_mode<synchronous>, transform_indices = @transform_11, window_bounds = array<i64: 8, 32>}, {pipeline_mode = #tpu.pipeline_mode<synchronous>, transform_indices = @transform_12, window_bounds = array<i64: 1, 32>}, {pipeline_mode = #tpu.pipeline_mode<synchronous>, transform_indices = @transform_13, window_bounds = array<i64: 32, 32>}, {pipeline_mode = #tpu.pipeline_mode<synchronous>, transform_indices = @transform_14, window_bounds = array<i64: 1, 32>}, {transform_indices = @transform_15, window_bounds = array<i64: 256, 16>}, {transform_indices = @transform_16, window_bounds = array<i64: 1, 256>}]} {
    %c0 = arith.constant 0 : index
    %c0_0 = arith.constant 0 : index
    %0 = vector.load %arg1[%c0, %c0_0] : memref<256x16xf32, #tpu.memory_space<vmem>>, vector<256x16xf32>
    %c0_1 = arith.constant 0 : index
    %c0_2 = arith.constant 0 : index
    %1 = vector.load %arg2[%c0_1, %c0_2] : memref<256x4xf32, #tpu.memory_space<vmem>>, vector<256x4xf32>
    %c0_3 = arith.constant 0 : index
    %c0_4 = arith.constant 0 : index
    %2 = vector.load %arg3[%c0_3, %c0_4] : memref<256x16xf32, #tpu.memory_space<vmem>>, vector<256x16xf32>
    %c0_5 = arith.constant 0 : index
    %c0_6 = arith.constant 0 : index
    %3 = vector.load %arg4[%c0_5, %c0_6] : memref<16x32xf32, #tpu.memory_space<vmem>>, vector<16x32xf32>
    %cst = arith.constant dense<0.000000e+00> : vector<256x32xf32>
    %4 = tpu.matmul %0, %3, %cst {dimension_numbers = #tpu.dot_dimension_numbers<[1], [0], [0], [1], [0, 0, 1, 1], [], []>} : vector<256x16xf32>, vector<16x32xf32>, vector<256x32xf32> -> vector<256x32xf32>
    %c0_7 = arith.constant 0 : index
    %c0_8 = arith.constant 0 : index
    %5 = vector.load %arg5[%c0_7, %c0_8] : memref<1x32xf32, #tpu.memory_space<vmem>>, vector<1x32xf32>
    %6 = vector.broadcast %5 : vector<1x32xf32> to vector<256x32xf32>
    %7 = arith.addf %4, %6 : vector<256x32xf32>
    %cst_9 = arith.constant 5.000000e-01 : f32
    %8 = vector.broadcast %cst_9 : f32 to vector<256x32xf32>
    %9 = arith.mulf %8, %7 : vector<256x32xf32>
    %cst_10 = arith.constant 0.707106769 : f32
    %10 = vector.broadcast %cst_10 : f32 to vector<256x32xf32>
    %11 = arith.mulf %7, %10 : vector<256x32xf32>
    %12 = math.erf %11 : vector<256x32xf32>
    %cst_11 = arith.constant 1.000000e+00 : f32
    %13 = vector.broadcast %cst_11 : f32 to vector<256x32xf32>
    %14 = arith.addf %13, %12 : vector<256x32xf32>
    %15 = arith.mulf %9, %14 : vector<256x32xf32>
    %c0_12 = arith.constant 0 : index
    %c0_13 = arith.constant 0 : index
    %16 = vector.load %arg6[%c0_12, %c0_13] : memref<32x8xf32, #tpu.memory_space<vmem>>, vector<32x8xf32>
    %cst_14 = arith.constant dense<0.000000e+00> : vector<256x8xf32>
    %17 = tpu.matmul %15, %16, %cst_14 {dimension_numbers = #tpu.dot_dimension_numbers<[1], [0], [0], [1], [0, 0, 1, 1], [], []>} : vector<256x32xf32>, vector<32x8xf32>, vector<256x8xf32> -> vector<256x8xf32>
    %c0_15 = arith.constant 0 : index
    %c0_16 = arith.constant 0 : index
    %18 = vector.load %arg7[%c0_15, %c0_16] : memref<1x8xf32, #tpu.memory_space<vmem>>, vector<1x8xf32>
    %19 = vector.broadcast %18 : vector<1x8xf32> to vector<256x8xf32>
    %20 = arith.addf %17, %19 : vector<256x8xf32>
    %cst_17 = arith.constant 5.000000e-01 : f32
    %21 = vector.broadcast %cst_17 : f32 to vector<256x8xf32>
    %22 = arith.mulf %21, %20 : vector<256x8xf32>
    %cst_18 = arith.constant 0.707106769 : f32
    %23 = vector.broadcast %cst_18 : f32 to vector<256x8xf32>
    %24 = arith.mulf %20, %23 : vector<256x8xf32>
    %25 = math.erf %24 : vector<256x8xf32>
    %cst_19 = arith.constant 1.000000e+00 : f32
    %26 = vector.broadcast %cst_19 : f32 to vector<256x8xf32>
    %27 = arith.addf %26, %25 : vector<256x8xf32>
    %28 = arith.mulf %22, %27 : vector<256x8xf32>
    %c0_20 = arith.constant 0 : index
    %c0_21 = arith.constant 0 : index
    %29 = vector.load %arg8[%c0_20, %c0_21] : memref<8x8xf32, #tpu.memory_space<vmem>>, vector<8x8xf32>
    %cst_22 = arith.constant dense<0.000000e+00> : vector<256x8xf32>
    %30 = tpu.matmul %28, %29, %cst_22 {dimension_numbers = #tpu.dot_dimension_numbers<[1], [0], [0], [1], [0, 0, 1, 1], [], []>} : vector<256x8xf32>, vector<8x8xf32>, vector<256x8xf32> -> vector<256x8xf32>
    %c0_23 = arith.constant 0 : index
    %c0_24 = arith.constant 0 : index
    %31 = vector.load %arg9[%c0_23, %c0_24] : memref<1x8xf32, #tpu.memory_space<vmem>>, vector<1x8xf32>
    %32 = vector.broadcast %31 : vector<1x8xf32> to vector<256x8xf32>
    %33 = arith.addf %30, %32 : vector<256x8xf32>
    %34 = vector.extract_strided_slice %33 {offsets = [0, 0], sizes = [256, 4], strides = [1, 1]} : vector<256x8xf32> to vector<256x4xf32>
    %35 = vector.extract_strided_slice %33 {offsets = [0, 4], sizes = [256, 4], strides = [1, 1]} : vector<256x8xf32> to vector<256x4xf32>
    %36 = math.exp %35 : vector<256x4xf32>
    %37 = arith.mulf %36, %1 : vector<256x4xf32>
    %38 = arith.addf %34, %37 : vector<256x4xf32>
    %cst_25 = arith.constant 5.000000e-01 : f32
    %39 = vector.broadcast %cst_25 : f32 to vector<256x4xf32>
    %40 = arith.mulf %39, %38 : vector<256x4xf32>
    %41 = arith.mulf %40, %38 : vector<256x4xf32>
    %cst_26 = arith.constant 5.000000e-01 : f32
    %42 = vector.broadcast %cst_26 : f32 to vector<256x4xf32>
    %43 = arith.mulf %42, %1 : vector<256x4xf32>
    %44 = arith.mulf %43, %1 : vector<256x4xf32>
    %45 = arith.subf %41, %44 : vector<256x4xf32>
    %46 = arith.subf %45, %35 : vector<256x4xf32>
    %c0_27 = arith.constant 0 : index
    %c0_28 = arith.constant 0 : index
    %47 = vector.load %arg10[%c0_27, %c0_28] : memref<4x8xf32, #tpu.memory_space<vmem>>, vector<4x8xf32>
    %cst_29 = arith.constant dense<0.000000e+00> : vector<256x8xf32>
    %48 = tpu.matmul %38, %47, %cst_29 {dimension_numbers = #tpu.dot_dimension_numbers<[1], [0], [0], [1], [0, 0, 1, 1], [], []>} : vector<256x4xf32>, vector<4x8xf32>, vector<256x8xf32> -> vector<256x8xf32>
    %c0_30 = arith.constant 0 : index
    %c0_31 = arith.constant 0 : index
    %49 = vector.load %arg11[%c0_30, %c0_31] : memref<1x8xf32, #tpu.memory_space<vmem>>, vector<1x8xf32>
    %50 = vector.broadcast %49 : vector<1x8xf32> to vector<256x8xf32>
    %51 = arith.addf %48, %50 : vector<256x8xf32>
    %cst_32 = arith.constant 5.000000e-01 : f32
    %52 = vector.broadcast %cst_32 : f32 to vector<256x8xf32>
    %53 = arith.mulf %52, %51 : vector<256x8xf32>
    %cst_33 = arith.constant 0.707106769 : f32
    %54 = vector.broadcast %cst_33 : f32 to vector<256x8xf32>
    %55 = arith.mulf %51, %54 : vector<256x8xf32>
    %56 = math.erf %55 : vector<256x8xf32>
    %cst_34 = arith.constant 1.000000e+00 : f32
    %57 = vector.broadcast %cst_34 : f32 to vector<256x8xf32>
    %58 = arith.addf %57, %56 : vector<256x8xf32>
    %59 = arith.mulf %53, %58 : vector<256x8xf32>
    %c0_35 = arith.constant 0 : index
    %c0_36 = arith.constant 0 : index
    %60 = vector.load %arg12[%c0_35, %c0_36] : memref<8x32xf32, #tpu.memory_space<vmem>>, vector<8x32xf32>
    %cst_37 = arith.constant dense<0.000000e+00> : vector<256x32xf32>
    %61 = tpu.matmul %59, %60, %cst_37 {dimension_numbers = #tpu.dot_dimension_numbers<[1], [0], [0], [1], [0, 0, 1, 1], [], []>} : vector<256x8xf32>, vector<8x32xf32>, vector<256x32xf32> -> vector<256x32xf32>
    %c0_38 = arith.constant 0 : index
    %c0_39 = arith.constant 0 : index
    %62 = vector.load %arg13[%c0_38, %c0_39] : memref<1x32xf32, #tpu.memory_space<vmem>>, vector<1x32xf32>
    %63 = vector.broadcast %62 : vector<1x32xf32> to vector<256x32xf32>
    %64 = arith.addf %61, %63 : vector<256x32xf32>
    %cst_40 = arith.constant 5.000000e-01 : f32
    %65 = vector.broadcast %cst_40 : f32 to vector<256x32xf32>
    %66 = arith.mulf %65, %64 : vector<256x32xf32>
    %cst_41 = arith.constant 0.707106769 : f32
    %67 = vector.broadcast %cst_41 : f32 to vector<256x32xf32>
    %68 = arith.mulf %64, %67 : vector<256x32xf32>
    %69 = math.erf %68 : vector<256x32xf32>
    %cst_42 = arith.constant 1.000000e+00 : f32
    %70 = vector.broadcast %cst_42 : f32 to vector<256x32xf32>
    %71 = arith.addf %70, %69 : vector<256x32xf32>
    %72 = arith.mulf %66, %71 : vector<256x32xf32>
    %c0_43 = arith.constant 0 : index
    %c0_44 = arith.constant 0 : index
    %73 = vector.load %arg14[%c0_43, %c0_44] : memref<32x32xf32, #tpu.memory_space<vmem>>, vector<32x32xf32>
    %cst_45 = arith.constant dense<0.000000e+00> : vector<256x32xf32>
    %74 = tpu.matmul %72, %73, %cst_45 {dimension_numbers = #tpu.dot_dimension_numbers<[1], [0], [0], [1], [0, 0, 1, 1], [], []>} : vector<256x32xf32>, vector<32x32xf32>, vector<256x32xf32> -> vector<256x32xf32>
    %c0_46 = arith.constant 0 : index
    %c0_47 = arith.constant 0 : index
    %75 = vector.load %arg15[%c0_46, %c0_47] : memref<1x32xf32, #tpu.memory_space<vmem>>, vector<1x32xf32>
    %76 = vector.broadcast %75 : vector<1x32xf32> to vector<256x32xf32>
    %77 = arith.addf %74, %76 : vector<256x32xf32>
    %78 = vector.extract_strided_slice %77 {offsets = [0, 0], sizes = [256, 16], strides = [1, 1]} : vector<256x32xf32> to vector<256x16xf32>
    %79 = vector.extract_strided_slice %77 {offsets = [0, 16], sizes = [256, 16], strides = [1, 1]} : vector<256x32xf32> to vector<256x16xf32>
    %80 = math.exp %79 : vector<256x16xf32>
    %cst_48 = arith.constant 0.000000e+00 : f32
    %81 = vector.broadcast %cst_48 : f32 to vector<256x16xf32>
    %82 = arith.subf %81, %79 : vector<256x16xf32>
    %83 = math.exp %82 : vector<256x16xf32>
    %84 = arith.mulf %80, %2 : vector<256x16xf32>
    %85 = arith.addf %78, %84 : vector<256x16xf32>
    %c0_49 = arith.constant 0 : index
    %c0_50 = arith.constant 0 : index
    %86 = vector.load %arg16[%c0_49, %c0_50] : memref<256x16xf32, #tpu.memory_space<vmem>>, vector<256x16xf32>
    tpu.vector_store %arg16[%c0_49, %c0_50], %85 {strides = array<i32>} : memref<256x16xf32, #tpu.memory_space<vmem>>, vector<256x16xf32>,
    %87 = arith.subf %0, %78 : vector<256x16xf32>
    %88 = arith.mulf %87, %83 : vector<256x16xf32>
    %cst_51 = arith.constant 0.000000e+00 : f32
    %89 = vector.broadcast %cst_51 : f32 to vector<256x16xf32>
    %90 = arith.subf %89, %79 : vector<256x16xf32>
    %cst_52 = arith.constant 0.918938517 : f32
    %91 = vector.broadcast %cst_52 : f32 to vector<256x16xf32>
    %92 = arith.subf %90, %91 : vector<256x16xf32>
    %cst_53 = arith.constant 5.000000e-01 : f32
    %93 = vector.broadcast %cst_53 : f32 to vector<256x16xf32>
    %94 = arith.mulf %93, %88 : vector<256x16xf32>
    %95 = arith.mulf %94, %88 : vector<256x16xf32>
    %96 = arith.subf %92, %95 : vector<256x16xf32>
    %97 = tpu.concatenate %46, %96 in 1 : vector<256x4xf32>, vector<256x16xf32> -> vector<256x20xf32>
    %cst_54 = arith.constant 5.000000e+00 : f32
    %98 = vector.broadcast %cst_54 : f32 to vector<1x4xf32>
    %cst_55 = arith.constant -1.000000e+00 : f32
    %99 = vector.broadcast %cst_55 : f32 to vector<1x16xf32>
    %100 = tpu.concatenate %98, %99 in 1 : vector<1x4xf32>, vector<1x16xf32> -> vector<1x20xf32>
    %cst_56 = arith.constant dense<0.000000e+00> : vector<1x256xf32>
    %101 = tpu.matmul %100, %97, %cst_56 {dimension_numbers = #tpu.dot_dimension_numbers<[1], [1], [0], [0], [0, 0, 1, 0], [], []>, precision = #tpu.contract_precision<fp32>} : vector<1x20xf32>, vector<256x20xf32>, vector<1x256xf32> -> vector<1x256xf32>
    %c0_57 = arith.constant 0 : index
    %c0_58 = arith.constant 0 : index
    %102 = vector.load %arg17[%c0_57, %c0_58] : memref<1x256xf32, #tpu.memory_space<vmem>>, vector<1x256xf32>
    tpu.vector_store %arg17[%c0_57, %c0_58], %101 {strides = array<i32>} : memref<1x256xf32, #tpu.memory_space<vmem>>, vector<1x256xf32>,
    return
  }
  func.func @transform_0(%arg0: i32) -> (i32, i32) {
    %c0_i32 = arith.constant 0 : i32
    %c0_i32_0 = arith.constant 0 : i32
    return %arg0, %c0_i32 : i32, i32
  }
  func.func @transform_1(%arg0: i32) -> (i32, i32) {
    %c0_i32 = arith.constant 0 : i32
    %c0_i32_0 = arith.constant 0 : i32
    return %arg0, %c0_i32 : i32, i32
  }
  func.func @transform_2(%arg0: i32) -> (i32, i32) {
    %c0_i32 = arith.constant 0 : i32
    %c0_i32_0 = arith.constant 0 : i32
    return %arg0, %c0_i32 : i32, i32
  }
  func.func @transform_3(%arg0: i32) -> (i32, i32) {
    %c0_i32 = arith.constant 0 : i32
    %c0_i32_0 = arith.constant 0 : i32
    %c0_i32_1 = arith.constant 0 : i32
    return %c0_i32, %c0_i32_0 : i32, i32
  }
  func.func @transform_4(%arg0: i32) -> (i32, i32) {
    %c0_i32 = arith.constant 0 : i32
    %c0_i32_0 = arith.constant 0 : i32
    %c0_i32_1 = arith.constant 0 : i32
    return %c0_i32, %c0_i32_0 : i32, i32
  }
  func.func @transform_5(%arg0: i32) -> (i32, i32) {
    %c0_i32 = arith.constant 0 : i32
    %c0_i32_0 = arith.constant 0 : i32
    %c0_i32_1 = arith.constant 0 : i32
    return %c0_i32, %c0_i32_0 : i32, i32
  }
  func.func @transform_6(%arg0: i32) -> (i32, i32) {
    %c0_i32 = arith.constant 0 : i32
    %c0_i32_0 = arith.constant 0 : i32
    %c0_i32_1 = arith.constant 0 : i32
    return %c0_i32, %c0_i32_0 : i32, i32
  }
  func.func @transform_7(%arg0: i32) -> (i32, i32) {
    %c0_i32 = arith.constant 0 : i32
    %c0_i32_0 = arith.constant 0 : i32
    %c0_i32_1 = arith.constant 0 : i32
    return %c0_i32, %c0_i32_0 : i32, i32
  }
  func.func @transform_8(%arg0: i32) -> (i32, i32) {
    %c0_i32 = arith.constant 0 : i32
    %c0_i32_0 = arith.constant 0 : i32
    %c0_i32_1 = arith.constant 0 : i32
    return %c0_i32, %c0_i32_0 : i32, i32
  }
  func.func @transform_9(%arg0: i32) -> (i32, i32) {
    %c0_i32 = arith.constant 0 : i32
    %c0_i32_0 = arith.constant 0 : i32
    %c0_i32_1 = arith.constant 0 : i32
    return %c0_i32, %c0_i32_0 : i32, i32
  }
  func.func @transform_10(%arg0: i32) -> (i32, i32) {
    %c0_i32 = arith.constant 0 : i32
    %c0_i32_0 = arith.constant 0 : i32
    %c0_i32_1 = arith.constant 0 : i32
    return %c0_i32, %c0_i32_0 : i32, i32
  }
  func.func @transform_11(%arg0: i32) -> (i32, i32) {
    %c0_i32 = arith.constant 0 : i32
    %c0_i32_0 = arith.constant 0 : i32
    %c0_i32_1 = arith.constant 0 : i32
    return %c0_i32, %c0_i32_0 : i32, i32
  }
  func.func @transform_12(%arg0: i32) -> (i32, i32) {
    %c0_i32 = arith.constant 0 : i32
    %c0_i32_0 = arith.constant 0 : i32
    %c0_i32_1 = arith.constant 0 : i32
    return %c0_i32, %c0_i32_0 : i32, i32
  }
  func.func @transform_13(%arg0: i32) -> (i32, i32) {
    %c0_i32 = arith.constant 0 : i32
    %c0_i32_0 = arith.constant 0 : i32
    %c0_i32_1 = arith.constant 0 : i32
    return %c0_i32, %c0_i32_0 : i32, i32
  }
  func.func @transform_14(%arg0: i32) -> (i32, i32) {
    %c0_i32 = arith.constant 0 : i32
    %c0_i32_0 = arith.constant 0 : i32
    %c0_i32_1 = arith.constant 0 : i32
    return %c0_i32, %c0_i32_0 : i32, i32
  }
  func.func @transform_15(%arg0: i32) -> (i32, i32) {
    %c0_i32 = arith.constant 0 : i32
    %c0_i32_0 = arith.constant 0 : i32
    return %arg0, %c0_i32 : i32, i32
  }
  func.func @transform_16(%arg0: i32) -> (i32, i32) {
    %c0_i32 = arith.constant 0 : i32
    %c0_i32_0 = arith.constant 0 : i32
    return %c0_i32, %arg0 : i32, i32
  }
}

</mosaic_0001>

<bundles_post_ra>
// kernel: tpu_custom_call.1
= control target key start
LH: loop header
LB: loop body
LE: loop exit
PB: predicated region body
PF: predicated region fallthrough
CT: control target
= control target key end

     0   :  { %s10890_s0 = inlined_call_operand.vmem [shape: f32[512,16], index: 0, kind: input, shape index: {}]   ;;  %s10891_s1 = inlined_call_operand.vmem [shape: f32[512,4], index: 1, kind: input, shape index: {}]   ;;  %s10892_s2 = inlined_call_operand.vmem [shape: f32[512,16], index: 2, kind: input, shape index: {}]   ;;  %s10893_s3 = inlined_call_operand.vmem [shape: f32[16,32], index: 3, kind: input, shape index: {}]   ;;  %s10894_s4 = inlined_call_operand.vmem [shape: f32[1,32], index: 4, kind: input, shape index: {}]   ;;  %s10895_s5 = inlined_call_operand.vmem [shape: f32[32,8], index: 5, kind: input, shape index: {}]   ;;  %s10896_s6 = inlined_call_operand.vmem [shape: f32[1,8], index: 6, kind: input, shape index: {}]   ;;  %s10897_s7 = inlined_call_operand.vmem [shape: f32[8,8], index: 7, kind: input, shape index: {}]   ;;  %s10898_s8 = inlined_call_operand.vmem [shape: f32[1,8], index: 8, kind: input, shape index: {}]   ;;  %s10899_s9 = inlined_call_operand.vmem [shape: f32[4,8], index: 9, kind: input, shape index: {}]   ;;  %s10900_s10 = inlined_call_operand.vmem [shape: f32[1,8], index: 10, kind: input, shape index: {}]   ;;  %s10901_s11 = inlined_call_operand.vmem [shape: f32[8,32], index: 11, kind: input, shape index: {}]   ;;  %s10902_s12 = inlined_call_operand.vmem [shape: f32[1,32], index: 12, kind: input, shape index: {}]   ;;  %s10903_s13 = inlined_call_operand.vmem [shape: f32[32,32], index: 13, kind: input, shape index: {}]   ;;  %s10904_s14 = inlined_call_operand.vmem [shape: f32[1,32], index: 14, kind: input, shape index: {}]   ;;  %s10905_s15 = inlined_call_operand.vmem [shape: f32[512,16], index: 15, kind: output, shape index: {0}]   ;;  %s10906_s16 = inlined_call_operand.hbm [shape: f32[1,512], index: 16, kind: output, shape index: {1}]  }
   0x1   :  { %11144 = sst [smem:[#allocation118_spill]] %s10890_s0 }
   0x2   :  { %11145 = sst [smem:[#allocation119_spill]] %s10891_s1 }
   0x3   :  { %11146 = sst [smem:[#allocation120_spill]] %s10892_s2 }
   0x4   :  { %11147 = sst [smem:[#allocation121_spill]] %s10893_s3 }
   0x5   :  { %22 = vsyncpa [#allocation3], 0 }
   0x6   :  { %24 = vsyncpa [#allocation3 + $0x1], 0  ;;  %s7930_s21 = smov 0   ;;  %s7932_s22 = smov 0  }
   0x7   :  { %s7934_s23 = smov 0   ;;  %s7936_s24 = smov 0  }
   0x8 LB: > { %11148 = sst [smem:[#allocation5_spill]] %s7831_s23  ;;  %s6240_s25 = sadd.s32 4294967295, %s7835_s24   ;;  %s7835_s24 = sphi %s7936_s24, %s11594_s24   ;;  %s7831_s23 = sphi %s7934_s23, %s11596_s23   ;;  %s7827_s22 = sphi %s7932_s22, %s11598_s22   ;;  %s7823_s21 = sphi %s7930_s21, %s11597_s21  }
   0x9   : > { %s6241_s26 = sadd.s32 4294967294, %s7835_s24   ;;  %s7953_s27 = sadd.s32 1, %s7835_s24  }
   0xa   : > { %11149 = sst [smem:[#allocation6_spill]] %s7953_s27  ;;  %s393_s28 = sadd.s32 1, %s7831_s23 }
   0xb   : > { %s390_s29 = ssub.s32 %s7835_s24, %s7953_s27  ;;  %p403_p0 = scmp.ne.s32.totalorder %s7831_s23, %s7827_s22 }
   0xc   : > { %p391_p1 = scmp.eq.s32.totalorder %s390_s29, 0  ;;  %p404_p2 = scmp.eq.s32.totalorder %s6240_s25, 1 }
   0xd   : > { %p409_p3 = scmp.ne.s32.totalorder %s7827_s22, %s7823_s21  ;;  %p410_p4 = scmp.eq.s32.totalorder %s6241_s26, 1 }
   0xe   : > { %s7963_s30 = scalar_select %p391_p1, %s7831_s23, %s393_s28  }
   0xf   : > { %p7965_p5 = por %p404_p2, %p403_p0  ;;  %p7969_p6 = por %p410_p4, %p409_p3 }
  0x10   : > { %11150 = sst [smem:[#allocation7_spill]] %s7963_s30  ;;  %p6244_p7 = scmp.ge.s32.totalorder %s7835_s24, 1 }
  0x11   : > { %p491_p8 = scmp.lt.s32.totalorder %s7835_s24, 3 }
  0x13   : > { %p492_p9 = pnand %p6244_p7, %p491_p8 }
  0x15   : > { %495 = sbr.rel (%p492_p9) target bundleno = 2330 (0x91a), region = 80 }
  0x1a   : > { %s11153_s3 = sld [smem:[#allocation121_spill]]  ;;  %s7981_s28 = sshll.u32 %s6240_s25, 5  ;;  %vm686_vm0 = vcmask 130048   ;;  %v1171_v34 = vld [vmem:[%s10895_s5 + $0x18] sm:$0xff]  ;;  %v1170_v35 = vld [vmem:[%s10895_s5 + $0x10] sm:$0xff]  ;;  %v1169_v36 = vld [vmem:[%s10895_s5 + $0x8] sm:$0xff] }
  0x1b   : > { %p557_p10 = scmp.lt.s32.totalorder %s7981_s28, 63  ;;  %s11154_s23 = sld [smem:[#allocation118_spill]]  ;;  %6955 = vmatprep.subr.mxu1 %v1171_v34  ;;  %v1168_v37 = vld [vmem:[%s10895_s5] sm:$0xff]  ;;  %vm1179_vm1 = vcmask 261120   ;;  %vm1669_vm2 = vcmask 64512   ;;  %vm2800_vm3 = vcmask 1043456  }
  0x1c   : > { %6956 = vmatpush3.msra.mxu1 %v1171_v34  ;;  %v1661_v38 = vld [vmem:[%s10897_s7] sm:$0xff]  ;;  %s11155_s1 = sld [smem:[#allocation119_spill]]  ;;  %s7837_s19 = smov 4   ;;  %vm2703_vm4 = vcmask 31744   ;;  %vm5131_vm5 = vcmask 162816  }
  0x1d   : > { %s558_s29 = scalar_select %p557_p10, %s7981_s28, 63  ;;  %6957 = vmatprep.subr.mxu1 %v1170_v35  ;;  %v8075_v39 = vld [vmem:[%s10894_s4] ss:$0 sm:$0xff] }
  0x1e   : > { %6958 = vmatpush3.msra.mxu1 %v1170_v35  ;;  %s7840_s25 = smov 16   ;;  %s11315_s2 = sld [smem:[#allocation120_spill]] }
  0x1f   : > { %s7985_s30 = sshll.u32 %s558_s29, 3  ;;  %6959 = vmatprep.subr.mxu1 %v1169_v36 }
  0x20   : > { %v678_v0 = vld [vmem:[%s11153_s3 + $0x8] sm:$0xff]  ;;  %v677_v1 = vld [vmem:[%s11153_s3] sm:$0xff]  ;;  %6960 = vmatpush3.msra.mxu1 %v1169_v36 }
  0x21   : > { %6903 = vmatprep.subr.mxu0 %v678_v0  ;;  %s7991_s27 = scalar_lea.vmem %s11154_s23, %s7985_s30  ;;  %6961 = vmatprep.subr.mxu1 %v1168_v37  ;;  %s7839_s23 = smov 112  }
  0x22   : > { %6904 = vmatpush3.msra.mxu0 %v678_v0  ;;  %v581_v2 = vld [vmem:[%s7991_s27] sm:$0xff]  ;;  %v582_v3 = vld [vmem:[%s7991_s27 + $0x8] sm:$0xff]  ;;  %v583_v4 = vld [vmem:[%s7991_s27 + $0x10] sm:$0xff]  ;;  %6962 = vmatpush3.msra.mxu1 %v1168_v37  ;;  %s8237_s18 = scalar_lea.vmem %s11155_s1, %s7985_s30 }
  0x23   : > { %6905 = vmatprep.subr.mxu0 %v677_v1  ;;  %6907 = vmatprep.mubr.msk.f32.mxu0 %vm686_vm0, %v581_v2  ;;  %v584_v5 = vld [vmem:[%s7991_s27 + $0x18] sm:$0xff]  ;;  %v585_v6 = vld [vmem:[%s7991_s27 + $0x20] sm:$0xff]  ;;  %v586_v7 = vld [vmem:[%s7991_s27 + $0x28] sm:$0xff] }
  0x24   : > { %6906 = vmatpush3.msra.mxu0 %v677_v1  ;;  %v587_v8 = vld [vmem:[%s7991_s27 + $0x30] sm:$0xff]  ;;  %v588_v9 = vld [vmem:[%s7991_s27 + $0x38] sm:$0xff]  ;;  %v589_v10 = vld [vmem:[%s7991_s27 + $0x40] sm:$0xff]  ;;  %s9890_s26 = scalar_lea.vmem %s11315_s2, %s7985_s30 }
  0x25   : > { %6908 = vmatmul.mubr.msk.f32.vlgmr.msra.gmra.mxu0 %vm686_vm0, %v582_v3  ;;  %v590_v11 = vld [vmem:[%s7991_s27 + $0x48] sm:$0xff]  ;;  %v591_v12 = vld [vmem:[%s7991_s27 + $0x50] sm:$0xff]  ;;  %v592_v13 = vld [vmem:[%s7991_s27 + $0x58] sm:$0xff]  ;;  %7011 = vmatprep.subr.mxu0 %v1661_v38 }
  0x26   : > { %6910 = vmatprep.mubr.msk.f32.mxu0 %vm686_vm0, %v583_v4  ;;  %v593_v14 = vld [vmem:[%s7991_s27 + $0x60] sm:$0xff]  ;;  %v594_v15 = vld [vmem:[%s7991_s27 + $0x68] sm:$0xff]  ;;  %v595_v16 = vld [vmem:[%s7991_s27 + $0x70] sm:$0xff]  ;;  %7012 = vmatpush3.msra.mxu0 %v1661_v38 }
  0x27   : > { %v596_v17 = vld [vmem:[%s7991_s27 + $0x78] sm:$0xff]  ;;  %v597_v18 = vld [vmem:[%s7991_s27 + $0x80] sm:$0xff]  ;;  %v598_v19 = vld [vmem:[%s7991_s27 + $0x88] sm:$0xff] }
  0x28   : > { %v599_v20 = vld [vmem:[%s7991_s27 + $0x90] sm:$0xff]  ;;  %v600_v21 = vld [vmem:[%s7991_s27 + $0x98] sm:$0xff]  ;;  %v601_v22 = vld [vmem:[%s7991_s27 + $0xa0] sm:$0xff] }
  0x29   : > { %6911 = vmatmul.mubr.msk.f32.gmra.mxu0 %vm686_vm0, %v584_v5  ;;  %v602_v23 = vld [vmem:[%s7991_s27 + $0xa8] sm:$0xff]  ;;  %v603_v24 = vld [vmem:[%s7991_s27 + $0xb0] sm:$0xff]  ;;  %v604_v25 = vld [vmem:[%s7991_s27 + $0xb8] sm:$0xff] }
  0x2a   : > { %6913 = vmatprep.mubr.msk.f32.mxu0 %vm686_vm0, %v585_v6  ;;  %v605_v26 = vld [vmem:[%s7991_s27 + $0xc0] sm:$0xff]  ;;  %v606_v27 = vld [vmem:[%s7991_s27 + $0xc8] sm:$0xff]  ;;  %v607_v28 = vld [vmem:[%s7991_s27 + $0xd0] sm:$0xff] }
  0x2b   : > { %v608_v29 = vld [vmem:[%s7991_s27 + $0xd8] sm:$0xff]  ;;  %v609_v30 = vld [vmem:[%s7991_s27 + $0xe0] sm:$0xff]  ;;  %v610_v31 = vld [vmem:[%s7991_s27 + $0xe8] sm:$0xff] }
  0x2c   : > { %v611_v32 = vld [vmem:[%s7991_s27 + $0xf0] sm:$0xff]  ;;  %v612_v33 = vld [vmem:[%s7991_s27 + $0xf8] sm:$0xff] }
  0x2d   : > { %6914 = vmatmul.mubr.msk.f32.gmra.mxu0 %vm686_vm0, %v586_v7 }
  0x2e   : > { %6916 = vmatprep.mubr.msk.f32.mxu0 %vm686_vm0, %v587_v8 }
  0x31   : > { %6917 = vmatmul.mubr.msk.f32.gmra.mxu0 %vm686_vm0, %v588_v9 }
  0x32   : > { %6919 = vmatprep.mubr.msk.f32.mxu0 %vm686_vm0, %v589_v10 }
  0x35   : > { %6920 = vmatmul.mubr.msk.f32.gmra.mxu0 %vm686_vm0, %v590_v11 }
  0x36   : > { %6922 = vmatprep.mubr.msk.f32.mxu0 %vm686_vm0, %v591_v12 }
  0x39   : > { %6923 = vmatmul.mubr.msk.f32.gmra.mxu0 %vm686_vm0, %v592_v13 }
  0x3a   : > { %6925 = vmatprep.mubr.msk.f32.mxu0 %vm686_vm0, %v593_v14 }
  0x3d   : > { %6926 = vmatmul.mubr.msk.f32.gmra.mxu0 %vm686_vm0, %v594_v15 }
  0x3e   : > { %6928 = vmatprep.mubr.msk.f32.mxu0 %vm686_vm0, %v595_v16 }
  0x41   : > { %6929 = vmatmul.mubr.msk.f32.gmra.mxu0 %vm686_vm0, %v596_v17 }
  0x42   : > { %6931 = vmatprep.mubr.msk.f32.mxu0 %vm686_vm0, %v597_v18 }
  0x45   : > { %6932 = vmatmul.mubr.msk.f32.gmra.mxu0 %vm686_vm0, %v598_v19 }
  0x46   : > { %6934 = vmatprep.mubr.msk.f32.mxu0 %vm686_vm0, %v599_v20 }
  0x49   : > { %6935 = vmatmul.mubr.msk.f32.gmra.mxu0 %vm686_vm0, %v600_v21 }
  0x4a   : > { %6937 = vmatprep.mubr.msk.f32.mxu0 %vm686_vm0, %v601_v22 }
  0x4d   : > { %6938 = vmatmul.mubr.msk.f32.gmra.mxu0 %vm686_vm0, %v602_v23 }
  0x4e   : > { %6940 = vmatprep.mubr.msk.f32.mxu0 %vm686_vm0, %v603_v24 }
  0x51   : > { %6941 = vmatmul.mubr.msk.f32.gmra.mxu0 %vm686_vm0, %v604_v25 }
  0x52   : > { %6943 = vmatprep.mubr.msk.f32.mxu0 %vm686_vm0, %v605_v26 }
  0x55   : > { %6944 = vmatmul.mubr.msk.f32.gmra.mxu0 %vm686_vm0, %v606_v27 }
  0x56   : > { %6946 = vmatprep.mubr.msk.f32.mxu0 %vm686_vm0, %v607_v28 }
  0x59   : > { %6947 = vmatmul.mubr.msk.f32.gmra.mxu0 %vm686_vm0, %v608_v29 }
  0x5a   : > { %6949 = vmatprep.mubr.msk.f32.mxu0 %vm686_vm0, %v609_v30 }
  0x5d   : > { %6950 = vmatmul.mubr.msk.f32.gmra.mxu0 %vm686_vm0, %v610_v31 }
  0x5e   : > { %6952 = vmatprep.mubr.msk.f32.mxu0 %vm686_vm0, %v611_v32 }
  0x61   : > { %6953 = vmatmul.mubr.msk.f32.gmra.mxu0 %vm686_vm0, %v612_v33 }
  0xe5   : > { %v6909_v40 = vpop.f32.mrf.mxu0 }
  0xe6   : > { %v855_v41 = vadd.f32 %v6909_v40, %v8075_v39 }
  0xe7   : > { %v849_v42 = vpop.f32.mrf.mxu0 }
  0xe8   : > { %v1041_v43 = vmul.f32 0.70710677, %v855_v41  ;;  %v850_v44 = vadd.f32 %v8075_v39, %v849_v42  ;;  %v1009_v15 = vmul.f32 0.5, %v855_v41 }
  0xe9   : > { %v6912_v45 = vpop.f32.mrf.mxu0 }
  0xea   : > { %7263 = verf.f32 %v1041_v43  ;;  %v1040_v46 = vmul.f32 0.70710677, %v850_v44  ;;  %v865_v47 = vadd.f32 %v6912_v45, %v8075_v39  ;;  %v1008_v12 = vmul.f32 0.5, %v850_v44 }
  0xeb   : > { %v859_v48 = vpop.f32.mrf.mxu0 }
  0xec   : > { %7265 = verf.f32 %v1040_v46  ;;  %v1043_v49 = vmul.f32 0.70710677, %v865_v47  ;;  %v860_v50 = vadd.f32 %v8075_v39, %v859_v48  ;;  %v1011_v29 = vmul.f32 0.5, %v865_v47 }
  0xed   : > { %v6915_v51 = vpop.f32.mrf.mxu0 }
  0xee   : > { %7267 = verf.f32 %v1043_v49  ;;  %v1042_v52 = vmul.f32 0.70710677, %v860_v50  ;;  %v8082_v53 = vadd.f32 %v6915_v51, %v8075_v39  ;;  %v1010_v19 = vmul.f32 0.5, %v860_v50 }
  0xef   : > { %v869_v54 = vpop.f32.mrf.mxu0 }
  0xf0   : > { %7269 = verf.f32 %v1042_v52  ;;  %v1045_v55 = vmul.f32 0.70710677, %v8082_v53  ;;  %v870_v56 = vadd.f32 %v8075_v39, %v869_v54  ;;  %v1013_v44 = vmul.f32 0.5, %v8082_v53 }
  0xf1   : > { %v6918_v57 = vpop.f32.mrf.mxu0 }
  0xf2   : > { %7271 = verf.f32 %v1045_v55  ;;  %v1044_v58 = vmul.f32 0.70710677, %v870_v56  ;;  %v8087_v59 = vadd.f32 %v6918_v57, %v8075_v39  ;;  %v1012_v33 = vmul.f32 0.5, %v870_v56 }
  0xf3   : > { %v879_v60 = vpop.f32.mrf.mxu0 }
  0xf4   : > { %7273 = verf.f32 %v1044_v58  ;;  %v1047_v61 = vmul.f32 0.70710677, %v8087_v59  ;;  %v880_v62 = vadd.f32 %v8075_v39, %v879_v60  ;;  %v1015_v58 = vmul.f32 0.5, %v8087_v59 }
  0xf5   : > { %v6921_v63 = vpop.f32.mrf.mxu0 }
  0xf6   : > { %7275 = verf.f32 %v1047_v61  ;;  %v1046_v0 = vmul.f32 0.70710677, %v880_v62  ;;  %v8092_v1 = vadd.f32 %v6921_v63, %v8075_v39  ;;  %v1014_v48 = vmul.f32 0.5, %v880_v62 }
  0xf7   : > { %v7264_v2 = vpop.eup %7263  ;;  %v889_v3 = vpop.f32.mrf.mxu0 }
  0xf8   : > { %7277 = verf.f32 %v1046_v0  ;;  %v1049_v4 = vmul.f32 0.70710677, %v8092_v1  ;;  %v8096_v6 = vadd.f32 %v8075_v39, %v889_v3  ;;  %v1105_v8 = vadd.f32 1.0, %v7264_v2 }
  0xf9   : > { %v7266_v5 = vpop.eup %7265  ;;  %v6924_v7 = vpop.f32.mrf.mxu0 }
  0xfa   : > { %7279 = verf.f32 %v1049_v4  ;;  %v8099_v9 = vadd.f32 %v6924_v7, %v8075_v39  ;;  %v1104_v10 = vadd.f32 1.0, %v7266_v5  ;;  %v1048_v13 = vmul.f32 0.70710677, %v8096_v6 }
  0xfb   : > { %v7268_v11 = vpop.eup %7267  ;;  %v899_v14 = vpop.f32.mrf.mxu0  ;;  %v1137_v22 = vmul.f32 %v1105_v8, %v1009_v15  ;;  %v1016_v7 = vmul.f32 0.5, %v8096_v6 }
  0xfc   : > { %v1051_v16 = vmul.f32 0.70710677, %v8099_v9  ;;  %v8104_v17 = vadd.f32 %v8075_v39, %v899_v14  ;;  %7281 = verf.f32 %v1048_v13  ;;  %v1136_v21 = vmul.f32 %v1104_v10, %v1008_v12 }
  0xfd   : > { %v7270_v18 = vpop.eup %7269  ;;  %v6927_v20 = vpop.f32.mrf.mxu0  ;;  %v1107_v23 = vadd.f32 1.0, %v7268_v11  ;;  %v1017_v11 = vmul.f32 0.5, %v8092_v1 }
  0xfe   : > { %v1106_v24 = vadd.f32 1.0, %v7270_v18  ;;  %7283 = verf.f32 %v1051_v16  ;;  %v1050_v26 = vmul.f32 0.70710677, %v8104_v17  ;;  %v8108_v27 = vadd.f32 %v6927_v20, %v8075_v39  ;;  %6963 = vmatprep.mubr.msk.f32.mxu1 %vm1179_vm1, %v1136_v21 }
  0xff   : > { %v7272_v25 = vpop.eup %7271  ;;  %v909_v28 = vpop.f32.mrf.mxu0  ;;  %6964 = vmatmul.mubr.msk.f32.vlgmr.msra.gmra.mxu1 %vm1179_vm1, %v1137_v22  ;;  %v1139_v36 = vmul.f32 %v1107_v23, %v1011_v29  ;;  %v1019_v20 = vmul.f32 0.5, %v8099_v9  ;;  %v1018_v1 = vmul.f32 0.5, %v8104_v17 }
 0x100   : > { %v1138_v30 = vmul.f32 %v1106_v24, %v1010_v19  ;;  %v8112_v31 = vadd.f32 %v8075_v39, %v909_v28  ;;  %7285 = verf.f32 %v1050_v26  ;;  %v1053_v34 = vmul.f32 0.70710677, %v8108_v27 }
 0x101   : > { %v7274_v32 = vpop.eup %7273  ;;  %v6930_v35 = vpop.f32.mrf.mxu0  ;;  %v1109_v37 = vadd.f32 1.0, %v7272_v25 }
 0x102   : > { %v1108_v38 = vadd.f32 1.0, %v7274_v32  ;;  %v1052_v40 = vmul.f32 0.70710677, %v8112_v31  ;;  %6966 = vmatprep.mubr.msk.f32.mxu1 %vm1179_vm1, %v1138_v30  ;;  %7287 = verf.f32 %v1053_v34  ;;  %v8119_v42 = vadd.f32 %v6930_v35, %v8075_v39 }
 0x103   : > { %v7276_v41 = vpop.eup %7275  ;;  %v919_v43 = vpop.f32.mrf.mxu0  ;;  %6967 = vmatmul.mubr.msk.f32.gmra.mxu1 %vm1179_vm1, %v1139_v36  ;;  %v1141_v51 = vmul.f32 %v1109_v37, %v1013_v44  ;;  %v1020_v9 = vmul.f32 0.5, %v8112_v31 }
 0x104   : > { %v1140_v45 = vmul.f32 %v1108_v38, %v1012_v33  ;;  %7289 = verf.f32 %v1052_v40  ;;  %v8123_v46 = vadd.f32 %v8075_v39, %v919_v43  ;;  %v1055_v49 = vmul.f32 0.70710677, %v8119_v42 }
 0x105   : > { %v7278_v47 = vpop.eup %7277  ;;  %v6933_v50 = vpop.f32.mrf.mxu0  ;;  %v1111_v52 = vadd.f32 1.0, %v7276_v41  ;;  %v1021_v38 = vmul.f32 0.5, %v8108_v27 }
 0x106   : > { %v1110_v54 = vadd.f32 1.0, %v7278_v47  ;;  %v1054_v55 = vmul.f32 0.70710677, %v8123_v46  ;;  %6969 = vmatprep.mubr.msk.f32.mxu1 %vm1179_vm1, %v1140_v45  ;;  %7291 = verf.f32 %v1055_v49  ;;  %v8130_v56 = vadd.f32 %v6933_v50, %v8075_v39 }
 0x107   : > { %v7280_v53 = vpop.eup %7279  ;;  %v929_v57 = vpop.f32.mrf.mxu0  ;;  %6970 = vmatmul.mubr.msk.f32.gmra.mxu1 %vm1179_vm1, %v1141_v51  ;;  %v1143_v2 = vmul.f32 %v1111_v52, %v1015_v58  ;;  %v1022_v44 = vmul.f32 0.5, %v8123_v46  ;;  %v1023_v51 = vmul.f32 0.5, %v8119_v42 }
 0x108   : > { %v1142_v60 = vmul.f32 %v1110_v54, %v1014_v48  ;;  %7293 = verf.f32 %v1054_v55  ;;  %v8134_v61 = vadd.f32 %v8075_v39, %v929_v57  ;;  %v1057_v62 = vmul.f32 0.70710677, %v8130_v56 }
 0x109   : > { %v6936_v63 = vpop.f32.mrf.mxu0  ;;  %v7282_v0 = vpop.eup %7281  ;;  %v1113_v3 = vadd.f32 1.0, %v7280_v53 }
 0x10a   : > { %v1056_v4 = vmul.f32 0.70710677, %v8134_v61  ;;  %v8140_v5 = vadd.f32 %v6936_v63, %v8075_v39  ;;  %6972 = vmatprep.mubr.msk.f32.mxu1 %vm1179_vm1, %v1142_v60  ;;  %v1112_v8 = vadd.f32 1.0, %v7282_v0  ;;  %7295 = verf.f32 %v1057_v62 }
 0x10b   : > { %v7284_v59 = vpop.eup %7283  ;;  %v939_v10 = vpop.f32.mrf.mxu0  ;;  %6973 = vmatmul.mubr.msk.f32.gmra.mxu1 %vm1179_vm1, %v1143_v2  ;;  %v1145_v19 = vmul.f32 %v1113_v3, %v1017_v11  ;;  %v1024_v58 = vmul.f32 0.5, %v8134_v61 }
 0x10c   : > { %7297 = verf.f32 %v1056_v4  ;;  %v1059_v12 = vmul.f32 0.70710677, %v8140_v5  ;;  %v1144_v13 = vmul.f32 %v1112_v8, %v1016_v7  ;;  %v1115_v14 = vadd.f32 1.0, %v7284_v59 }
 0x10d   : > { %v8148_v15 = vadd.f32 %v8075_v39, %v939_v10  ;;  %v6939_v16 = vpop.f32.mrf.mxu0  ;;  %v7286_v18 = vpop.eup %7285  ;;  %v1025_v59 = vmul.f32 0.5, %v8130_v56 }
 0x10e   : > { %7299 = verf.f32 %v1059_v12  ;;  %v8151_v6 = vadd.f32 %v6939_v16, %v8075_v39  ;;  %v1114_v21 = vadd.f32 1.0, %v7286_v18  ;;  %6975 = vmatprep.mubr.msk.f32.mxu1 %vm1179_vm1, %v1144_v13  ;;  %v1147_v29 = vmul.f32 %v1115_v14, %v1019_v20 }
 0x10f   : > { %v1058_v22 = vmul.f32 0.70710677, %v8148_v15  ;;  %v949_v23 = vpop.f32.mrf.mxu0  ;;  %v7288_v24 = vpop.eup %7287  ;;  %6976 = vmatmul.mubr.msk.f32.gmra.mxu1 %vm1179_vm1, %v1145_v19  ;;  %v1026_v16 = vmul.f32 0.5, %v8148_v15 }
 0x110   : > { %v1061_v25 = vmul.f32 0.70710677, %v8151_v6  ;;  %v8159_v26 = vadd.f32 %v8075_v39, %v949_v23  ;;  %v1146_v30 = vmul.f32 %v1114_v21, %v1018_v1  ;;  %v1117_v32 = vadd.f32 1.0, %v7288_v24 }
 0x111   : > { %v7290_v28 = vpop.eup %7289  ;;  %7301 = verf.f32 %v1058_v22  ;;  %v6942_v17 = vpop.f32.mrf.mxu0  ;;  %v1027_v1 = vmul.f32 0.5, %v8140_v5 }
 0x112   : > { %v1116_v33 = vadd.f32 1.0, %v7290_v28  ;;  %7303 = verf.f32 %v1061_v25  ;;  %v1060_v34 = vmul.f32 0.70710677, %v8159_v26  ;;  %v8165_v35 = vadd.f32 %v6942_v17, %v8075_v39  ;;  %6978 = vmatprep.mubr.msk.f32.mxu1 %vm1179_vm1, %v1146_v30 }
 0x113   : > { %v959_v36 = vpop.f32.mrf.mxu0  ;;  %v7292_v37 = vpop.eup %7291  ;;  %6979 = vmatmul.mubr.msk.f32.gmra.mxu1 %vm1179_vm1, %v1147_v29  ;;  %v1149_v48 = vmul.f32 %v1117_v32, %v1021_v38  ;;  %v1028_v25 = vmul.f32 0.5, %v8159_v26 }
 0x114   : > { %v1148_v40 = vmul.f32 %v1116_v33, %v1020_v9  ;;  %7305 = verf.f32 %v1060_v34  ;;  %v8170_v31 = vadd.f32 %v8075_v39, %v959_v36  ;;  %v1119_v43 = vadd.f32 1.0, %v7292_v37 }
 0x115   : > { %v7294_v41 = vpop.eup %7293  ;;  %v1063_v45 = vmul.f32 0.70710677, %v8165_v35  ;;  %v6945_v47 = vpop.f32.mrf.mxu0  ;;  %v1029_v33 = vmul.f32 0.5, %v8151_v6  ;;  %v1031_v37 = vmul.f32 0.5, %v8165_v35 }
 0x116   : > { %v1118_v49 = vadd.f32 1.0, %v7294_v41  ;;  %v1062_v50 = vmul.f32 0.70710677, %v8170_v31  ;;  %v8177_v27 = vadd.f32 %v6945_v47, %v8075_v39  ;;  %6981 = vmatprep.mubr.msk.f32.mxu1 %vm1179_vm1, %v1148_v40  ;;  %v1151_v57 = vmul.f32 %v1119_v43, %v1023_v51 }
 0x117   : > { %7307 = verf.f32 %v1063_v45  ;;  %v969_v52 = vpop.f32.mrf.mxu0  ;;  %v7296_v54 = vpop.eup %7295  ;;  %6982 = vmatmul.mubr.msk.f32.gmra.mxu1 %vm1179_vm1, %v1149_v48  ;;  %v1030_v38 = vmul.f32 0.5, %v8170_v31 }
 0x118   : > { %v1150_v55 = vmul.f32 %v1118_v49, %v1022_v44  ;;  %7309 = verf.f32 %v1062_v50  ;;  %v1065_v46 = vmul.f32 0.70710677, %v8177_v27  ;;  %v8185_v60 = vadd.f32 %v8075_v39, %v969_v52 }
 0x119   : > { %v7298_v53 = vpop.eup %7297  ;;  %v6948_v62 = vpop.f32.mrf.mxu0  ;;  %v1121_v63 = vadd.f32 1.0, %v7296_v54 }
 0x11a   : > { %v1120_v0 = vadd.f32 1.0, %v7298_v53  ;;  %7311 = verf.f32 %v1065_v46  ;;  %v8188_v42 = vadd.f32 %v6948_v62, %v8075_v39  ;;  %6984 = vmatprep.mubr.msk.f32.mxu1 %vm1179_vm1, %v1150_v55  ;;  %v1064_v3 = vmul.f32 0.70710677, %v8185_v60 }
 0x11b   : > { %v7300_v2 = vpop.eup %7299  ;;  %v979_v4 = vpop.f32.mrf.mxu0  ;;  %6985 = vmatmul.mubr.msk.f32.gmra.mxu1 %vm1179_vm1, %v1151_v57  ;;  %v1153_v12 = vmul.f32 %v1121_v63, %v1025_v59  ;;  %v1032_v35 = vmul.f32 0.5, %v8185_v60 }
 0x11c   : > { %v1152_v7 = vmul.f32 %v1120_v0, %v1024_v58  ;;  %v1067_v61 = vmul.f32 0.70710677, %v8188_v42  ;;  %7313 = verf.f32 %v1064_v3  ;;  %v8196_v8 = vadd.f32 %v8075_v39, %v979_v4 }
 0x11d   : > { %v6951_v10 = vpop.f32.mrf.mxu0  ;;  %v1123_v13 = vadd.f32 1.0, %v7300_v2  ;;  %v1035_v54 = vmul.f32 0.5, %v8188_v42 }
 0x11e   : > { %v7302_v11 = vpop.eup %7301  ;;  %7315 = verf.f32 %v1067_v61  ;;  %v8199_v14 = vadd.f32 %v6951_v10, %v8075_v39  ;;  %6987 = vmatprep.mubr.msk.f32.mxu1 %vm1179_vm1, %v1152_v7  ;;  %v1066_v19 = vmul.f32 0.70710677, %v8196_v8 }
 0x11f   : > { %v7304_v56 = vpop.eup %7303  ;;  %v1122_v18 = vadd.f32 1.0, %v7302_v11  ;;  %v989_v20 = vpop.f32.mrf.mxu0  ;;  %6988 = vmatmul.mubr.msk.f32.gmra.mxu1 %vm1179_vm1, %v1153_v12  ;;  %v1155_v29 = vmul.f32 %v1123_v13, %v1027_v1  ;;  %v618_v1 = vld [vmem:[%s8237_s18 + $0x28] sm:$0xff] }
 0x120   : > { %v1069_v21 = vmul.f32 0.70710677, %v8199_v14  ;;  %v990_v22 = vadd.f32 %v8075_v39, %v989_v20  ;;  %7317 = verf.f32 %v1066_v19  ;;  %v1125_v15 = vadd.f32 1.0, %v7304_v56  ;;  %v613_v56 = vld [vmem:[%s8237_s18] sm:$0xff]  ;;  %v616_v19 = vld [vmem:[%s8237_s18 + $0x18] sm:$0xff] }
 0x121   : > { %v7306_v23 = vpop.eup %7305  ;;  %v1154_v24 = vmul.f32 %v1122_v18, %v1026_v16  ;;  %v6954_v28 = vpop.f32.mrf.mxu0  ;;  %v1037_v62 = vmul.f32 0.5, %v8199_v14  ;;  %v615_v16 = vld [vmem:[%s8237_s18 + $0x10] sm:$0xff]  ;;  %2087 = vrot.lane.b32.xlu0 %v613_v56, %s7837_s19  ;;  %v614_v18 = vld [vmem:[%s8237_s18 + $0x8] sm:$0xff]  ;;  %v617_v20 = vld [vmem:[%s8237_s18 + $0x20] sm:$0xff] }
 0x122   : > { %v1124_v30 = vadd.f32 1.0, %v7306_v23  ;;  %7319 = verf.f32 %v1069_v21  ;;  %v1068_v9 = vmul.f32 0.70710677, %v990_v22  ;;  %v1005_v17 = vadd.f32 %v6954_v28, %v8075_v39  ;;  %2091 = vrot.lane.b32.xlu1 %v615_v16, %s7837_s19  ;;  %v619_v21 = vld [vmem:[%s8237_s18 + $0x30] sm:$0xff]  ;;  %v621_v23 = vld [vmem:[%s8237_s18 + $0x40] sm:$0xff]  ;;  %v624_v28 = vld [vmem:[%s8237_s18 + $0x58] sm:$0xff] }
 0x123   : > { %6990 = vmatprep.mubr.msk.f32.mxu1 %vm1179_vm1, %v1154_v24  ;;  %v999_v5 = vpop.f32.mrf.mxu0  ;;  %v1157_v41 = vmul.f32 %v1125_v15, %v1029_v33  ;;  %v1036_v2 = vmul.f32 0.5, %v990_v22  ;;  %v620_v22 = vld [vmem:[%s8237_s18 + $0x38] sm:$0xff]  ;;  %v622_v24 = vld [vmem:[%s8237_s18 + $0x48] sm:$0xff] }
 0x124   : > { %v7308_v32 = vpop.eup %7307  ;;  %v1156_v34 = vmul.f32 %v1124_v30, %v1028_v25  ;;  %v1000_v36 = vadd.f32 %v8075_v39, %v999_v5  ;;  %6991 = vmatmul.mubr.msk.f32.gmra.mxu1 %vm1179_vm1, %v1155_v29  ;;  %7321 = verf.f32 %v1068_v9  ;;  %v1071_v40 = vmul.f32 0.70710677, %v1005_v17  ;;  %v623_v25 = vld [vmem:[%s8237_s18 + $0x50] sm:$0xff]  ;;  %v625_v29 = vld [vmem:[%s8237_s18 + $0x60] sm:$0xff]  ;;  %v626_v15 = vld [vmem:[%s8237_s18 + $0x68] sm:$0xff] }
 0x125   : > { %v7310_v26 = vpop.eup %7309  ;;  %v1127_v43 = vadd.f32 1.0, %v7308_v32  ;;  %v1033_v39 = vmul.f32 0.5, %v8177_v27  ;;  %v1034_v27 = vmul.f32 0.5, %v8196_v8  ;;  %v1039_v7 = vmul.f32 0.5, %v1005_v17  ;;  %2089 = vrot.lane.b32.xlu0 %v614_v18, %s7837_s19  ;;  %v627_v30 = vld [vmem:[%s8237_s18 + $0x70] sm:$0xff]  ;;  %v628_v9 = vld [vmem:[%s8237_s18 + $0x78] sm:$0xff] }
 0x126   : > { %v1126_v44 = vadd.f32 1.0, %v7310_v26  ;;  %v1070_v45 = vmul.f32 0.70710677, %v1000_v36  ;;  %6993 = vmatprep.mubr.msk.f32.mxu1 %vm1179_vm1, %v1156_v34  ;;  %7323 = verf.f32 %v1071_v40  ;;  %v1038_v61 = vmul.f32 0.5, %v1000_v36  ;;  %2093 = vrot.lane.b32.xlu1 %v616_v19, %s7837_s19  ;;  %v629_v17 = vld [vmem:[%s8237_s18 + $0x80] sm:$0xff]  ;;  %v630_v5 = vld [vmem:[%s8237_s18 + $0x88] sm:$0xff] }
 0x127   : > { %v7312_v47 = vpop.eup %7311  ;;  %v1159_v49 = vmul.f32 %v1127_v43, %v1031_v37  ;;  %v631_v32 = vld [vmem:[%s8237_s18 + $0x90] sm:$0xff]  ;;  %v632_v33 = vld [vmem:[%s8237_s18 + $0x98] sm:$0xff]  ;;  %v8282_v34 = vld [vmem:[%s10896_s6] ss:$0 sm:$0xff] }
 0x128   : > { %v1158_v6 = vmul.f32 %v1126_v44, %v1030_v38  ;;  %v1129_v48 = vadd.f32 1.0, %v7312_v47  ;;  %7325 = verf.f32 %v1070_v45  ;;  %6994 = vmatmul.mubr.msk.f32.gmra.mxu1 %vm1179_vm1, %v1157_v41  ;;  %v633_v36 = vld [vmem:[%s8237_s18 + $0xa0] sm:$0xff]  ;;  %v634_v26 = vld [vmem:[%s8237_s18 + $0xa8] sm:$0xff]  ;;  %v635_v41 = vld [vmem:[%s8237_s18 + $0xb0] sm:$0xff] }
 0x129   : > { %v7314_v31 = vpop.eup %7313  ;;  %2095 = vrot.lane.b32.xlu0 %v617_v20, %s7837_s19  ;;  %v636_v43 = vld [vmem:[%s8237_s18 + $0xb8] sm:$0xff] }
 0x12a   : > { %6996 = vmatprep.mubr.msk.f32.mxu1 %vm1179_vm1, %v1158_v6  ;;  %v1128_v51 = vadd.f32 1.0, %v7314_v31  ;;  %v1161_v52 = vmul.f32 %v1129_v48, %v1033_v39  ;;  %2097 = vrot.lane.b32.xlu1 %v618_v1, %s7837_s19  ;;  %v638_v31 = vld [vmem:[%s8237_s18 + $0xc8] sm:$0xff] }
 0x12b   : > { %v7316_v50 = vpop.eup %7315 }
 0x12c   : > { %v1131_v55 = vadd.f32 1.0, %v7316_v50  ;;  %6997 = vmatmul.mubr.msk.f32.gmra.mxu1 %vm1179_vm1, %v1159_v49  ;;  %v1160_v46 = vmul.f32 %v1128_v51, %v1032_v35  ;;  %v637_v35 = vld [vmem:[%s8237_s18 + $0xc0] sm:$0xff] }
 0x12d   : > { %v7318_v53 = vpop.eup %7317  ;;  %2099 = vrot.lane.b32.xlu0 %v619_v21, %s7837_s19 }
 0x12e   : > { %v1130_v58 = vadd.f32 1.0, %v7318_v53  ;;  %6999 = vmatprep.mubr.msk.f32.mxu1 %vm1179_vm1, %v1160_v46  ;;  %v1163_v60 = vmul.f32 %v1131_v55, %v1035_v54  ;;  %2101 = vrot.lane.b32.xlu1 %v620_v22, %s7837_s19  ;;  %v639_v46 = vld [vmem:[%s8237_s18 + $0xd0] sm:$0xff] }
 0x12f   : > { %v7320_v57 = vpop.eup %7319 }
 0x130   : > { %v1133_v63 = vadd.f32 1.0, %v7320_v57  ;;  %7000 = vmatmul.mubr.msk.f32.gmra.mxu1 %vm1179_vm1, %v1161_v52  ;;  %v1162_v0 = vmul.f32 %v1130_v58, %v1034_v27  ;;  %v640_v27 = vld [vmem:[%s8237_s18 + $0xd8] sm:$0xff] }
 0x131   : > { %v7322_v42 = vpop.eup %7321  ;;  %2103 = vrot.lane.b32.xlu0 %v621_v23, %s7837_s19  ;;  %v644_v23 = vld [vmem:[%s8237_s18 + $0xf8] sm:$0xff] }
 0x132   : > { %v1132_v3 = vadd.f32 1.0, %v7322_v42  ;;  %7002 = vmatprep.mubr.msk.f32.mxu1 %vm1179_vm1, %v1162_v0  ;;  %v1165_v59 = vmul.f32 %v1133_v63, %v1037_v62  ;;  %2105 = vrot.lane.b32.xlu1 %v622_v24, %s7837_s19  ;;  %v641_v0 = vld [vmem:[%s8237_s18 + $0xe0] sm:$0xff] }
 0x133   : > { %v7324_v4 = vpop.eup %7323 }
 0x134   : > { %7003 = vmatmul.mubr.msk.f32.gmra.mxu1 %vm1179_vm1, %v1163_v60  ;;  %v1164_v10 = vmul.f32 %v1132_v3, %v1036_v2  ;;  %v1135_v11 = vadd.f32 1.0, %v7324_v4  ;;  %v642_v2 = vld [vmem:[%s8237_s18 + $0xe8] sm:$0xff] }
 0x135   : > { %v7326_v8 = vpop.eup %7325  ;;  %2107 = vrot.lane.b32.xlu0 %v623_v25, %s7837_s19 }
 0x136   : > { %v1134_v12 = vadd.f32 1.0, %v7326_v8  ;;  %7005 = vmatprep.mubr.msk.f32.mxu1 %vm1179_vm1, %v1164_v10  ;;  %v1167_v13 = vmul.f32 %v1135_v11, %v1039_v7  ;;  %2109 = vrot.lane.b32.xlu1 %v624_v28, %s7837_s19  ;;  %v643_v10 = vld [vmem:[%s8237_s18 + $0xf0] sm:$0xff] }
 0x138   : > { %v1166_v14 = vmul.f32 %v1134_v12, %v1038_v61  ;;  %7006 = vmatmul.mubr.msk.f32.gmra.mxu1 %vm1179_vm1, %v1165_v59 }
 0x139   : > { %2111 = vrot.lane.b32.xlu0 %v625_v29, %s7837_s19 }
 0x13a   : > { %7008 = vmatprep.mubr.msk.f32.mxu1 %vm1179_vm1, %v1166_v14  ;;  %2113 = vrot.lane.b32.xlu1 %v626_v15, %s7837_s19 }
 0x13c   : > { %7009 = vmatmul.mubr.msk.f32.gmra.mxu1 %vm1179_vm1, %v1167_v13 }
 0x13d   : > { %2115 = vrot.lane.b32.xlu0 %v627_v30, %s7837_s19 }
 0x13e   : > { %2117 = vrot.lane.b32.xlu1 %v628_v9, %s7837_s19 }
 0x141   : > { %2119 = vrot.lane.b32.xlu0 %v629_v17, %s7837_s19 }
 0x142   : > { %2121 = vrot.lane.b32.xlu1 %v630_v5, %s7837_s19 }
 0x145   : > { %2123 = vrot.lane.b32.xlu0 %v631_v32, %s7837_s19 }
 0x146   : > { %2125 = vrot.lane.b32.xlu1 %v632_v33, %s7837_s19 }
 0x149   : > { %2127 = vrot.lane.b32.xlu0 %v633_v36, %s7837_s19 }
 0x14a   : > { %2129 = vrot.lane.b32.xlu1 %v634_v26, %s7837_s19 }
 0x14d   : > { %2131 = vrot.lane.b32.xlu0 %v635_v41, %s7837_s19 }
 0x14e   : > { %2133 = vrot.lane.b32.xlu1 %v636_v43, %s7837_s19 }
 0x151   : > { %2135 = vrot.lane.b32.xlu0 %v637_v35, %s7837_s19 }
 0x152   : > { %2137 = vrot.lane.b32.xlu1 %v638_v31, %s7837_s19 }
 0x155   : > { %2139 = vrot.lane.b32.xlu0 %v639_v46, %s7837_s19 }
 0x156   : > { %2141 = vrot.lane.b32.xlu1 %v640_v27, %s7837_s19 }
 0x159   : > { %2143 = vrot.lane.b32.xlu0 %v641_v0, %s7837_s19 }
 0x15a   : > { %2145 = vrot.lane.b32.xlu1 %v642_v2, %s7837_s19 }
 0x15d   : > { %2147 = vrot.lane.b32.xlu0 %v643_v10, %s7837_s19 }
 0x161   : > { %2149 = vrot.lane.b32.xlu0 %v644_v23, %s7837_s19  ;;  %s10953_s19 = smov 124  }
 0x1bf   : > { %v6965_v37 = vpop.f32.mrf.mxu1 }
 0x1c0   : > { %v8287_v38 = vadd.f32 %v6965_v37, %v8282_v34 }
 0x1c1   : > { %v1342_v40 = vpop.f32.mrf.mxu1 }
 0x1c2   : > { %v1534_v44 = vmul.f32 0.70710677, %v8287_v38  ;;  %v1343_v45 = vadd.f32 %v8282_v34, %v1342_v40  ;;  %v1502_v1 = vmul.f32 0.5, %v8287_v38 }
 0x1c3   : > { %v6968_v47 = vpop.f32.mrf.mxu1 }
 0x1c4   : > { %7327 = verf.f32 %v1534_v44  ;;  %v1533_v6 = vmul.f32 0.70710677, %v1343_v45  ;;  %v8296_v39 = vadd.f32 %v6968_v47, %v8282_v34  ;;  %v1501_v16 = vmul.f32 0.5, %v1343_v45 }
 0x1c5   : > { %v1352_v48 = vpop.f32.mrf.mxu1 }
 0x1c6   : > { %7329 = verf.f32 %v1533_v6  ;;  %v1536_v49 = vmul.f32 0.70710677, %v8296_v39  ;;  %v1353_v50 = vadd.f32 %v8282_v34, %v1352_v48  ;;  %v1504_v36 = vmul.f32 0.5, %v8296_v39 }
 0x1c7   : > { %v6971_v51 = vpop.f32.mrf.mxu1 }
 0x1c8   : > { %7331 = verf.f32 %v1536_v49  ;;  %v1535_v52 = vmul.f32 0.70710677, %v1353_v50  ;;  %v8305_v54 = vadd.f32 %v6971_v51, %v8282_v34  ;;  %v1503_v17 = vmul.f32 0.5, %v1353_v50 }
 0x1c9   : > { %v1362_v55 = vpop.f32.mrf.mxu1 }
 0x1ca   : > { %7333 = verf.f32 %v1535_v52  ;;  %v1538_v53 = vmul.f32 0.70710677, %v8305_v54  ;;  %v8313_v57 = vadd.f32 %v8282_v34, %v1362_v55  ;;  %v1506_v31 = vmul.f32 0.5, %v8305_v54 }
 0x1cb   : > { %v6974_v58 = vpop.f32.mrf.mxu1 }
 0x1cc   : > { %7335 = verf.f32 %v1538_v53  ;;  %v1537_v60 = vmul.f32 0.70710677, %v8313_v57  ;;  %v8317_v62 = vadd.f32 %v6974_v58, %v8282_v34  ;;  %v1505_v6 = vmul.f32 0.5, %v8313_v57 }
 0x1cd   : > { %v1372_v63 = vpop.f32.mrf.mxu1 }
 0x1ce   : > { %7337 = verf.f32 %v1537_v60  ;;  %v1540_v42 = vmul.f32 0.70710677, %v8317_v62  ;;  %v8325_v3 = vadd.f32 %v8282_v34, %v1372_v63  ;;  %v1508_v0 = vmul.f32 0.5, %v8317_v62 }
 0x1cf   : > { %v6977_v4 = vpop.f32.mrf.mxu1 }
 0x1d0   : > { %7339 = verf.f32 %v1540_v42  ;;  %v1539_v59 = vmul.f32 0.70710677, %v8325_v3  ;;  %v8329_v7 = vadd.f32 %v6977_v4, %v8282_v34  ;;  %v1507_v58 = vmul.f32 0.5, %v8325_v3 }
 0x1d1   : > { %v7328_v61 = vpop.eup %7327  ;;  %v1382_v8 = vpop.f32.mrf.mxu1 }
 0x1d2   : > { %7341 = verf.f32 %v1539_v59  ;;  %v1542_v11 = vmul.f32 0.70710677, %v8329_v7  ;;  %v1598_v13 = vadd.f32 1.0, %v7328_v61  ;;  %v8336_v14 = vadd.f32 %v8282_v34, %v1382_v8 }
 0x1d3   : > { %v7330_v12 = vpop.eup %7329  ;;  %v6980_v56 = vpop.f32.mrf.mxu1 }
 0x1d4   : > { %v1597_v18 = vadd.f32 1.0, %v7330_v12  ;;  %7343 = verf.f32 %v1542_v11  ;;  %v8339_v19 = vadd.f32 %v6980_v56, %v8282_v34  ;;  %v1541_v21 = vmul.f32 0.70710677, %v8336_v14 }
 0x1d5   : > { %v7332_v20 = vpop.eup %7331  ;;  %v1392_v22 = vpop.f32.mrf.mxu1  ;;  %v1630_v29 = vmul.f32 %v1598_v13, %v1502_v1  ;;  %v1509_v13 = vmul.f32 0.5, %v8336_v14 }
 0x1d6   : > { %v1629_v24 = vmul.f32 %v1597_v18, %v1501_v16  ;;  %v1544_v25 = vmul.f32 0.70710677, %v8339_v19  ;;  %v1600_v15 = vadd.f32 1.0, %v7332_v20  ;;  %7345 = verf.f32 %v1541_v21 }
 0x1d7   : > { %v7334_v28 = vpop.eup %7333  ;;  %v8347_v30 = vadd.f32 %v8282_v34, %v1392_v22  ;;  %v6983_v9 = vpop.f32.mrf.mxu1  ;;  %v1510_v20 = vmul.f32 0.5, %v8329_v7 }
 0x1d8   : > { %v1599_v5 = vadd.f32 1.0, %v7334_v28  ;;  %7347 = verf.f32 %v1544_v25  ;;  %v8350_v32 = vadd.f32 %v6983_v9, %v8282_v34  ;;  %7013 = vmatprep.mubr.msk.f32.mxu0 %vm1669_vm2, %v1629_v24  ;;  %v1632_v43 = vmul.f32 %v1600_v15, %v1504_v36 }
 0x1d9   : > { %v7336_v33 = vpop.eup %7335  ;;  %v1543_v26 = vmul.f32 0.70710677, %v8347_v30  ;;  %v1402_v37 = vpop.f32.mrf.mxu1  ;;  %7014 = vmatmul.mubr.msk.f32.vlgmr.msra.gmra.mxu0 %vm1669_vm2, %v1630_v29  ;;  %v1511_v15 = vmul.f32 0.5, %v8347_v30 }
 0x1da   : > { %v1631_v38 = vmul.f32 %v1599_v5, %v1503_v17  ;;  %v1546_v40 = vmul.f32 0.70710677, %v8350_v32  ;;  %v1602_v44 = vadd.f32 1.0, %v7336_v33  ;;  %v8359_v45 = vadd.f32 %v8282_v34, %v1402_v37 }
 0x1db   : > { %v7338_v41 = vpop.eup %7337  ;;  %7349 = verf.f32 %v1543_v26  ;;  %v6986_v47 = vpop.f32.mrf.mxu1  ;;  %v1512_v5 = vmul.f32 0.5, %v8339_v19 }
 0x1dc   : > { %v1601_v48 = vadd.f32 1.0, %v7338_v41  ;;  %7351 = verf.f32 %v1546_v40  ;;  %v8363_v39 = vadd.f32 %v6986_v47, %v8282_v34  ;;  %7016 = vmatprep.mubr.msk.f32.mxu0 %vm1669_vm2, %v1631_v38  ;;  %v1545_v49 = vmul.f32 0.70710677, %v8359_v45 }
 0x1dd   : > { %v7340_v35 = vpop.eup %7339  ;;  %v1412_v50 = vpop.f32.mrf.mxu1  ;;  %7017 = vmatmul.mubr.msk.f32.gmra.mxu0 %vm1669_vm2, %v1632_v43  ;;  %v1634_v46 = vmul.f32 %v1602_v44, %v1506_v31  ;;  %v1513_v19 = vmul.f32 0.5, %v8359_v45 }
 0x1de   : > { %v1633_v51 = vmul.f32 %v1601_v48, %v1505_v6  ;;  %v1548_v52 = vmul.f32 0.70710677, %v8363_v39  ;;  %v1604_v27 = vadd.f32 1.0, %v7340_v35  ;;  %7353 = verf.f32 %v1545_v49 }
 0x1df   : > { %v7342_v55 = vpop.eup %7341  ;;  %v8371_v53 = vadd.f32 %v8282_v34, %v1412_v50  ;;  %v6989_v57 = vpop.f32.mrf.mxu1  ;;  %v1514_v48 = vmul.f32 0.5, %v8350_v32 }
 0x1e0   : > { %v1603_v60 = vadd.f32 1.0, %v7342_v55  ;;  %7355 = verf.f32 %v1548_v52  ;;  %v8375_v54 = vadd.f32 %v6989_v57, %v8282_v34  ;;  %7019 = vmatprep.mubr.msk.f32.mxu0 %vm1669_vm2, %v1633_v51  ;;  %v1636_v61 = vmul.f32 %v1604_v27, %v1508_v0 }
 0x1e1   : > { %v7344_v63 = vpop.eup %7343  ;;  %v1547_v2 = vmul.f32 0.70710677, %v8371_v53  ;;  %v1422_v42 = vpop.f32.mrf.mxu1  ;;  %7020 = vmatmul.mubr.msk.f32.gmra.mxu0 %vm1669_vm2, %v1634_v46  ;;  %v1515_v32 = vmul.f32 0.5, %v8371_v53 }
 0x1e2   : > { %v1635_v4 = vmul.f32 %v1603_v60, %v1507_v58  ;;  %v1550_v59 = vmul.f32 0.70710677, %v8375_v54  ;;  %v8383_v3 = vadd.f32 %v8282_v34, %v1422_v42  ;;  %v1606_v11 = vadd.f32 1.0, %v7344_v63 }
 0x1e3   : > { %7357 = verf.f32 %v1547_v2  ;;  %v7346_v10 = vpop.eup %7345  ;;  %v1516_v60 = vmul.f32 0.5, %v8363_v39 }
 0x1e4   : > { %v6992_v8 = vpop.f32.mrf.mxu1  ;;  %7359 = verf.f32 %v1550_v59  ;;  %7022 = vmatprep.mubr.msk.f32.mxu0 %vm1669_vm2, %v1635_v4  ;;  %v1605_v56 = vadd.f32 1.0, %v7346_v10  ;;  %v1549_v16 = vmul.f32 0.70710677, %v8383_v3  ;;  %v1638_v25 = vmul.f32 %v1606_v11, %v1510_v20 }
 0x1e5   : > { %v8386_v12 = vadd.f32 %v6992_v8, %v8282_v34  ;;  %v7348_v62 = vpop.eup %7347  ;;  %7023 = vmatmul.mubr.msk.f32.gmra.mxu0 %vm1669_vm2, %v1636_v61  ;;  %v1517_v10 = vmul.f32 0.5, %v8383_v3 }
 0x1e6   : > { %v1432_v18 = vpop.f32.mrf.mxu1  ;;  %v1637_v22 = vmul.f32 %v1605_v56, %v1509_v13  ;;  %7361 = verf.f32 %v1549_v16  ;;  %v1608_v28 = vadd.f32 1.0, %v7348_v62  ;;  %v1518_v13 = vmul.f32 0.5, %v8375_v54 }
 0x1e7   : > { %v1552_v1 = vmul.f32 0.70710677, %v8386_v12  ;;  %v8395_v21 = vadd.f32 %v8282_v34, %v1432_v18  ;;  %v1520_v54 = vmul.f32 0.5, %v8386_v12 }
 0x1e8   : > { %v6995_v23 = vpop.f32.mrf.mxu1  ;;  %v7350_v24 = vpop.eup %7349  ;;  %7025 = vmatprep.mubr.msk.f32.mxu0 %vm1669_vm2, %v1637_v22  ;;  %v1640_v38 = vmul.f32 %v1608_v28, %v1512_v5 }
 0x1e9   : > { %7363 = verf.f32 %v1552_v1  ;;  %v1551_v14 = vmul.f32 0.70710677, %v8395_v21  ;;  %v7352_v29 = vpop.eup %7351  ;;  %v1607_v9 = vadd.f32 1.0, %v7350_v24  ;;  %v8400_v7 = vadd.f32 %v6995_v23, %v8282_v34  ;;  %7026 = vmatmul.mubr.msk.f32.gmra.mxu0 %vm1669_vm2, %v1638_v25 }
 0x1ea   : > { %v1442_v17 = vpop.f32.mrf.mxu1  ;;  %v1610_v40 = vadd.f32 1.0, %v7352_v29  ;;  %v1519_v23 = vmul.f32 0.5, %v8395_v21 }
 0x1eb   : > { %7365 = verf.f32 %v1551_v14  ;;  %v8405_v33 = vadd.f32 %v8282_v34, %v1442_v17  ;;  %v1639_v36 = vmul.f32 %v1607_v9, %v1511_v15  ;;  %v1554_v26 = vmul.f32 0.70710677, %v8400_v7  ;;  %v7354_v30 = vpop.eup %7353 }
 0x1ec   : > { %v6998_v37 = vpop.f32.mrf.mxu1  ;;  %v1609_v47 = vadd.f32 1.0, %v7354_v30  ;;  %v1642_v52 = vmul.f32 %v1610_v40, %v1514_v48 }
 0x1ed   : > { %v1553_v41 = vmul.f32 0.70710677, %v8405_v33  ;;  %v8411_v43 = vadd.f32 %v6998_v37, %v8282_v34  ;;  %v7356_v44 = vpop.eup %7355  ;;  %7367 = verf.f32 %v1554_v26  ;;  %7028 = vmatprep.mubr.msk.f32.mxu0 %vm1669_vm2, %v1639_v36  ;;  %v1521_v5 = vmul.f32 0.5, %v8405_v33 }
 0x1ee   : > { %v1452_v6 = vpop.f32.mrf.mxu1  ;;  %7029 = vmatmul.mubr.msk.f32.gmra.mxu0 %vm1669_vm2, %v1640_v38  ;;  %v1641_v31 = vmul.f32 %v1609_v47, %v1513_v19  ;;  %v1612_v45 = vadd.f32 1.0, %v7356_v44  ;;  %v1522_v44 = vmul.f32 0.5, %v8400_v7 }
 0x1ef   : > { %7369 = verf.f32 %v1553_v41  ;;  %v1556_v35 = vmul.f32 0.70710677, %v8411_v43  ;;  %v8419_v49 = vadd.f32 %v8282_v34, %v1452_v6  ;;  %v1524_v7 = vmul.f32 0.5, %v8411_v43 }
 0x1f0   : > { %v7001_v50 = vpop.f32.mrf.mxu1  ;;  %v7358_v51 = vpop.eup %7357  ;;  %7031 = vmatprep.mubr.msk.f32.mxu0 %vm1669_vm2, %v1641_v31  ;;  %v1644_v53 = vmul.f32 %v1612_v45, %v1516_v60 }
 0x1f1   : > { %7371 = verf.f32 %v1556_v35  ;;  %v8422_v55 = vadd.f32 %v7001_v50, %v8282_v34  ;;  %v7360_v46 = vpop.eup %7359  ;;  %v1611_v27 = vadd.f32 1.0, %v7358_v51  ;;  %v1555_v57 = vmul.f32 0.70710677, %v8419_v49 }
 0x1f2   : > { %v1462_v58 = vpop.f32.mrf.mxu1  ;;  %7032 = vmatmul.mubr.msk.f32.gmra.mxu0 %vm1669_vm2, %v1642_v52  ;;  %v1614_v59 = vadd.f32 1.0, %v7360_v46  ;;  %v1523_v50 = vmul.f32 0.5, %v8419_v49 }
 0x1f3   : > { %v1558_v63 = vmul.f32 0.70710677, %v8422_v55  ;;  %v8430_v0 = vadd.f32 %v8282_v34, %v1462_v58  ;;  %v1643_v2 = vmul.f32 %v1611_v27, %v1515_v32  ;;  %7373 = verf.f32 %v1555_v57  ;;  %v7362_v4 = vpop.eup %7361 }
 0x1f4   : > { %v7004_v42 = vpop.f32.mrf.mxu1  ;;  %v1613_v39 = vadd.f32 1.0, %v7362_v4  ;;  %v1646_v22 = vmul.f32 %v1614_v59, %v1518_v13  ;;  %v1526_v49 = vmul.f32 0.5, %v8422_v55 }
 0x1f5   : > { %7375 = verf.f32 %v1558_v63  ;;  %v1557_v61 = vmul.f32 0.70710677, %v8430_v0  ;;  %v8436_v11 = vadd.f32 %v7004_v42, %v8282_v34  ;;  %7034 = vmatprep.mubr.msk.f32.mxu0 %vm1669_vm2, %v1643_v2  ;;  %v1525_v27 = vmul.f32 0.5, %v8430_v0 }
 0x1f6   : > { %v7364_v8 = vpop.eup %7363  ;;  %v1472_v62 = vpop.f32.mrf.mxu1  ;;  %7035 = vmatmul.mubr.msk.f32.gmra.mxu0 %vm1669_vm2, %v1644_v53  ;;  %v1645_v18 = vmul.f32 %v1613_v39, %v1517_v10 }
 0x1f7   : > { %7377 = verf.f32 %v1557_v61  ;;  %v8441_v56 = vadd.f32 %v8282_v34, %v1472_v62  ;;  %v1616_v20 = vadd.f32 1.0, %v7364_v8  ;;  %v1560_v3 = vmul.f32 0.70710677, %v8436_v11 }
 0x1f8   : > { %v7366_v16 = vpop.eup %7365  ;;  %v7007_v1 = vpop.f32.mrf.mxu1  ;;  %7037 = vmatprep.mubr.msk.f32.mxu0 %vm1669_vm2, %v1645_v18  ;;  %v1528_v0 = vmul.f32 0.5, %v8436_v11 }
 0x1f9   : > { %v1615_v24 = vadd.f32 1.0, %v7366_v16  ;;  %v1559_v25 = vmul.f32 0.70710677, %v8441_v56  ;;  %7379 = verf.f32 %v1560_v3  ;;  %v8449_v28 = vadd.f32 %v7007_v1, %v8282_v34 }
 0x1fa   : > { %v1482_v14 = vpop.f32.mrf.mxu1  ;;  %v7368_v29 = vpop.eup %7367  ;;  %7038 = vmatmul.mubr.msk.f32.gmra.mxu0 %vm1669_vm2, %v1646_v22  ;;  %v1648_v17 = vmul.f32 %v1616_v20, %v1520_v54  ;;  %v1527_v42 = vmul.f32 0.5, %v8441_v56 }
 0x1fb   : > { %v1647_v15 = vmul.f32 %v1615_v24, %v1519_v23  ;;  %7381 = verf.f32 %v1559_v25  ;;  %v1483_v9 = vadd.f32 %v8282_v34, %v1482_v14  ;;  %v1562_v12 = vmul.f32 0.70710677, %v8449_v28  ;;  %v2695_v24 = vld [vmem:[%s10899_s9] sm:$0xf]  ;;  %v2088_v25 = vpop.permute.xlu0 %2087 }
 0x1fc   : > { %v7370_v21 = vpop.eup %7369  ;;  %v7010_v36 = vpop.f32.mrf.mxu1  ;;  %v1618_v26 = vadd.f32 1.0, %v7368_v29  ;;  %v1530_v13 = vmul.f32 0.5, %v8449_v28  ;;  %7061 = vmatprep.subr.msk.mxu1 %vm2800_vm3, %v2695_v24  ;;  %v8488_v14 = vld [vmem:[%s10898_s8] ss:$0 sm:$0xff] }
 0x1fd   : > { %v1617_v37 = vadd.f32 1.0, %v7370_v21  ;;  %v1561_v30 = vmul.f32 0.70710677, %v1483_v9  ;;  %v1498_v38 = vadd.f32 %v7010_v36, %v8282_v34  ;;  %7040 = vmatprep.mubr.msk.f32.mxu0 %vm1669_vm2, %v1647_v15  ;;  %7383 = verf.f32 %v1562_v12  ;;  %7062 = vmatpush3.msk.msra.mxu1 %vm2800_vm3, %v2695_v24  ;;  %v2092_v28 = vpop.permute.xlu1 %2091 }
 0x1fe   : > { %v7372_v40 = vpop.eup %7371  ;;  %v1492_v41 = vpop.f32.mrf.mxu1  ;;  %7041 = vmatmul.mubr.msk.f32.gmra.mxu0 %vm1669_vm2, %v1648_v17  ;;  %v1650_v48 = vmul.f32 %v1618_v26, %v1522_v44  ;;  %v1529_v10 = vmul.f32 0.5, %v1483_v9 }
 0x1ff   : > { %v1649_v19 = vmul.f32 %v1617_v37, %v1521_v5  ;;  %7385 = verf.f32 %v1561_v30  ;;  %v1564_v33 = vmul.f32 0.70710677, %v1498_v38  ;;  %v1493_v47 = vadd.f32 %v8282_v34, %v1492_v41  ;;  %v8483_v54 = vpop.permute.xlu0 %2089 }
 0x200   : > { %v7374_v6 = vpop.eup %7373  ;;  %v1620_v35 = vadd.f32 1.0, %v7372_v40  ;;  %v1532_v1 = vmul.f32 0.5, %v1498_v38 }
 0x201   : > { %7043 = vmatprep.mubr.msk.f32.mxu0 %vm1669_vm2, %v1649_v19  ;;  %v1619_v51 = vadd.f32 1.0, %v7374_v6  ;;  %7387 = verf.f32 %v1564_v33  ;;  %v1563_v52 = vmul.f32 0.70710677, %v1493_v47  ;;  %v1531_v11 = vmul.f32 0.5, %v1493_v47  ;;  %v8492_v9 = vpop.permute.xlu1 %2093 }
 0x202   : > { %v7376_v31 = vpop.eup %7375  ;;  %7044 = vmatmul.mubr.msk.f32.gmra.mxu0 %vm1669_vm2, %v1650_v48  ;;  %v1652_v32 = vmul.f32 %v1620_v35, %v1524_v7 }
 0x203   : > { %v1651_v46 = vmul.f32 %v1619_v51, %v1523_v50  ;;  %7389 = verf.f32 %v1563_v52  ;;  %v1622_v34 = vadd.f32 1.0, %v7376_v31  ;;  %v8490_v29 = vpop.permute.xlu0 %2095 }
 0x204   : > { %v7378_v45 = vpop.eup %7377 }
 0x205   : > { %v1621_v57 = vadd.f32 1.0, %v7378_v45  ;;  %7046 = vmatprep.mubr.msk.f32.mxu0 %vm1669_vm2, %v1651_v46  ;;  %v1654_v43 = vmul.f32 %v1622_v34, %v1526_v49  ;;  %v8507_v40 = vpop.permute.xlu1 %2097 }
 0x206   : > { %v7380_v58 = vpop.eup %7379  ;;  %7047 = vmatmul.mubr.msk.f32.gmra.mxu0 %vm1669_vm2, %v1652_v32 }
 0x207   : > { %v1653_v60 = vmul.f32 %v1621_v57, %v1525_v27  ;;  %v1624_v2 = vadd.f32 1.0, %v7380_v58  ;;  %v8500_v36 = vpop.permute.xlu0 %2099 }
 0x208   : > { %v7382_v63 = vpop.eup %7381 }
 0x209   : > { %v1623_v4 = vadd.f32 1.0, %v7382_v63  ;;  %7049 = vmatprep.mubr.msk.f32.mxu0 %vm1669_vm2, %v1653_v60  ;;  %v1656_v8 = vmul.f32 %v1624_v2, %v1528_v0  ;;  %v8522_v50 = vpop.permute.xlu1 %2101 }
 0x20a   : > { %v7384_v53 = vpop.eup %7383  ;;  %7050 = vmatmul.mubr.msk.f32.gmra.mxu0 %vm1669_vm2, %v1654_v43 }
 0x20b   : > { %v1655_v59 = vmul.f32 %v1623_v4, %v1527_v42  ;;  %v1626_v55 = vadd.f32 1.0, %v7384_v53  ;;  %v8517_v48 = vpop.permute.xlu0 %2103 }
 0x20c   : > { %v7386_v61 = vpop.eup %7385 }
 0x20d   : > { %v1625_v39 = vadd.f32 1.0, %v7386_v61  ;;  %7052 = vmatprep.mubr.msk.f32.mxu0 %vm1669_vm2, %v1655_v59  ;;  %v1658_v18 = vmul.f32 %v1626_v55, %v1530_v13  ;;  %v8539_v49 = vpop.permute.xlu1 %2105 }
 0x20e   : > { %v7388_v62 = vpop.eup %7387  ;;  %7053 = vmatmul.mubr.msk.f32.gmra.mxu0 %vm1669_vm2, %v1656_v8 }
 0x20f   : > { %v1657_v56 = vmul.f32 %v1625_v39, %v1529_v10  ;;  %v1628_v20 = vadd.f32 1.0, %v7388_v62  ;;  %v8532_v32 = vpop.permute.xlu0 %2107 }
 0x210   : > { %v7390_v16 = vpop.eup %7389 }
 0x211   : > { %7055 = vmatprep.mubr.msk.f32.mxu0 %vm1669_vm2, %v1657_v56  ;;  %v1627_v3 = vadd.f32 1.0, %v7390_v16  ;;  %v1660_v23 = vmul.f32 %v1628_v20, %v1532_v1  ;;  %v8555_v39 = vpop.permute.xlu1 %2109 }
 0x212   : > { %7056 = vmatmul.mubr.msk.f32.gmra.mxu0 %vm1669_vm2, %v1658_v18 }
 0x213   : > { %v1659_v22 = vmul.f32 %v1627_v3, %v1531_v11  ;;  %v8549_v61 = vpop.permute.xlu0 %2111 }
 0x215   : > { %7058 = vmatprep.mubr.msk.f32.mxu0 %vm1669_vm2, %v1659_v22 }
 0x216   : > { %7059 = vmatmul.mubr.msk.f32.gmra.mxu0 %vm1669_vm2, %v1660_v23 }
 0x217   : > { %v8568_v23 = vpop.permute.xlu0 %2115 }
 0x299   : > { %v7015_v15 = vpop.f32.mrf.mxu0 }
 0x29a   : > { %v8495_v21 = vadd.f32 %v7015_v15, %v8488_v14 }
 0x29b   : > { %v1832_v17 = vpop.f32.mrf.mxu0 }
 0x29c   : > { %11156 = vst [vmem:[#allocation8_spill] sm:$0xff] %v8495_v21  ;;  %v8498_v5 = vadd.f32 %v8488_v14, %v1832_v17  ;;  %v1993_v26 = vmul.f32 1.442695, %v8495_v21 }
 0x29d   : > { %v7018_v12 = vpop.f32.mrf.mxu0 }
 0x29e   : > { %11157 = vst [vmem:[#allocation9_spill] sm:$0xff] %v8498_v5  ;;  %v1991_v37 = vmul.f32 1.442695, %v8498_v5  ;;  %v8505_v30 = vadd.f32 %v7018_v12, %v8488_v14 }
 0x29f   : > { %v1842_v38 = vpop.f32.mrf.mxu0 }
 0x2a0   : > { %11158 = vst [vmem:[#allocation10_spill] sm:$0xff] %v8505_v30  ;;  %7391 = vpow2.f32 %v1991_v37  ;;  %v8510_v41 = vadd.f32 %v8488_v14, %v1842_v38  ;;  %v1997_v19 = vmul.f32 1.442695, %v8505_v30 }
 0x2a1   : > { %v7021_v44 = vpop.f32.mrf.mxu0  ;;  %7393 = vpow2.f32 %v1993_v26  ;;  %v8577_v26 = vpop.permute.xlu1 %2113 }
 0x2a2   : > { %11159 = vst [vmem:[#allocation11_spill] sm:$0xff] %v8510_v41  ;;  %v1995_v33 = vmul.f32 1.442695, %v8510_v41  ;;  %v8515_v47 = vadd.f32 %v7021_v44, %v8488_v14 }
 0x2a3   : > { %v1852_v6 = vpop.f32.mrf.mxu0 }
 0x2a4   : > { %7395 = vpow2.f32 %v1995_v33  ;;  %v8520_v35 = vadd.f32 %v8488_v14, %v1852_v6  ;;  %v2001_v51 = vmul.f32 1.442695, %v8515_v47 }
 0x2a5   : > { %v7024_v31 = vpop.f32.mrf.mxu0  ;;  %7397 = vpow2.f32 %v1997_v19 }
 0x2a6   : > { %11160 = vst [vmem:[#allocation12_spill] sm:$0xff] %v8520_v35  ;;  %v1999_v52 = vmul.f32 1.442695, %v8520_v35  ;;  %v8527_v7 = vadd.f32 %v7024_v31, %v8488_v14 }
 0x2a7   : > { %v1862_v45 = vpop.f32.mrf.mxu0 }
 0x2a8   : > { %7399 = vpow2.f32 %v1999_v52  ;;  %v8530_v46 = vadd.f32 %v8488_v14, %v1862_v45  ;;  %v2005_v34 = vmul.f32 1.442695, %v8527_v7  ;;  %v8591_v52 = vpop.permute.xlu0 %2119 }
 0x2a9   : > { %7401 = vpow2.f32 %v2001_v51  ;;  %v7027_v57 = vpop.f32.mrf.mxu0 }
 0x2aa   : > { %v2003_v27 = vmul.f32 1.442695, %v8530_v46  ;;  %v8537_v58 = vadd.f32 %v7027_v57, %v8488_v14 }
 0x2ab   : > { %v1872_v60 = vpop.f32.mrf.mxu0 }
 0x2ac   : > { %7403 = vpow2.f32 %v2003_v27  ;;  %v8542_v43 = vadd.f32 %v8488_v14, %v1872_v60  ;;  %v2009_v42 = vmul.f32 1.442695, %v8537_v58 }
 0x2ad   : > { %v7392_v63 = vpop.eup %7391  ;;  %7405 = vpow2.f32 %v2005_v34 }
 0x2ae   : > { %v2183_v2 = vmul.f32 %v7392_v63, %v2088_v25  ;;  %v7030_v4 = vpop.f32.mrf.mxu0  ;;  %v7394_v53 = vpop.eup %7393  ;;  %v2007_v0 = vmul.f32 1.442695, %v8542_v43 }
 0x2af   : > { %v8547_v59 = vadd.f32 %v7030_v4, %v8488_v14  ;;  %v2184_v13 = vmul.f32 %v7394_v53, %v8483_v54 }
 0x2b0   : > { %v1882_v8 = vpop.f32.mrf.mxu0  ;;  %2247 = vrot.lane.b32.xlu1 %v2183_v2, %s10953_s19  ;;  %7407 = vpow2.f32 %v2007_v0 }
 0x2b1   : > { %v7396_v55 = vpop.eup %7395  ;;  %v8553_v10 = vadd.f32 %v8488_v14, %v1882_v8  ;;  %7409 = vpow2.f32 %v2009_v42  ;;  %v2013_v56 = vmul.f32 1.442695, %v8547_v59 }
 0x2b2   : > { %v2185_v62 = vmul.f32 %v7396_v55, %v2092_v28  ;;  %v7033_v16 = vpop.f32.mrf.mxu0  ;;  %v7398_v18 = vpop.eup %7397 }
 0x2b3   : > { %v2011_v20 = vmul.f32 1.442695, %v8553_v10  ;;  %v8561_v11 = vadd.f32 %v7033_v16, %v8488_v14  ;;  %v2186_v24 = vmul.f32 %v7398_v18, %v8492_v9 }
 0x2b4   : > { %v1892_v3 = vpop.f32.mrf.mxu0  ;;  %2251 = vrot.lane.b32.xlu0 %v2185_v62, %s10953_s19  ;;  %2249 = vrot.lane.b32.xlu1 %v2184_v13, %s10953_s19 }
 0x2b5   : > { %v7400_v1 = vpop.eup %7399  ;;  %7411 = vpow2.f32 %v2011_v20  ;;  %v8566_v22 = vadd.f32 %v8488_v14, %v1892_v3  ;;  %v2017_v54 = vmul.f32 1.442695, %v8561_v11 }
 0x2b6   : > { %7413 = vpow2.f32 %v2013_v56  ;;  %v2187_v25 = vmul.f32 %v7400_v1, %v8490_v29  ;;  %v7036_v28 = vpop.f32.mrf.mxu0  ;;  %v7402_v15 = vpop.eup %7401 }
 0x2b7   : > { %v2015_v17 = vmul.f32 1.442695, %v8566_v22  ;;  %v8575_v12 = vadd.f32 %v7036_v28, %v8488_v14  ;;  %v2188_v9 = vmul.f32 %v7402_v15, %v8507_v40 }
 0x2b8   : > { %v1902_v37 = vpop.f32.mrf.mxu0  ;;  %2255 = vrot.lane.b32.xlu0 %v2187_v25, %s10953_s19  ;;  %2253 = vrot.lane.b32.xlu1 %v2186_v24, %s10953_s19 }
 0x2b9   : > { %v7404_v38 = vpop.eup %7403  ;;  %7415 = vpow2.f32 %v2015_v17  ;;  %v8582_v29 = vadd.f32 %v8488_v14, %v1902_v37  ;;  %v2021_v19 = vmul.f32 1.442695, %v8575_v12 }
 0x2ba   : > { %7417 = vpow2.f32 %v2017_v54  ;;  %v2189_v44 = vmul.f32 %v7404_v38, %v8500_v36  ;;  %v7039_v33 = vpop.f32.mrf.mxu0  ;;  %v7406_v6 = vpop.eup %7405 }
 0x2bb   : > { %v2019_v31 = vmul.f32 1.442695, %v8582_v29  ;;  %v8589_v51 = vadd.f32 %v7039_v33, %v8488_v14  ;;  %v8598_v36 = vpop.permute.xlu1 %2117  ;;  %v2190_v27 = vmul.f32 %v7406_v6, %v8522_v50  ;;  %v8612_v50 = vpop.permute.xlu0 %2123 }
 0x2bc   : > { %v1912_v45 = vpop.f32.mrf.mxu0  ;;  %2259 = vrot.lane.b32.xlu0 %v2189_v44, %s10953_s19  ;;  %2257 = vrot.lane.b32.xlu1 %v2188_v9, %s10953_s19 }
 0x2bd   : > { %11161 = vst [vmem:[#allocation13_spill] sm:$0xff] %v8589_v51  ;;  %7419 = vpow2.f32 %v2019_v31  ;;  %v8596_v40 = vadd.f32 %v8488_v14, %v1912_v45  ;;  %v7408_v34 = vpop.eup %7407  ;;  %v2025_v57 = vmul.f32 1.442695, %v8589_v51 }
 0x2be   : > { %7421 = vpow2.f32 %v2021_v19  ;;  %v7042_v60 = vpop.f32.mrf.mxu0  ;;  %v7410_v63 = vpop.eup %7409  ;;  %v2191_v2 = vmul.f32 %v7408_v34, %v8517_v48 }
 0x2bf   : > { %11162 = vst [vmem:[#allocation14_spill] sm:$0xff] %v8596_v40  ;;  %v2023_v42 = vmul.f32 1.442695, %v8596_v40  ;;  %v8605_v4 = vadd.f32 %v7042_v60, %v8488_v14  ;;  %v2192_v48 = vmul.f32 %v7410_v63, %v8539_v49  ;;  %v2122_v20 = vpop.permute.xlu1 %2121  ;;  %v2128_v37 = vpop.permute.xlu0 %2127 }
 0x2c0   : > { %v1922_v53 = vpop.f32.mrf.mxu0  ;;  %2261 = vrot.lane.b32.xlu1 %v2190_v27, %s10953_s19  ;;  %2263 = vrot.lane.b32.xlu0 %v2191_v2, %s10953_s19 }
 0x2c1   : > { %11163 = vst [vmem:[#allocation15_spill] sm:$0xff] %v8605_v4  ;;  %7423 = vpow2.f32 %v2023_v42  ;;  %v8609_v0 = vadd.f32 %v8488_v14, %v1922_v53  ;;  %v2029_v55 = vmul.f32 1.442695, %v8605_v4 }
 0x2c2   : > { %v7412_v8 = vpop.eup %7411  ;;  %7425 = vpow2.f32 %v2025_v57  ;;  %v7045_v62 = vpop.f32.mrf.mxu0 }
 0x2c3   : > { %11164 = vst [vmem:[#allocation16_spill] sm:$0xff] %v8609_v0  ;;  %v7414_v13 = vpop.eup %7413  ;;  %v2193_v56 = vmul.f32 %v7412_v8, %v8532_v32  ;;  %v2027_v16 = vmul.f32 1.442695, %v8609_v0  ;;  %v8619_v18 = vadd.f32 %v7045_v62, %v8488_v14 }
 0x2c4   : > { %v1932_v3 = vpop.f32.mrf.mxu0  ;;  %2265 = vrot.lane.b32.xlu1 %v2192_v48, %s10953_s19  ;;  %v2194_v24 = vmul.f32 %v7414_v13, %v8555_v39  ;;  %v2126_v39 = vpop.permute.xlu1 %2125 }
 0x2c5   : > { %7427 = vpow2.f32 %v2027_v16  ;;  %v8623_v1 = vadd.f32 %v8488_v14, %v1932_v3  ;;  %2267 = vrot.lane.b32.xlu0 %v2193_v56, %s10953_s19  ;;  %v2033_v32 = vmul.f32 1.442695, %v8619_v18 }
 0x2c6   : > { %v7416_v49 = vpop.eup %7415  ;;  %7429 = vpow2.f32 %v2029_v55  ;;  %v7048_v25 = vpop.f32.mrf.mxu0 }
 0x2c7   : > { %11165 = vst [vmem:[#allocation17_spill] sm:$0xff] %v8623_v1  ;;  %v7418_v54 = vpop.eup %7417  ;;  %v2195_v28 = vmul.f32 %v7416_v49, %v8549_v61  ;;  %v2031_v15 = vmul.f32 1.442695, %v8623_v1  ;;  %v8631_v17 = vadd.f32 %v7048_v25, %v8488_v14 }
 0x2c8   : > { %v1942_v38 = vpop.f32.mrf.mxu0  ;;  %2269 = vrot.lane.b32.xlu1 %v2194_v24, %s10953_s19  ;;  %v2196_v61 = vmul.f32 %v7418_v54, %v8577_v26  ;;  %v2132_v26 = vpop.permute.xlu0 %2131 }
 0x2c9   : > { %7431 = vpow2.f32 %v2031_v15  ;;  %v8635_v9 = vadd.f32 %v8488_v14, %v1942_v38  ;;  %2271 = vrot.lane.b32.xlu0 %v2195_v28, %s10953_s19  ;;  %v2037_v19 = vmul.f32 1.442695, %v8631_v17  ;;  %v2130_v55 = vpop.permute.xlu1 %2129 }
 0x2ca   : > { %v7420_v44 = vpop.eup %7419  ;;  %7433 = vpow2.f32 %v2033_v32  ;;  %v7051_v33 = vpop.f32.mrf.mxu0 }
 0x2cb   : > { %v7422_v6 = vpop.eup %7421  ;;  %v2197_v31 = vmul.f32 %v7420_v44, %v8568_v23  ;;  %v2035_v45 = vmul.f32 1.442695, %v8635_v9  ;;  %v8643_v34 = vadd.f32 %v7051_v33, %v8488_v14 }
 0x2cc   : > { %v1952_v27 = vpop.f32.mrf.mxu0  ;;  %2273 = vrot.lane.b32.xlu1 %v2196_v61, %s10953_s19  ;;  %v2198_v63 = vmul.f32 %v7422_v6, %v8598_v36  ;;  %v2136_v25 = vpop.permute.xlu0 %2135 }
 0x2cd   : > { %7435 = vpow2.f32 %v2035_v45  ;;  %v8647_v57 = vadd.f32 %v8488_v14, %v1952_v27  ;;  %2275 = vrot.lane.b32.xlu0 %v2197_v31, %s10953_s19  ;;  %v2041_v23 = vmul.f32 1.442695, %v8643_v34 }
 0x2ce   : > { %v7424_v60 = vpop.eup %7423  ;;  %7437 = vpow2.f32 %v2037_v19  ;;  %v7054_v2 = vpop.f32.mrf.mxu0 }
 0x2cf   : > { %v7426_v42 = vpop.eup %7425  ;;  %v2199_v53 = vmul.f32 %v7424_v60, %v8591_v52  ;;  %v2039_v8 = vmul.f32 1.442695, %v8647_v57  ;;  %v8655_v48 = vadd.f32 %v7054_v2, %v8488_v14 }
 0x2d0   : > { %v1962_v62 = vpop.f32.mrf.mxu0  ;;  %2277 = vrot.lane.b32.xlu1 %v2198_v63, %s10953_s19  ;;  %v2200_v56 = vmul.f32 %v7426_v42, %v2122_v20  ;;  %v2134_v20 = vpop.permute.xlu1 %2133 }
 0x2d1   : > { %7439 = vpow2.f32 %v2039_v8  ;;  %v8659_v13 = vadd.f32 %v8488_v14, %v1962_v62  ;;  %2279 = vrot.lane.b32.xlu0 %v2199_v53, %s10953_s19  ;;  %v2045_v52 = vmul.f32 1.442695, %v8655_v48 }
 0x2d2   : > { %v7428_v36 = vpop.eup %7427  ;;  %7441 = vpow2.f32 %v2041_v23  ;;  %v7057_v16 = vpop.f32.mrf.mxu0 }
 0x2d3   : > { %v7430_v3 = vpop.eup %7429  ;;  %v2201_v49 = vmul.f32 %v7428_v36, %v8612_v50  ;;  %v2043_v24 = vmul.f32 1.442695, %v8659_v13  ;;  %v8666_v32 = vadd.f32 %v7057_v16, %v8488_v14 }
 0x2d4   : > { %v1972_v54 = vpop.f32.mrf.mxu0  ;;  %2281 = vrot.lane.b32.xlu1 %v2200_v56, %s10953_s19  ;;  %v2202_v38 = vmul.f32 %v7430_v3, %v2126_v39  ;;  %v2140_v39 = vpop.permute.xlu0 %2139 }
 0x2d5   : > { %7443 = vpow2.f32 %v2043_v24  ;;  %v8670_v28 = vadd.f32 %v8488_v14, %v1972_v54  ;;  %2283 = vrot.lane.b32.xlu0 %v2201_v49, %s10953_s19  ;;  %v2049_v50 = vmul.f32 1.442695, %v8666_v32  ;;  %v2138_v42 = vpop.permute.xlu1 %2137 }
 0x2d6   : > { %v7432_v15 = vpop.eup %7431  ;;  %7445 = vpow2.f32 %v2045_v52  ;;  %v7060_v44 = vpop.f32.mrf.mxu0 }
 0x2d7   : > { %v7434_v61 = vpop.eup %7433  ;;  %v2203_v19 = vmul.f32 %v7432_v15, %v2128_v37  ;;  %v2047_v33 = vmul.f32 1.442695, %v8670_v28  ;;  %v8676_v6 = vadd.f32 %v7060_v44, %v8488_v14 }
 0x2d8   : > { %v1982_v31 = vpop.f32.mrf.mxu0  ;;  %2285 = vrot.lane.b32.xlu1 %v2202_v38, %s10953_s19  ;;  %v2204_v60 = vmul.f32 %v7434_v61, %v2130_v55  ;;  %v2144_v36 = vpop.permute.xlu0 %2143 }
 0x2d9   : > { %7447 = vpow2.f32 %v2047_v33  ;;  %v8680_v45 = vadd.f32 %v8488_v14, %v1982_v31  ;;  %2287 = vrot.lane.b32.xlu0 %v2203_v19, %s10953_s19  ;;  %v2053_v37 = vmul.f32 1.442695, %v8676_v6  ;;  %v2142_v55 = vpop.permute.xlu1 %2141  ;;  %v3189_v19 = vld [vmem:[%s10901_s11] sm:$0xff] }
 0x2da   : > { %v7436_v27 = vpop.eup %7435  ;;  %7449 = vpow2.f32 %v2049_v50  ;;  %7111 = vmatprep.subr.mxu0 %v3189_v19  ;;  %v7711_v31 = vld [vmem:[%s8237_s18] sm:$0xff] }
 0x2db   : > { %v7438_v63 = vpop.eup %7437  ;;  %v2205_v23 = vmul.f32 %v7436_v27, %v2132_v26  ;;  %v2051_v2 = vmul.f32 1.442695, %v8680_v45  ;;  %7112 = vmatpush3.msra.mxu0 %v3189_v19 }
 0x2dc   : > { %2289 = vrot.lane.b32.xlu1 %v2204_v60, %s10953_s19  ;;  %v2206_v53 = vmul.f32 %v7438_v63, %v2134_v20  ;;  %v2148_v3 = vpop.permute.xlu0 %2147 }
 0x2dd   : > { %7451 = vpow2.f32 %v2051_v2  ;;  %2291 = vrot.lane.b32.xlu0 %v2205_v23, %s10953_s19  ;;  %v7713_v2 = vld [vmem:[%s8237_s18 + $0x8] sm:$0xff] }
 0x2de   : > { %v7440_v14 = vpop.eup %7439  ;;  %7453 = vpow2.f32 %v2053_v37  ;;  %v7712_v37 = vld [vmem:[%s8237_s18 + $0x10] sm:$0xff] }
 0x2df   : > { %v7442_v8 = vpop.eup %7441  ;;  %v2207_v62 = vmul.f32 %v7440_v14, %v2136_v25  ;;  %v2146_v25 = vpop.permute.xlu1 %2145  ;;  %v2441_v63 = vmul.f32 0.5, %v7712_v37 }
 0x2e0   : > { %2293 = vrot.lane.b32.xlu1 %v2206_v53, %s10953_s19  ;;  %v2208_v56 = vmul.f32 %v7442_v8, %v2138_v42  ;;  %v2150_v61 = vpop.permute.xlu0 %2149  ;;  %v2440_v42 = vmul.f32 0.5, %v7713_v2 }
 0x2e1   : > { %2295 = vrot.lane.b32.xlu0 %v2207_v62, %s10953_s19 }
 0x2e2   : > { %v7444_v26 = vpop.eup %7443 }
 0x2e3   : > { %v7446_v52 = vpop.eup %7445  ;;  %v2209_v16 = vmul.f32 %v7444_v26, %v2140_v39  ;;  %v2439_v39 = vmul.f32 0.5, %v7711_v31  ;;  %v8718_v26 = vmul.f32 %v7712_v37, %v2441_v63 }
 0x2e4   : > { %2297 = vrot.lane.b32.xlu1 %v2208_v56, %s10953_s19  ;;  %v2210_v24 = vmul.f32 %v7446_v52, %v2142_v55  ;;  %v7714_v56 = vld [vmem:[%s8237_s18 + $0x18] sm:$0xff] }
 0x2e5   : > { %2299 = vrot.lane.b32.xlu0 %v2209_v16, %s10953_s19  ;;  %v8710_v23 = vmul.f32 %v7711_v31, %v2439_v39  ;;  %11168 = vst [vmem:[#allocation20_spill] sm:$0xff] %v8718_v26  ;;  %v2442_v52 = vmul.f32 0.5, %v7714_v56  ;;  %v7715_v16 = vld [vmem:[%s8237_s18 + $0x20] sm:$0xff]  ;;  %v7716_v31 = vld [vmem:[%s8237_s18 + $0x28] sm:$0xff] }
 0x2e6   : > { %v7448_v49 = vpop.eup %7447  ;;  %v2444_v39 = vmul.f32 0.5, %v7716_v31 }
 0x2e7   : > { %v7450_v54 = vpop.eup %7449  ;;  %v2211_v20 = vmul.f32 %v7448_v49, %v2144_v36  ;;  %11166 = vst [vmem:[#allocation18_spill] sm:$0xff] %v8710_v23  ;;  %v8722_v49 = vmul.f32 %v7713_v2, %v2440_v42  ;;  %v8734_v19 = vmul.f32 %v7714_v56, %v2442_v52 }
 0x2e8   : > { %2301 = vrot.lane.b32.xlu1 %v2210_v24, %s10953_s19  ;;  %v2212_v38 = vmul.f32 %v7450_v54, %v2146_v25  ;;  %v8752_v52 = vmul.f32 %v7716_v31, %v2444_v39 }
 0x2e9   : > { %2303 = vrot.lane.b32.xlu0 %v2211_v20, %s10953_s19  ;;  %11169 = vst [vmem:[#allocation21_spill] sm:$0xff] %v8722_v49  ;;  %11172 = vst [vmem:[#allocation24_spill] sm:$0xff] %v8734_v19 }
 0x2ea   : > { %v7452_v15 = vpop.eup %7451  ;;  %11176 = vst [vmem:[#allocation28_spill] sm:$0xff] %v8752_v52 }
 0x2eb   : > { %v7454_v50 = vpop.eup %7453  ;;  %v2213_v44 = vmul.f32 %v7452_v15, %v2148_v3  ;;  %v2443_v3 = vmul.f32 0.5, %v7715_v16 }
 0x2ec   : > { %2305 = vrot.lane.b32.xlu1 %v2212_v38, %s10953_s19  ;;  %v2214_v33 = vmul.f32 %v7454_v50, %v2150_v61 }
 0x2ed   : > { %2307 = vrot.lane.b32.xlu0 %v2213_v44, %s10953_s19 }
 0x2f0   : > { %2309 = vrot.lane.b32.xlu1 %v2214_v33, %s10953_s19  ;;  %v8736_v33 = vmul.f32 %v7715_v16, %v2443_v3  ;;  %v7718_v3 = vld [vmem:[%s8237_s18 + $0x38] sm:$0xff] }
 0x2f1   : > { %2629 = vrot.lane.b32.xlu0 %v8676_v6, %s10953_s19 }
 0x2f2   : > { %11173 = vst [vmem:[#allocation25_spill] sm:$0xff] %v8736_v33 }
 0x2f4   : > { %2597 = vrot.lane.b32.xlu1 %v8575_v12, %s10953_s19 }
 0x2f5   : > { %2627 = vrot.lane.b32.xlu0 %v8680_v45, %s10953_s19 }
 0x2f8   : > { %2595 = vrot.lane.b32.xlu1 %v8582_v29, %s10953_s19  ;;  %s11268_s19 = smov 124  }
 0x322   : > { %v2248_v27 = vpop.permute.xlu1 %2247 }
 0x323   : > { %v2343_v60 = vadd.f32 %v2248_v27, %v8498_v5  ;;  %v7717_v27 = vld [vmem:[%s8237_s18 + $0x30] sm:$0xff] }
 0x325   : > { %v2375_v14 = vmul.f32 0.5, %v2343_v60  ;;  %7063 = vmatprep.mubr.msk.f32.mxu1 %vm2703_vm4, %v2343_v60 }
 0x326   : > { %v2252_v53 = vpop.permute.xlu0 %2251  ;;  %v2250_v8 = vpop.permute.xlu1 %2249 }
 0x327   : > { %v2345_v62 = vadd.f32 %v2252_v53, %v8510_v41  ;;  %v2344_v36 = vadd.f32 %v2250_v8, %v8495_v21  ;;  %v8716_v55 = vmul.f32 %v2375_v14, %v2343_v60  ;;  %v2445_v60 = vmul.f32 0.5, %v7717_v27 }
 0x329   : > { %11167 = vst [vmem:[#allocation19_spill] sm:$0xff] %v8716_v55  ;;  %v2377_v24 = vmul.f32 0.5, %v2345_v62  ;;  %v2376_v54 = vmul.f32 0.5, %v2344_v36  ;;  %7064 = vmatmul.mubr.msk.f32.vlgmr.msra.gmra.mxu1 %vm2703_vm4, %v2344_v36  ;;  %v8754_v16 = vmul.f32 %v7717_v27, %v2445_v60 }
 0x32a   : > { %v2256_v25 = vpop.permute.xlu0 %2255  ;;  %7066 = vmatprep.mubr.msk.f32.mxu1 %vm2703_vm4, %v2345_v62  ;;  %v2254_v15 = vpop.permute.xlu1 %2253 }
 0x32b   : > { %v2347_v38 = vadd.f32 %v2256_v25, %v8520_v35  ;;  %v2346_v50 = vadd.f32 %v2254_v15, %v8505_v30  ;;  %v8730_v44 = vmul.f32 %v2377_v24, %v2345_v62  ;;  %v8732_v61 = vmul.f32 %v2376_v54, %v2344_v36  ;;  %11177 = vst [vmem:[#allocation29_spill] sm:$0xff] %v8754_v16 }
 0x32c   : > { %v2446_v24 = vmul.f32 0.5, %v7718_v3 }
 0x32d   : > { %11170 = vst [vmem:[#allocation22_spill] sm:$0xff] %v8730_v44  ;;  %11171 = vst [vmem:[#allocation23_spill] sm:$0xff] %v8732_v61  ;;  %v2379_v37 = vmul.f32 0.5, %v2347_v38  ;;  %v2378_v63 = vmul.f32 0.5, %v2346_v50  ;;  %7067 = vmatmul.mubr.msk.f32.gmra.mxu1 %vm2703_vm4, %v2346_v50 }
 0x32e   : > { %v2260_v14 = vpop.permute.xlu0 %2259  ;;  %7069 = vmatprep.mubr.msk.f32.mxu1 %vm2703_vm4, %v2347_v38  ;;  %v2258_v53 = vpop.permute.xlu1 %2257  ;;  %v8771_v42 = vmul.f32 %v7718_v3, %v2446_v24 }
 0x32f   : > { %v2349_v8 = vadd.f32 %v2260_v14, %v8530_v46  ;;  %v2348_v62 = vadd.f32 %v2258_v53, %v8515_v47  ;;  %v8748_v36 = vmul.f32 %v2379_v37, %v2347_v38  ;;  %v8750_v56 = vmul.f32 %v2378_v63, %v2346_v50  ;;  %v7719_v37 = vld [vmem:[%s8237_s18 + $0x40] sm:$0xff]  ;;  %v7720_v14 = vld [vmem:[%s8237_s18 + $0x48] sm:$0xff] }
 0x330   : > { %v2447_v50 = vmul.f32 0.5, %v7719_v37  ;;  %v2448_v53 = vmul.f32 0.5, %v7720_v14  ;;  %11180 = vst [vmem:[#allocation32_spill] sm:$0xff] %v8771_v42 }
 0x331   : > { %11174 = vst [vmem:[#allocation26_spill] sm:$0xff] %v8748_v36  ;;  %11175 = vst [vmem:[#allocation27_spill] sm:$0xff] %v8750_v56  ;;  %v2381_v54 = vmul.f32 0.5, %v2349_v8  ;;  %v2380_v25 = vmul.f32 0.5, %v2348_v62  ;;  %7070 = vmatmul.mubr.msk.f32.gmra.mxu1 %vm2703_vm4, %v2348_v62 }
 0x332   : > { %7072 = vmatprep.mubr.msk.f32.mxu1 %vm2703_vm4, %v2349_v8  ;;  %v2262_v31 = vpop.permute.xlu1 %2261  ;;  %v2264_v39 = vpop.permute.xlu0 %2263  ;;  %v8788_v55 = vmul.f32 %v7720_v14, %v2448_v53 }
 0x333   : > { %v2350_v27 = vadd.f32 %v2262_v31, %v8527_v7  ;;  %v8765_v60 = vmul.f32 %v2381_v54, %v2349_v8  ;;  %v8767_v63 = vmul.f32 %v2380_v25, %v2348_v62  ;;  %v2351_v20 = vadd.f32 %v2264_v39, %v8542_v43  ;;  %v7721_v62 = vld [vmem:[%s8237_s18 + $0x50] sm:$0xff] }
 0x334   : > { %v8778_v8 = vmul.f32 %v7719_v37, %v2447_v50  ;;  %v2449_v54 = vmul.f32 0.5, %v7721_v62  ;;  %11184 = vst [vmem:[#allocation36_spill] sm:$0xff] %v8788_v55  ;;  %v7722_v37 = vld [vmem:[%s8237_s18 + $0x58] sm:$0xff] }
 0x335   : > { %11178 = vst [vmem:[#allocation30_spill] sm:$0xff] %v8765_v60  ;;  %11179 = vst [vmem:[#allocation31_spill] sm:$0xff] %v8767_v63  ;;  %v2382_v2 = vmul.f32 0.5, %v2350_v27  ;;  %7073 = vmatmul.mubr.msk.f32.gmra.mxu1 %vm2703_vm4, %v2350_v27  ;;  %v2383_v25 = vmul.f32 0.5, %v2351_v20  ;;  %v2450_v50 = vmul.f32 0.5, %v7722_v37 }
 0x336   : > { %11181 = vst [vmem:[#allocation33_spill] sm:$0xff] %v8778_v8  ;;  %7075 = vmatprep.mubr.msk.f32.mxu1 %vm2703_vm4, %v2351_v20  ;;  %v2266_v3 = vpop.permute.xlu1 %2265  ;;  %v8794_v61 = vmul.f32 %v7721_v62, %v2449_v54  ;;  %v7724_v54 = vld [vmem:[%s8237_s18 + $0x68] sm:$0xff] }
 0x337   : > { %v2268_v24 = vpop.permute.xlu0 %2267  ;;  %v2352_v39 = vadd.f32 %v2266_v3, %v8537_v58  ;;  %v8783_v15 = vmul.f32 %v2382_v2, %v2350_v27  ;;  %v8786_v38 = vmul.f32 %v2383_v25, %v2351_v20  ;;  %v7723_v3 = vld [vmem:[%s8237_s18 + $0x60] sm:$0xff]  ;;  %v8806_v62 = vmul.f32 %v7722_v37, %v2450_v50 }
 0x338   : > { %v2353_v23 = vadd.f32 %v2268_v24, %v8553_v10  ;;  %11185 = vst [vmem:[#allocation37_spill] sm:$0xff] %v8794_v61  ;;  %v2451_v2 = vmul.f32 0.5, %v7723_v3  ;;  %v2452_v44 = vmul.f32 0.5, %v7724_v54 }
 0x339   : > { %11182 = vst [vmem:[#allocation34_spill] sm:$0xff] %v8783_v15  ;;  %11183 = vst [vmem:[#allocation35_spill] sm:$0xff] %v8786_v38  ;;  %v2384_v31 = vmul.f32 0.5, %v2352_v39  ;;  %7076 = vmatmul.mubr.msk.f32.gmra.mxu1 %vm2703_vm4, %v2352_v39 }
 0x33a   : > { %v2385_v27 = vmul.f32 0.5, %v2353_v23  ;;  %7078 = vmatprep.mubr.msk.f32.mxu1 %vm2703_vm4, %v2353_v23  ;;  %v2270_v20 = vpop.permute.xlu1 %2269  ;;  %11188 = vst [vmem:[#allocation40_spill] sm:$0xff] %v8806_v62  ;;  %v8812_v56 = vmul.f32 %v7723_v3, %v2451_v2  ;;  %v8824_v3 = vmul.f32 %v7724_v54, %v2452_v44  ;;  %v7726_v2 = vld [vmem:[%s8237_s18 + $0x78] sm:$0xff] }
 0x33b   : > { %v2272_v53 = vpop.permute.xlu0 %2271  ;;  %v2354_v25 = vadd.f32 %v2270_v20, %v8547_v59  ;;  %v8801_v24 = vmul.f32 %v2384_v31, %v2352_v39  ;;  %v7725_v20 = vld [vmem:[%s8237_s18 + $0x70] sm:$0xff]  ;;  %v2454_v36 = vmul.f32 0.5, %v7726_v2 }
 0x33c   : > { %v2355_v26 = vadd.f32 %v2272_v53, %v8566_v22  ;;  %v8804_v49 = vmul.f32 %v2385_v27, %v2353_v23  ;;  %11189 = vst [vmem:[#allocation41_spill] sm:$0xff] %v8812_v56  ;;  %v2453_v31 = vmul.f32 0.5, %v7725_v20  ;;  %11192 = vst [vmem:[#allocation44_spill] sm:$0xff] %v8824_v3 }
 0x33d   : > { %11186 = vst [vmem:[#allocation38_spill] sm:$0xff] %v8801_v24  ;;  %v2386_v19 = vmul.f32 0.5, %v2354_v25  ;;  %7079 = vmatmul.mubr.msk.f32.gmra.mxu1 %vm2703_vm4, %v2354_v25 }
 0x33e   : > { %11187 = vst [vmem:[#allocation39_spill] sm:$0xff] %v8804_v49  ;;  %v2387_v39 = vmul.f32 0.5, %v2355_v26  ;;  %7081 = vmatprep.mubr.msk.f32.mxu1 %vm2703_vm4, %v2355_v26  ;;  %v2274_v23 = vpop.permute.xlu1 %2273  ;;  %v8830_v63 = vmul.f32 %v7725_v20, %v2453_v31  ;;  %v8842_v20 = vmul.f32 %v7726_v2, %v2454_v36  ;;  %v7728_v31 = vld [vmem:[%s8237_s18 + $0x88] sm:$0xff] }
 0x33f   : > { %v2276_v50 = vpop.permute.xlu0 %2275  ;;  %v2356_v27 = vadd.f32 %v2274_v23, %v8561_v11  ;;  %v8819_v53 = vmul.f32 %v2386_v19, %v2354_v25  ;;  %v7727_v23 = vld [vmem:[%s8237_s18 + $0x80] sm:$0xff]  ;;  %v2456_v16 = vmul.f32 0.5, %v7728_v31 }
 0x340   : > { %v2357_v33 = vadd.f32 %v2276_v50, %v8582_v29  ;;  %v8822_v14 = vmul.f32 %v2387_v39, %v2355_v26  ;;  %11193 = vst [vmem:[#allocation45_spill] sm:$0xff] %v8830_v63  ;;  %v2455_v19 = vmul.f32 0.5, %v7727_v23  ;;  %11196 = vst [vmem:[#allocation48_spill] sm:$0xff] %v8842_v20 }
 0x341   : > { %11190 = vst [vmem:[#allocation42_spill] sm:$0xff] %v8819_v53  ;;  %v2388_v52 = vmul.f32 0.5, %v2356_v27  ;;  %7082 = vmatmul.mubr.msk.f32.gmra.mxu1 %vm2703_vm4, %v2356_v27 }
 0x342   : > { %11191 = vst [vmem:[#allocation43_spill] sm:$0xff] %v8822_v14  ;;  %v2389_v25 = vmul.f32 0.5, %v2357_v33  ;;  %7084 = vmatprep.mubr.msk.f32.mxu1 %vm2703_vm4, %v2357_v33  ;;  %v2278_v29 = vpop.permute.xlu1 %2277  ;;  %v8848_v42 = vmul.f32 %v7727_v23, %v2455_v19  ;;  %v8860_v23 = vmul.f32 %v7728_v31, %v2456_v16  ;;  %v7730_v19 = vld [vmem:[%s8237_s18 + $0x98] sm:$0xff] }
 0x343   : > { %v2280_v44 = vpop.permute.xlu0 %2279  ;;  %v2358_v54 = vadd.f32 %v2278_v29, %v8575_v12  ;;  %v8837_v39 = vmul.f32 %v2388_v52, %v2356_v27  ;;  %v7729_v12 = vld [vmem:[%s8237_s18 + $0x90] sm:$0xff]  ;;  %v2458_v15 = vmul.f32 0.5, %v7730_v19 }
 0x344   : > { %v2359_v50 = vadd.f32 %v2280_v44, %v8596_v40  ;;  %v8840_v37 = vmul.f32 %v2389_v25, %v2357_v33  ;;  %11197 = vst [vmem:[#allocation49_spill] sm:$0xff] %v8848_v42  ;;  %v2457_v52 = vmul.f32 0.5, %v7729_v12  ;;  %11200 = vst [vmem:[#allocation52_spill] sm:$0xff] %v8860_v23 }
 0x345   : > { %11194 = vst [vmem:[#allocation46_spill] sm:$0xff] %v8837_v39  ;;  %v2390_v60 = vmul.f32 0.5, %v2358_v54  ;;  %7085 = vmatmul.mubr.msk.f32.gmra.mxu1 %vm2703_vm4, %v2358_v54 }
 0x346   : > { %11195 = vst [vmem:[#allocation47_spill] sm:$0xff] %v8840_v37  ;;  %v2391_v27 = vmul.f32 0.5, %v2359_v50  ;;  %7087 = vmatprep.mubr.msk.f32.mxu1 %vm2703_vm4, %v2359_v50  ;;  %v2282_v33 = vpop.permute.xlu1 %2281  ;;  %v8866_v38 = vmul.f32 %v7729_v12, %v2457_v52  ;;  %v8878_v12 = vmul.f32 %v7730_v19, %v2458_v15  ;;  %v7732_v52 = vld [vmem:[%s8237_s18 + $0xa8] sm:$0xff] }
 0x347   : > { %v2284_v2 = vpop.permute.xlu0 %2283  ;;  %v2360_v25 = vadd.f32 %v2282_v33, %v8589_v51  ;;  %v8855_v29 = vmul.f32 %v2390_v60, %v2358_v54  ;;  %v7731_v33 = vld [vmem:[%s8237_s18 + $0xa0] sm:$0xff]  ;;  %v2460_v24 = vmul.f32 0.5, %v7732_v52 }
 0x348   : > { %v2361_v44 = vadd.f32 %v2284_v2, %v8609_v0  ;;  %v8858_v26 = vmul.f32 %v2391_v27, %v2359_v50  ;;  %11201 = vst [vmem:[#allocation53_spill] sm:$0xff] %v8866_v38  ;;  %v2459_v60 = vmul.f32 0.5, %v7731_v33  ;;  %11204 = vst [vmem:[#allocation56_spill] sm:$0xff] %v8878_v12 }
 0x349   : > { %11198 = vst [vmem:[#allocation50_spill] sm:$0xff] %v8855_v29  ;;  %v2392_v8 = vmul.f32 0.5, %v2360_v25  ;;  %7088 = vmatmul.mubr.msk.f32.gmra.mxu1 %vm2703_vm4, %v2360_v25 }
 0x34a   : > { %11199 = vst [vmem:[#allocation51_spill] sm:$0xff] %v8858_v26  ;;  %v2393_v54 = vmul.f32 0.5, %v2361_v44  ;;  %7090 = vmatprep.mubr.msk.f32.mxu1 %vm2703_vm4, %v2361_v44  ;;  %v2286_v50 = vpop.permute.xlu1 %2285  ;;  %v8884_v42 = vmul.f32 %v7731_v33, %v2459_v60  ;;  %v8896_v33 = vmul.f32 %v7732_v52, %v2460_v24  ;;  %v7734_v60 = vld [vmem:[%s8237_s18 + $0xb8] sm:$0xff] }
 0x34b   : > { %v2288_v31 = vpop.permute.xlu0 %2287  ;;  %v2362_v27 = vadd.f32 %v2286_v50, %v8605_v4  ;;  %v8873_v2 = vmul.f32 %v2392_v8, %v2360_v25  ;;  %v7733_v50 = vld [vmem:[%s8237_s18 + $0xb0] sm:$0xff]  ;;  %v2462_v23 = vmul.f32 0.5, %v7734_v60 }
 0x34c   : > { %v2363_v55 = vadd.f32 %v2288_v31, %v8623_v1  ;;  %v8876_v36 = vmul.f32 %v2393_v54, %v2361_v44  ;;  %11205 = vst [vmem:[#allocation57_spill] sm:$0xff] %v8884_v42  ;;  %v2461_v8 = vmul.f32 0.5, %v7733_v50  ;;  %11208 = vst [vmem:[#allocation60_spill] sm:$0xff] %v8896_v33 }
 0x34d   : > { %11202 = vst [vmem:[#allocation54_spill] sm:$0xff] %v8873_v2  ;;  %v2394_v61 = vmul.f32 0.5, %v2362_v27  ;;  %7091 = vmatmul.mubr.msk.f32.gmra.mxu1 %vm2703_vm4, %v2362_v27 }
 0x34e   : > { %11203 = vst [vmem:[#allocation55_spill] sm:$0xff] %v8876_v36  ;;  %v2395_v25 = vmul.f32 0.5, %v2363_v55  ;;  %7093 = vmatprep.mubr.msk.f32.mxu1 %vm2703_vm4, %v2363_v55  ;;  %v2290_v44 = vpop.permute.xlu1 %2289  ;;  %v8902_v38 = vmul.f32 %v7733_v50, %v2461_v8  ;;  %v8914_v50 = vmul.f32 %v7734_v60, %v2462_v23  ;;  %v7736_v8 = vld [vmem:[%s8237_s18 + $0xc8] sm:$0xff] }
 0x34f   : > { %v2292_v19 = vpop.permute.xlu0 %2291  ;;  %v2364_v54 = vadd.f32 %v2290_v44, %v8619_v18  ;;  %v8891_v31 = vmul.f32 %v2394_v61, %v2362_v27  ;;  %v7735_v44 = vld [vmem:[%s8237_s18 + $0xc0] sm:$0xff]  ;;  %v2464_v12 = vmul.f32 0.5, %v7736_v8 }
 0x350   : > { %v2365_v26 = vadd.f32 %v2292_v19, %v8635_v9  ;;  %v8894_v16 = vmul.f32 %v2395_v25, %v2363_v55  ;;  %11209 = vst [vmem:[#allocation61_spill] sm:$0xff] %v8902_v38  ;;  %v2463_v61 = vmul.f32 0.5, %v7735_v44  ;;  %11212 = vst [vmem:[#allocation64_spill] sm:$0xff] %v8914_v50 }
 0x351   : > { %11206 = vst [vmem:[#allocation58_spill] sm:$0xff] %v8891_v31  ;;  %v2396_v2 = vmul.f32 0.5, %v2364_v54  ;;  %7094 = vmatmul.mubr.msk.f32.gmra.mxu1 %vm2703_vm4, %v2364_v54 }
 0x352   : > { %11207 = vst [vmem:[#allocation59_spill] sm:$0xff] %v8894_v16  ;;  %v2397_v27 = vmul.f32 0.5, %v2365_v26  ;;  %7096 = vmatprep.mubr.msk.f32.mxu1 %vm2703_vm4, %v2365_v26  ;;  %v2294_v55 = vpop.permute.xlu1 %2293  ;;  %v8920_v42 = vmul.f32 %v7735_v44, %v2463_v61  ;;  %v8932_v44 = vmul.f32 %v7736_v8, %v2464_v12  ;;  %v7738_v61 = vld [vmem:[%s8237_s18 + $0xd8] sm:$0xff] }
 0x353   : > { %v2296_v52 = vpop.permute.xlu0 %2295  ;;  %v2366_v25 = vadd.f32 %v2294_v55, %v8631_v17  ;;  %v8909_v19 = vmul.f32 %v2396_v2, %v2364_v54  ;;  %v7737_v55 = vld [vmem:[%s8237_s18 + $0xd0] sm:$0xff]  ;;  %v2466_v33 = vmul.f32 0.5, %v7738_v61 }
 0x354   : > { %v2367_v36 = vadd.f32 %v2296_v52, %v8647_v57  ;;  %v8912_v15 = vmul.f32 %v2397_v27, %v2365_v26  ;;  %11213 = vst [vmem:[#allocation65_spill] sm:$0xff] %v8920_v42  ;;  %v2465_v2 = vmul.f32 0.5, %v7737_v55  ;;  %11216 = vst [vmem:[#allocation68_spill] sm:$0xff] %v8932_v44 }
 0x355   : > { %11210 = vst [vmem:[#allocation62_spill] sm:$0xff] %v8909_v19  ;;  %v2398_v31 = vmul.f32 0.5, %v2366_v25  ;;  %7097 = vmatmul.mubr.msk.f32.gmra.mxu1 %vm2703_vm4, %v2366_v25 }
 0x356   : > { %11211 = vst [vmem:[#allocation63_spill] sm:$0xff] %v8912_v15  ;;  %v2399_v54 = vmul.f32 0.5, %v2367_v36  ;;  %7099 = vmatprep.mubr.msk.f32.mxu1 %vm2703_vm4, %v2367_v36  ;;  %v2298_v26 = vpop.permute.xlu1 %2297  ;;  %v8938_v38 = vmul.f32 %v7737_v55, %v2465_v2  ;;  %v8950_v55 = vmul.f32 %v7738_v61, %v2466_v33  ;;  %v7740_v2 = vld [vmem:[%s8237_s18 + $0xe8] sm:$0xff] }
 0x357   : > { %v2300_v60 = vpop.permute.xlu0 %2299  ;;  %v2368_v27 = vadd.f32 %v2298_v26, %v8643_v34  ;;  %v8927_v52 = vmul.f32 %v2398_v31, %v2366_v25  ;;  %v7739_v26 = vld [vmem:[%s8237_s18 + $0xe0] sm:$0xff]  ;;  %v2468_v50 = vmul.f32 0.5, %v7740_v2 }
 0x358   : > { %v2369_v16 = vadd.f32 %v2300_v60, %v8659_v13  ;;  %v8930_v24 = vmul.f32 %v2399_v54, %v2367_v36  ;;  %11217 = vst [vmem:[#allocation69_spill] sm:$0xff] %v8938_v38  ;;  %v2467_v31 = vmul.f32 0.5, %v7739_v26  ;;  %11220 = vst [vmem:[#allocation72_spill] sm:$0xff] %v8950_v55 }
 0x359   : > { %11214 = vst [vmem:[#allocation66_spill] sm:$0xff] %v8927_v52  ;;  %v2400_v19 = vmul.f32 0.5, %v2368_v27  ;;  %7100 = vmatmul.mubr.msk.f32.gmra.mxu1 %vm2703_vm4, %v2368_v27 }
 0x35a   : > { %11215 = vst [vmem:[#allocation67_spill] sm:$0xff] %v8930_v24  ;;  %v2401_v25 = vmul.f32 0.5, %v2369_v16  ;;  %7102 = vmatprep.mubr.msk.f32.mxu1 %vm2703_vm4, %v2369_v16  ;;  %v2302_v36 = vpop.permute.xlu1 %2301  ;;  %v8956_v42 = vmul.f32 %v7739_v26, %v2467_v31  ;;  %v8968_v26 = vmul.f32 %v7740_v2, %v2468_v50  ;;  %v7742_v31 = vld [vmem:[%s8237_s18 + $0xf8] sm:$0xff] }
 0x35b   : > { %v2304_v8 = vpop.permute.xlu0 %2303  ;;  %v2370_v54 = vadd.f32 %v2302_v36, %v8655_v48  ;;  %v8945_v60 = vmul.f32 %v2400_v19, %v2368_v27  ;;  %v7741_v36 = vld [vmem:[%s8237_s18 + $0xf0] sm:$0xff]  ;;  %v2470_v12 = vmul.f32 0.5, %v7742_v31 }
 0x35c   : > { %v2371_v15 = vadd.f32 %v2304_v8, %v8670_v28  ;;  %v8948_v23 = vmul.f32 %v2401_v25, %v2369_v16  ;;  %11221 = vst [vmem:[#allocation73_spill] sm:$0xff] %v8956_v42  ;;  %v2469_v19 = vmul.f32 0.5, %v7741_v36  ;;  %11224 = vst [vmem:[#allocation76_spill] sm:$0xff] %v8968_v26 }
 0x35d   : > { %11218 = vst [vmem:[#allocation70_spill] sm:$0xff] %v8945_v60  ;;  %v2402_v52 = vmul.f32 0.5, %v2370_v54  ;;  %7103 = vmatmul.mubr.msk.f32.gmra.mxu1 %vm2703_vm4, %v2370_v54  ;;  %v8984_v2 = vmul.f32 %v7742_v31, %v2470_v12  ;;  %v9007_v12 = vld [vmem:[%s10900_s10] ss:$0 sm:$0xff] }
 0x35e   : > { %11219 = vst [vmem:[#allocation71_spill] sm:$0xff] %v8948_v23  ;;  %v2403_v27 = vmul.f32 0.5, %v2371_v15  ;;  %7105 = vmatprep.mubr.msk.f32.mxu1 %vm2703_vm4, %v2371_v15  ;;  %v2306_v16 = vpop.permute.xlu1 %2305  ;;  %v8974_v33 = vmul.f32 %v7741_v36, %v2469_v19 }
 0x35f   : > { %v2308_v61 = vpop.permute.xlu0 %2307  ;;  %v2372_v25 = vadd.f32 %v2306_v16, %v8666_v32  ;;  %v8963_v8 = vmul.f32 %v2402_v52, %v2370_v54  ;;  %11228 = vst [vmem:[#allocation80_spill] sm:$0xff] %v8984_v2 }
 0x360   : > { %v2373_v24 = vadd.f32 %v2308_v61, %v8680_v45  ;;  %v8966_v49 = vmul.f32 %v2403_v27, %v2371_v15  ;;  %11225 = vst [vmem:[#allocation77_spill] sm:$0xff] %v8974_v33 }
 0x361   : > { %11222 = vst [vmem:[#allocation74_spill] sm:$0xff] %v8963_v8  ;;  %v2404_v44 = vmul.f32 0.5, %v2372_v25  ;;  %7106 = vmatmul.mubr.msk.f32.gmra.mxu1 %vm2703_vm4, %v2372_v25 }
 0x362   : > { %11223 = vst [vmem:[#allocation75_spill] sm:$0xff] %v8966_v49  ;;  %v2405_v38 = vmul.f32 0.5, %v2373_v24  ;;  %7108 = vmatprep.mubr.msk.f32.mxu1 %vm2703_vm4, %v2373_v24  ;;  %v2310_v52 = vpop.permute.xlu1 %2309 }
 0x363   : > { %v2374_v15 = vadd.f32 %v2310_v52, %v8676_v6  ;;  %v8980_v50 = vmul.f32 %v2404_v44, %v2372_v25  ;;  %v3679_v44 = vld [vmem:[%s10903_s13 + $0x8] sm:$0xff] }
 0x364   : > { %v8982_v54 = vmul.f32 %v2405_v38, %v2373_v24  ;;  %v3681_v38 = vld [vmem:[%s10903_s13 + $0x18] sm:$0xff]  ;;  %v3680_v24 = vld [vmem:[%s10903_s13 + $0x10] sm:$0xff] }
 0x365   : > { %11226 = vst [vmem:[#allocation78_spill] sm:$0xff] %v8980_v50  ;;  %v2406_v27 = vmul.f32 0.5, %v2374_v15  ;;  %7109 = vmatmul.mubr.msk.f32.gmra.mxu1 %vm2703_vm4, %v2374_v15  ;;  %7161 = vmatprep.subr.mxu1 %v3681_v38 }
 0x366   : > { %11227 = vst [vmem:[#allocation79_spill] sm:$0xff] %v8982_v54  ;;  %7162 = vmatpush3.msra.mxu1 %v3681_v38 }
 0x367   : > { %v8991_v16 = vmul.f32 %v2406_v27, %v2374_v15  ;;  %7163 = vmatprep.subr.mxu1 %v3680_v24 }
 0x368   : > { %7164 = vmatpush3.msra.mxu1 %v3680_v24 }
 0x369   : > { %11229 = vst [vmem:[#allocation81_spill] sm:$0xff] %v8991_v16  ;;  %7165 = vmatprep.subr.mxu1 %v3679_v44 }
 0x36a   : > { %7166 = vmatpush3.msra.mxu1 %v3679_v44 }
 0x3e9   : > { %v7065_v61 = vpop.f32.mrf.mxu1 }
 0x3ea   : > { %v2876_v25 = vadd.f32 %v7065_v61, %v9007_v12 }
 0x3eb   : > { %v2870_v31 = vpop.f32.mrf.mxu1 }
 0x3ec   : > { %v3062_v52 = vmul.f32 0.70710677, %v2876_v25  ;;  %v2871_v15 = vadd.f32 %v9007_v12, %v2870_v31 }
 0x3ed   : > { %v7068_v27 = vpop.f32.mrf.mxu1 }
 0x3ee   : > { %7455 = verf.f32 %v3062_v52  ;;  %v3061_v38 = vmul.f32 0.70710677, %v2871_v15  ;;  %v2886_v60 = vadd.f32 %v7068_v27, %v9007_v12 }
 0x3ef   : > { %v2880_v24 = vpop.f32.mrf.mxu1 }
 0x3f0   : > { %7457 = verf.f32 %v3061_v38  ;;  %v3064_v44 = vmul.f32 0.70710677, %v2886_v60  ;;  %v2881_v45 = vadd.f32 %v9007_v12, %v2880_v24 }
 0x3f1   : > { %v7071_v6 = vpop.f32.mrf.mxu1 }
 0x3f2   : > { %7459 = verf.f32 %v3064_v44  ;;  %v3063_v19 = vmul.f32 0.70710677, %v2881_v45  ;;  %v9014_v36 = vadd.f32 %v7071_v6, %v9007_v12 }
 0x3f3   : > { %v2890_v61 = vpop.f32.mrf.mxu1 }
 0x3f4   : > { %7461 = verf.f32 %v3063_v19  ;;  %v3066_v31 = vmul.f32 0.70710677, %v9014_v36  ;;  %v2891_v52 = vadd.f32 %v9007_v12, %v2890_v61 }
 0x3f5   : > { %v7074_v23 = vpop.f32.mrf.mxu1 }
 0x3f6   : > { %7463 = verf.f32 %v3066_v31  ;;  %v3065_v27 = vmul.f32 0.70710677, %v2891_v52  ;;  %v9019_v38 = vadd.f32 %v7074_v23, %v9007_v12 }
 0x3f7   : > { %v2900_v55 = vpop.f32.mrf.mxu1 }
 0x3f8   : > { %7465 = verf.f32 %v3065_v27  ;;  %v3068_v24 = vmul.f32 0.70710677, %v9019_v38  ;;  %v9023_v44 = vadd.f32 %v9007_v12, %v2900_v55  ;;  %v3029_v55 = vmul.f32 0.5, %v2871_v15 }
 0x3f9   : > { %v7077_v6 = vpop.f32.mrf.mxu1  ;;  %v3031_v15 = vmul.f32 0.5, %v2881_v45 }
 0x3fa   : > { %7467 = verf.f32 %v3068_v24  ;;  %v3067_v19 = vmul.f32 0.70710677, %v9023_v44  ;;  %v9027_v8 = vadd.f32 %v7077_v6, %v9007_v12  ;;  %v3030_v6 = vmul.f32 0.5, %v2876_v25 }
 0x3fb   : > { %v7456_v61 = vpop.eup %7455  ;;  %v2910_v31 = vpop.f32.mrf.mxu1 }
 0x3fc   : > { %7469 = verf.f32 %v3067_v19  ;;  %v3070_v23 = vmul.f32 0.70710677, %v9027_v8  ;;  %v3126_v49 = vadd.f32 1.0, %v7456_v61  ;;  %v9031_v27 = vadd.f32 %v9007_v12, %v2910_v31 }
 0x3fd   : > { %v7458_v42 = vpop.eup %7457  ;;  %v7080_v62 = vpop.f32.mrf.mxu1 }
 0x3fe   : > { %v3125_v53 = vadd.f32 1.0, %v7458_v42  ;;  %7471 = verf.f32 %v3070_v23  ;;  %v9034_v24 = vadd.f32 %v7080_v62, %v9007_v12  ;;  %v3069_v14 = vmul.f32 0.70710677, %v9031_v27 }
 0x3ff   : > { %v7460_v56 = vpop.eup %7459  ;;  %v2920_v2 = vpop.f32.mrf.mxu1  ;;  %v3158_v61 = vmul.f32 %v3126_v49, %v3030_v6  ;;  %v3033_v6 = vmul.f32 0.5, %v2891_v52 }
 0x400   : > { %v3157_v19 = vmul.f32 %v3125_v53, %v3029_v55  ;;  %v3072_v16 = vmul.f32 0.70710677, %v9034_v24  ;;  %v3128_v54 = vadd.f32 1.0, %v7460_v56  ;;  %7473 = verf.f32 %v3069_v14 }
 0x401   : > { %v7462_v33 = vpop.eup %7461  ;;  %v9039_v31 = vadd.f32 %v9007_v12, %v2920_v2  ;;  %v7083_v42 = vpop.f32.mrf.mxu1  ;;  %v3032_v53 = vmul.f32 0.5, %v2886_v60 }
 0x402   : > { %v3127_v23 = vadd.f32 1.0, %v7462_v33  ;;  %7475 = verf.f32 %v3072_v16  ;;  %v9042_v62 = vadd.f32 %v7083_v42, %v9007_v12  ;;  %7113 = vmatprep.mubr.msk.f32.mxu0 %vm1669_vm2, %v3157_v19  ;;  %v3034_v42 = vmul.f32 0.5, %v9014_v36 }
 0x403   : > { %v7464_v25 = vpop.eup %7463  ;;  %v3071_v55 = vmul.f32 0.70710677, %v9039_v31  ;;  %v2930_v3 = vpop.f32.mrf.mxu1  ;;  %7114 = vmatmul.mubr.msk.f32.vlgmr.msra.gmra.mxu0 %vm1669_vm2, %v3158_v61  ;;  %v3160_v2 = vmul.f32 %v3128_v54, %v3032_v53 }
 0x404   : > { %v3159_v49 = vmul.f32 %v3127_v23, %v3031_v15  ;;  %v3074_v56 = vmul.f32 0.70710677, %v9042_v62  ;;  %v3130_v45 = vadd.f32 1.0, %v7464_v25  ;;  %v9049_v33 = vadd.f32 %v9007_v12, %v2930_v3 }
 0x405   : > { %v7466_v14 = vpop.eup %7465  ;;  %7477 = verf.f32 %v3071_v55  ;;  %v7086_v16 = vpop.f32.mrf.mxu1 }
 0x406   : > { %v3129_v19 = vadd.f32 1.0, %v7466_v14  ;;  %7479 = verf.f32 %v3074_v56  ;;  %v9052_v60 = vadd.f32 %v7086_v16, %v9007_v12  ;;  %7116 = vmatprep.mubr.msk.f32.mxu0 %vm1669_vm2, %v3159_v49  ;;  %v3073_v15 = vmul.f32 0.70710677, %v9049_v33 }
 0x407   : > { %v7468_v61 = vpop.eup %7467  ;;  %v2940_v54 = vpop.f32.mrf.mxu1  ;;  %7117 = vmatmul.mubr.msk.f32.gmra.mxu0 %vm1669_vm2, %v3160_v2  ;;  %v3162_v52 = vmul.f32 %v3130_v45, %v3034_v42  ;;  %v3035_v49 = vmul.f32 0.5, %v9023_v44  ;;  %v3036_v16 = vmul.f32 0.5, %v9019_v38 }
 0x408   : > { %v3161_v23 = vmul.f32 %v3129_v19, %v3033_v6  ;;  %v3076_v3 = vmul.f32 0.70710677, %v9052_v60  ;;  %v3132_v53 = vadd.f32 1.0, %v7468_v61  ;;  %7481 = verf.f32 %v3073_v15 }
 0x409   : > { %v7470_v25 = vpop.eup %7469  ;;  %v9060_v55 = vadd.f32 %v9007_v12, %v2940_v54  ;;  %v7089_v56 = vpop.f32.mrf.mxu1 }
 0x40a   : > { %v3131_v14 = vadd.f32 1.0, %v7470_v25  ;;  %7483 = verf.f32 %v3076_v3  ;;  %v9064_v36 = vadd.f32 %v7089_v56, %v9007_v12  ;;  %7119 = vmatprep.mubr.msk.f32.mxu0 %vm1669_vm2, %v3161_v23  ;;  %v3164_v42 = vmul.f32 %v3132_v53, %v3036_v16 }
 0x40b   : > { %v7472_v2 = vpop.eup %7471  ;;  %v3075_v45 = vmul.f32 0.70710677, %v9060_v55  ;;  %v2950_v6 = vpop.f32.mrf.mxu1  ;;  %7120 = vmatmul.mubr.msk.f32.gmra.mxu0 %vm1669_vm2, %v3162_v52  ;;  %v3037_v25 = vmul.f32 0.5, %v9031_v27 }
 0x40c   : > { %v3163_v19 = vmul.f32 %v3131_v14, %v3035_v49  ;;  %v3078_v61 = vmul.f32 0.70710677, %v9064_v36  ;;  %v9072_v44 = vadd.f32 %v9007_v12, %v2950_v6  ;;  %v3134_v3 = vadd.f32 1.0, %v7472_v2 }
 0x40d   : > { %7485 = verf.f32 %v3075_v45  ;;  %v7092_v15 = vpop.f32.mrf.mxu1  ;;  %v7474_v54 = vpop.eup %7473  ;;  %v3038_v49 = vmul.f32 0.5, %v9027_v8 }
 0x40e   : > { %7487 = verf.f32 %v3078_v61  ;;  %v9075_v23 = vadd.f32 %v7092_v15, %v9007_v12  ;;  %7122 = vmatprep.mubr.msk.f32.mxu0 %vm1669_vm2, %v3163_v19  ;;  %v3133_v52 = vadd.f32 1.0, %v7474_v54  ;;  %v3077_v56 = vmul.f32 0.70710677, %v9072_v44 }
 0x40f   : > { %v7476_v38 = vpop.eup %7475  ;;  %v2960_v53 = vpop.f32.mrf.mxu1  ;;  %7123 = vmatmul.mubr.msk.f32.gmra.mxu0 %vm1669_vm2, %v3164_v42  ;;  %v3166_v19 = vmul.f32 %v3134_v3, %v3038_v49  ;;  %v3039_v54 = vmul.f32 0.5, %v9039_v31 }
 0x410   : > { %v3080_v14 = vmul.f32 0.70710677, %v9075_v23  ;;  %v9084_v2 = vadd.f32 %v9007_v12, %v2960_v53  ;;  %v3165_v16 = vmul.f32 %v3133_v52, %v3037_v25  ;;  %7489 = verf.f32 %v3077_v56 }
 0x411   : > { %v7095_v45 = vpop.f32.mrf.mxu1  ;;  %v3136_v61 = vadd.f32 1.0, %v7476_v38  ;;  %v3040_v25 = vmul.f32 0.5, %v9034_v24  ;;  %v3041_v24 = vmul.f32 0.5, %v9049_v33 }
 0x412   : > { %v7478_v6 = vpop.eup %7477  ;;  %7491 = verf.f32 %v3080_v14  ;;  %v3079_v27 = vmul.f32 0.70710677, %v9084_v2  ;;  %v9089_v8 = vadd.f32 %v7095_v45, %v9007_v12  ;;  %7125 = vmatprep.mubr.msk.f32.mxu0 %vm1669_vm2, %v3165_v16 }
 0x413   : > { %v7480_v15 = vpop.eup %7479  ;;  %v3135_v42 = vadd.f32 1.0, %v7478_v6  ;;  %v2970_v53 = vpop.f32.mrf.mxu1  ;;  %7126 = vmatmul.mubr.msk.f32.gmra.mxu0 %vm1669_vm2, %v3166_v19  ;;  %v3168_v49 = vmul.f32 %v3136_v61, %v3040_v25 }
 0x414   : > { %7493 = verf.f32 %v3079_v27  ;;  %v9094_v52 = vadd.f32 %v9007_v12, %v2970_v53  ;;  %v3082_v38 = vmul.f32 0.70710677, %v9089_v8  ;;  %v3138_v14 = vadd.f32 1.0, %v7480_v15 }
 0x415   : > { %v3167_v3 = vmul.f32 %v3135_v42, %v3039_v54  ;;  %v7098_v56 = vpop.f32.mrf.mxu1  ;;  %v7482_v31 = vpop.eup %7481  ;;  %v3042_v54 = vmul.f32 0.5, %v9042_v62  ;;  %v3043_v62 = vmul.f32 0.5, %v9060_v55 }
 0x416   : > { %v3081_v45 = vmul.f32 0.70710677, %v9094_v52  ;;  %v9100_v16 = vadd.f32 %v7098_v56, %v9007_v12  ;;  %v3137_v27 = vadd.f32 1.0, %v7482_v31  ;;  %7495 = verf.f32 %v3082_v38 }
 0x417   : > { %v7484_v6 = vpop.eup %7483  ;;  %7128 = vmatprep.mubr.msk.f32.mxu0 %vm1669_vm2, %v3167_v3  ;;  %v2980_v19 = vpop.f32.mrf.mxu1  ;;  %v3170_v56 = vmul.f32 %v3138_v14, %v3042_v54 }
 0x418   : > { %7497 = verf.f32 %v3081_v45  ;;  %v3084_v42 = vmul.f32 0.70710677, %v9100_v16  ;;  %7129 = vmatmul.mubr.msk.f32.gmra.mxu0 %vm1669_vm2, %v3168_v49  ;;  %v3169_v61 = vmul.f32 %v3137_v27, %v3041_v24  ;;  %v9108_v15 = vadd.f32 %v9007_v12, %v2980_v19 }
 0x419   : > { %v7101_v53 = vpop.f32.mrf.mxu1  ;;  %v3140_v33 = vadd.f32 1.0, %v7484_v6  ;;  %v3044_v24 = vmul.f32 0.5, %v9052_v60 }
 0x41a   : > { %v7486_v25 = vpop.eup %7485  ;;  %7499 = verf.f32 %v3084_v42  ;;  %v9111_v38 = vadd.f32 %v7101_v53, %v9007_v12  ;;  %v3083_v45 = vmul.f32 0.70710677, %v9108_v15  ;;  %7131 = vmatprep.mubr.msk.f32.mxu0 %vm1669_vm2, %v3169_v61 }
 0x41b   : > { %v7488_v3 = vpop.eup %7487  ;;  %v3139_v31 = vadd.f32 1.0, %v7486_v25  ;;  %v2990_v49 = vpop.f32.mrf.mxu1  ;;  %v3172_v55 = vmul.f32 %v3140_v33, %v3044_v24  ;;  %v3045_v25 = vmul.f32 0.5, %v9072_v44 }
 0x41c   : > { %v3086_v27 = vmul.f32 0.70710677, %v9111_v38  ;;  %v9119_v14 = vadd.f32 %v9007_v12, %v2990_v49  ;;  %7132 = vmatmul.mubr.msk.f32.gmra.mxu0 %vm1669_vm2, %v3170_v56  ;;  %7501 = verf.f32 %v3083_v45  ;;  %v3142_v42 = vadd.f32 1.0, %v7488_v3 }
 0x41d   : > { %v3171_v6 = vmul.f32 %v3139_v31, %v3043_v62  ;;  %v7104_v19 = vpop.f32.mrf.mxu1  ;;  %v7490_v54 = vpop.eup %7489  ;;  %v3046_v56 = vmul.f32 0.5, %v9064_v36  ;;  %v3048_v36 = vmul.f32 0.5, %v9075_v23 }
 0x41e   : > { %7503 = verf.f32 %v3086_v27  ;;  %v3085_v53 = vmul.f32 0.70710677, %v9119_v14  ;;  %v3141_v60 = vadd.f32 1.0, %v7490_v54  ;;  %v9125_v39 = vadd.f32 %v7104_v19, %v9007_v12 }
 0x41f   : > { %v7492_v61 = vpop.eup %7491  ;;  %7134 = vmatprep.mubr.msk.f32.mxu0 %vm1669_vm2, %v3171_v6  ;;  %v3000_v49 = vpop.f32.mrf.mxu1  ;;  %v3174_v24 = vmul.f32 %v3142_v42, %v3046_v56  ;;  %v3047_v27 = vmul.f32 0.5, %v9084_v2 }
 0x420   : > { %7505 = verf.f32 %v3085_v53  ;;  %v9130_v62 = vadd.f32 %v9007_v12, %v3000_v49  ;;  %7135 = vmatmul.mubr.msk.f32.gmra.mxu0 %vm1669_vm2, %v3172_v55  ;;  %v3173_v3 = vmul.f32 %v3141_v60, %v3045_v25  ;;  %v3144_v31 = vadd.f32 1.0, %v7492_v61 }
 0x421   : > { %v7494_v33 = vpop.eup %7493  ;;  %v3088_v44 = vmul.f32 0.70710677, %v9125_v39  ;;  %v7107_v45 = vpop.f32.mrf.mxu1  ;;  %v3049_v60 = vmul.f32 0.5, %v9094_v52 }
 0x422   : > { %v3143_v19 = vadd.f32 1.0, %v7494_v33  ;;  %v3087_v6 = vmul.f32 0.70710677, %v9130_v62  ;;  %v9138_v54 = vadd.f32 %v7107_v45, %v9007_v12  ;;  %7137 = vmatprep.mubr.msk.f32.mxu0 %vm1669_vm2, %v3173_v3  ;;  %v3176_v42 = vmul.f32 %v3144_v31, %v3048_v36 }
 0x423   : > { %7507 = verf.f32 %v3088_v44  ;;  %v3010_v55 = vpop.f32.mrf.mxu1  ;;  %v7496_v53 = vpop.eup %7495 }
 0x424   : > { %v3175_v61 = vmul.f32 %v3143_v19, %v3047_v27  ;;  %7509 = verf.f32 %v3087_v6  ;;  %v3011_v25 = vadd.f32 %v9007_v12, %v3010_v55  ;;  %7138 = vmatmul.mubr.msk.f32.gmra.mxu0 %vm1669_vm2, %v3174_v24  ;;  %v3090_v23 = vmul.f32 0.70710677, %v9138_v54 }
 0x425   : > { %v7498_v2 = vpop.eup %7497  ;;  %v7110_v49 = vpop.f32.mrf.mxu1  ;;  %v3146_v56 = vadd.f32 1.0, %v7496_v53  ;;  %v3050_v19 = vmul.f32 0.5, %v9089_v8  ;;  %v3052_v8 = vmul.f32 0.5, %v9100_v16 }
 0x426   : > { %v3145_v33 = vadd.f32 1.0, %v7498_v2  ;;  %v3089_v44 = vmul.f32 0.70710677, %v3011_v25  ;;  %v3026_v3 = vadd.f32 %v7110_v49, %v9007_v12  ;;  %7140 = vmatprep.mubr.msk.f32.mxu0 %vm1669_vm2, %v3175_v61  ;;  %7511 = verf.f32 %v3090_v23 }
 0x427   : > { %v7500_v45 = vpop.eup %7499  ;;  %v3020_v27 = vpop.f32.mrf.mxu1  ;;  %v3178_v36 = vmul.f32 %v3146_v56, %v3050_v19  ;;  %v3051_v61 = vmul.f32 0.5, %v9108_v15  ;;  %v3053_v56 = vmul.f32 0.5, %v9119_v14  ;;  %v3054_v15 = vmul.f32 0.5, %v9111_v38 }
 0x428   : > { %v3177_v24 = vmul.f32 %v3145_v33, %v3049_v60  ;;  %7513 = verf.f32 %v3089_v44  ;;  %7141 = vmatmul.mubr.msk.f32.gmra.mxu0 %vm1669_vm2, %v3176_v42  ;;  %v3092_v52 = vmul.f32 0.70710677, %v3026_v3  ;;  %v3021_v31 = vadd.f32 %v9007_v12, %v3020_v27 }
 0x429   : > { %v7502_v6 = vpop.eup %7501  ;;  %v3148_v55 = vadd.f32 1.0, %v7500_v45  ;;  %v3056_v14 = vmul.f32 0.5, %v9125_v39 }
 0x42a   : > { %7143 = vmatprep.mubr.msk.f32.mxu0 %vm1669_vm2, %v3177_v24  ;;  %v3147_v2 = vadd.f32 1.0, %v7502_v6  ;;  %7515 = verf.f32 %v3092_v52  ;;  %v3091_v23 = vmul.f32 0.70710677, %v3021_v31  ;;  %v3055_v24 = vmul.f32 0.5, %v9130_v62 }
 0x42b   : > { %v7504_v53 = vpop.eup %7503  ;;  %v3180_v49 = vmul.f32 %v3148_v55, %v3052_v8  ;;  %v3058_v8 = vmul.f32 0.5, %v9138_v54  ;;  %v3059_v39 = vmul.f32 0.5, %v3021_v31  ;;  %v3678_v54 = vld [vmem:[%s10903_s13] sm:$0xff] }
 0x42c   : > { %7144 = vmatmul.mubr.msk.f32.gmra.mxu0 %vm1669_vm2, %v3178_v36  ;;  %v3179_v42 = vmul.f32 %v3147_v2, %v3051_v61  ;;  %7517 = verf.f32 %v3091_v23  ;;  %v3150_v12 = vadd.f32 1.0, %v7504_v53  ;;  %v3057_v61 = vmul.f32 0.5, %v3011_v25  ;;  %7167 = vmatprep.subr.mxu1 %v3678_v54  ;;  %v9175_v31 = vld [vmem:[%s10902_s12] ss:$0 sm:$0xff] }
 0x42d   : > { %v7506_v60 = vpop.eup %7505  ;;  %7168 = vmatpush3.msra.mxu1 %v3678_v54 }
 0x42e   : > { %v3149_v33 = vadd.f32 1.0, %v7506_v60  ;;  %7146 = vmatprep.mubr.msk.f32.mxu0 %vm1669_vm2, %v3179_v42  ;;  %v3182_v16 = vmul.f32 %v3150_v12, %v3054_v15 }
 0x430   : > { %v7508_v44 = vpop.eup %7507  ;;  %v3181_v45 = vmul.f32 %v3149_v33, %v3053_v56  ;;  %7147 = vmatmul.mubr.msk.f32.gmra.mxu0 %vm1669_vm2, %v3180_v49  ;;  %v3060_v56 = vmul.f32 0.5, %v3026_v3 }
 0x431   : > { %v7510_v27 = vpop.eup %7509  ;;  %v3152_v19 = vadd.f32 1.0, %v7508_v44 }
 0x432   : > { %v3151_v52 = vadd.f32 1.0, %v7510_v27  ;;  %7149 = vmatprep.mubr.msk.f32.mxu0 %vm1669_vm2, %v3181_v45 }
 0x433   : > { %v7512_v6 = vpop.eup %7511  ;;  %v3184_v53 = vmul.f32 %v3152_v19, %v3056_v14 }
 0x434   : > { %v3183_v36 = vmul.f32 %v3151_v52, %v3055_v24  ;;  %7150 = vmatmul.mubr.msk.f32.gmra.mxu0 %vm1669_vm2, %v3182_v16  ;;  %v3154_v38 = vadd.f32 1.0, %v7512_v6 }
 0x435   : > { %v7514_v55 = vpop.eup %7513 }
 0x436   : > { %v3153_v2 = vadd.f32 1.0, %v7514_v55  ;;  %7152 = vmatprep.mubr.msk.f32.mxu0 %vm1669_vm2, %v3183_v36  ;;  %v3186_v42 = vmul.f32 %v3154_v38, %v3058_v8 }
 0x437   : > { %v7516_v23 = vpop.eup %7515 }
 0x438   : > { %v3185_v62 = vmul.f32 %v3153_v2, %v3057_v61  ;;  %7153 = vmatmul.mubr.msk.f32.gmra.mxu0 %vm1669_vm2, %v3184_v53  ;;  %v3156_v49 = vadd.f32 1.0, %v7516_v23 }
 0x439   : > { %v7518_v60 = vpop.eup %7517 }
 0x43a   : > { %7155 = vmatprep.mubr.msk.f32.mxu0 %vm1669_vm2, %v3185_v62  ;;  %v3155_v12 = vadd.f32 1.0, %v7518_v60  ;;  %v3188_v33 = vmul.f32 %v3156_v49, %v3060_v56 }
 0x43c   : > { %7156 = vmatmul.mubr.msk.f32.gmra.mxu0 %vm1669_vm2, %v3186_v42  ;;  %v3187_v25 = vmul.f32 %v3155_v12, %v3059_v39 }
 0x43e   : > { %7158 = vmatprep.mubr.msk.f32.mxu0 %vm1669_vm2, %v3187_v25 }
 0x440   : > { %7159 = vmatmul.mubr.msk.f32.gmra.mxu0 %vm1669_vm2, %v3188_v33 }
 0x4c3   : > { %v7115_v3 = vpop.f32.mrf.mxu0 }
 0x4c4   : > { %v3365_v44 = vadd.f32 %v7115_v3, %v9175_v31 }
 0x4c5   : > { %v3359_v15 = vpop.f32.mrf.mxu0 }
 0x4c6   : > { %v3551_v45 = vmul.f32 0.70710677, %v3365_v44  ;;  %v3360_v27 = vadd.f32 %v9175_v31, %v3359_v15 }
 0x4c7   : > { %v7118_v16 = vpop.f32.mrf.mxu0 }
 0x4c8   : > { %7519 = verf.f32 %v3551_v45  ;;  %v3550_v19 = vmul.f32 0.70710677, %v3360_v27  ;;  %v3375_v24 = vadd.f32 %v7118_v16, %v9175_v31  ;;  %v3519_v16 = vmul.f32 0.5, %v3365_v44 }
 0x4c9   : > { %v3369_v52 = vpop.f32.mrf.mxu0 }
 0x4ca   : > { %7521 = verf.f32 %v3550_v19  ;;  %v3553_v6 = vmul.f32 0.70710677, %v3375_v24  ;;  %v3370_v14 = vadd.f32 %v9175_v31, %v3369_v52  ;;  %v3518_v19 = vmul.f32 0.5, %v3360_v27 }
 0x4cb   : > { %v7121_v36 = vpop.f32.mrf.mxu0 }
 0x4cc   : > { %7523 = verf.f32 %v3553_v6  ;;  %v3552_v55 = vmul.f32 0.70710677, %v3370_v14  ;;  %v3385_v53 = vadd.f32 %v7121_v36, %v9175_v31  ;;  %v3520_v27 = vmul.f32 0.5, %v3370_v14 }
 0x4cd   : > { %v3379_v38 = vpop.f32.mrf.mxu0 }
 0x4ce   : > { %7525 = verf.f32 %v3552_v55  ;;  %v3555_v61 = vmul.f32 0.70710677, %v3385_v53  ;;  %v3380_v2 = vadd.f32 %v9175_v31, %v3379_v38 }
 0x4cf   : > { %v7124_v23 = vpop.f32.mrf.mxu0 }
 0x4d0   : > { %7527 = verf.f32 %v3555_v61  ;;  %v3554_v8 = vmul.f32 0.70710677, %v3380_v2  ;;  %v9184_v62 = vadd.f32 %v7124_v23, %v9175_v31 }
 0x4d1   : > { %v3389_v60 = vpop.f32.mrf.mxu0 }
 0x4d2   : > { %7529 = verf.f32 %v3554_v8  ;;  %v3557_v42 = vmul.f32 0.70710677, %v9184_v62  ;;  %v9188_v49 = vadd.f32 %v9175_v31, %v3389_v60 }
 0x4d3   : > { %v7127_v12 = vpop.f32.mrf.mxu0 }
 0x4d4   : > { %7531 = verf.f32 %v3557_v42  ;;  %v3556_v39 = vmul.f32 0.70710677, %v9188_v49  ;;  %v9192_v25 = vadd.f32 %v7127_v12, %v9175_v31 }
 0x4d5   : > { %v7520_v56 = vpop.eup %7519  ;;  %v3399_v54 = vpop.f32.mrf.mxu0 }
 0x4d6   : > { %v3615_v33 = vadd.f32 1.0, %v7520_v56  ;;  %7533 = verf.f32 %v3556_v39  ;;  %v3559_v15 = vmul.f32 0.70710677, %v9192_v25  ;;  %v9196_v45 = vadd.f32 %v9175_v31, %v3399_v54 }
 0x4d7   : > { %v7522_v3 = vpop.eup %7521 }
 0x4d8   : > { %v3614_v52 = vadd.f32 1.0, %v7522_v3  ;;  %v7130_v6 = vpop.f32.mrf.mxu0  ;;  %7535 = verf.f32 %v3559_v15  ;;  %v3558_v55 = vmul.f32 0.70710677, %v9196_v45  ;;  %v3647_v61 = vmul.f32 %v3615_v33, %v3519_v16 }
 0x4d9   : > { %v7524_v36 = vpop.eup %7523  ;;  %v9200_v38 = vadd.f32 %v7130_v6, %v9175_v31  ;;  %v3521_v3 = vmul.f32 0.5, %v3375_v24  ;;  %v3523_v24 = vmul.f32 0.5, %v3385_v53 }
 0x4da   : > { %v3646_v23 = vmul.f32 %v3614_v52, %v3518_v19  ;;  %v3409_v8 = vpop.f32.mrf.mxu0  ;;  %v3617_v42 = vadd.f32 1.0, %v7524_v36  ;;  %7537 = verf.f32 %v3558_v55 }
 0x4db   : > { %v7526_v60 = vpop.eup %7525  ;;  %v3561_v39 = vmul.f32 0.70710677, %v9200_v38  ;;  %v9204_v44 = vadd.f32 %v9175_v31, %v3409_v8 }
 0x4dc   : > { %v3616_v12 = vadd.f32 1.0, %v7526_v60  ;;  %v7133_v56 = vpop.f32.mrf.mxu0  ;;  %7169 = vmatprep.mubr.msk.f32.mxu1 %vm1179_vm1, %v3646_v23  ;;  %v3649_v36 = vmul.f32 %v3617_v42, %v3521_v3  ;;  %v3522_v23 = vmul.f32 0.5, %v3380_v2 }
 0x4dd   : > { %v7528_v54 = vpop.eup %7527  ;;  %7539 = verf.f32 %v3561_v39  ;;  %v3560_v33 = vmul.f32 0.70710677, %v9204_v44  ;;  %v9209_v15 = vadd.f32 %v7133_v56, %v9175_v31  ;;  %7170 = vmatmul.mubr.msk.f32.vlgmr.msra.gmra.mxu1 %vm1179_vm1, %v3647_v61 }
 0x4de   : > { %v3648_v16 = vmul.f32 %v3616_v12, %v3520_v27  ;;  %v3619_v19 = vadd.f32 1.0, %v7528_v54  ;;  %v3419_v52 = vpop.f32.mrf.mxu0 }
 0x4df   : > { %v7530_v6 = vpop.eup %7529  ;;  %7541 = verf.f32 %v3560_v33  ;;  %v3563_v14 = vmul.f32 0.70710677, %v9209_v15  ;;  %v9214_v55 = vadd.f32 %v9175_v31, %v3419_v52  ;;  %v3524_v33 = vmul.f32 0.5, %v9188_v49 }
 0x4e0   : > { %v3618_v8 = vadd.f32 1.0, %v7530_v6  ;;  %v7136_v60 = vpop.f32.mrf.mxu0  ;;  %7172 = vmatprep.mubr.msk.f32.mxu1 %vm1179_vm1, %v3648_v16  ;;  %v3651_v42 = vmul.f32 %v3619_v19, %v3523_v24  ;;  %v3525_v6 = vmul.f32 0.5, %v9184_v62 }
 0x4e1   : > { %v7532_v39 = vpop.eup %7531  ;;  %7543 = verf.f32 %v3563_v14  ;;  %v3562_v61 = vmul.f32 0.70710677, %v9214_v55  ;;  %v9219_v27 = vadd.f32 %v7136_v60, %v9175_v31  ;;  %7173 = vmatmul.mubr.msk.f32.gmra.mxu1 %vm1179_vm1, %v3649_v36 }
 0x4e2   : > { %v3650_v12 = vmul.f32 %v3618_v8, %v3522_v23  ;;  %v3429_v56 = vpop.f32.mrf.mxu0  ;;  %v3621_v3 = vadd.f32 1.0, %v7532_v39 }
 0x4e3   : > { %v7534_v54 = vpop.eup %7533  ;;  %7545 = verf.f32 %v3562_v61  ;;  %v3565_v53 = vmul.f32 0.70710677, %v9219_v27  ;;  %v9224_v2 = vadd.f32 %v9175_v31, %v3429_v56 }
 0x4e4   : > { %v3620_v16 = vadd.f32 1.0, %v7534_v54  ;;  %v7139_v52 = vpop.f32.mrf.mxu0  ;;  %7175 = vmatprep.mubr.msk.f32.mxu1 %vm1179_vm1, %v3650_v12  ;;  %v3653_v8 = vmul.f32 %v3621_v3, %v3525_v6  ;;  %v3526_v12 = vmul.f32 0.5, %v9196_v45  ;;  %v3527_v3 = vmul.f32 0.5, %v9192_v25 }
 0x4e5   : > { %7547 = verf.f32 %v3565_v53  ;;  %v3564_v19 = vmul.f32 0.70710677, %v9224_v2  ;;  %v9231_v36 = vadd.f32 %v7139_v52, %v9175_v31  ;;  %7176 = vmatmul.mubr.msk.f32.gmra.mxu1 %vm1179_vm1, %v3651_v42  ;;  %v7536_v14 = vpop.eup %7535 }
 0x4e6   : > { %v3652_v24 = vmul.f32 %v3620_v16, %v3524_v33  ;;  %v3439_v23 = vpop.f32.mrf.mxu0  ;;  %v3623_v39 = vadd.f32 1.0, %v7536_v14 }
 0x4e7   : > { %7549 = verf.f32 %v3564_v19  ;;  %v3567_v49 = vmul.f32 0.70710677, %v9231_v36  ;;  %v7538_v60 = vpop.eup %7537  ;;  %v9236_v61 = vadd.f32 %v9175_v31, %v3439_v23  ;;  %v3528_v23 = vmul.f32 0.5, %v9204_v44 }
 0x4e8   : > { %v7142_v62 = vpop.f32.mrf.mxu0  ;;  %7178 = vmatprep.mubr.msk.f32.mxu1 %vm1179_vm1, %v3652_v24  ;;  %v3622_v56 = vadd.f32 1.0, %v7538_v60  ;;  %v3655_v19 = vmul.f32 %v3623_v39, %v3527_v3  ;;  %v3529_v60 = vmul.f32 0.5, %v9200_v38 }
 0x4e9   : > { %7551 = verf.f32 %v3567_v49  ;;  %v9241_v42 = vadd.f32 %v7142_v62, %v9175_v31  ;;  %7179 = vmatmul.mubr.msk.f32.gmra.mxu1 %vm1179_vm1, %v3653_v8  ;;  %v3566_v53 = vmul.f32 0.70710677, %v9236_v61 }
 0x4ea   : > { %v7540_v54 = vpop.eup %7539  ;;  %v3449_v33 = vpop.f32.mrf.mxu0  ;;  %v3654_v16 = vmul.f32 %v3622_v56, %v3526_v12 }
 0x4eb   : > { %v3569_v52 = vmul.f32 0.70710677, %v9241_v42  ;;  %v3625_v14 = vadd.f32 1.0, %v7540_v54  ;;  %7553 = verf.f32 %v3566_v53  ;;  %v9248_v45 = vadd.f32 %v9175_v31, %v3449_v33 }
 0x4ec   : > { %v7542_v6 = vpop.eup %7541  ;;  %v7145_v24 = vpop.f32.mrf.mxu0  ;;  %7181 = vmatprep.mubr.msk.f32.mxu1 %vm1179_vm1, %v3654_v16  ;;  %v3530_v16 = vmul.f32 0.5, %v9214_v55 }
 0x4ed   : > { %v3624_v8 = vadd.f32 1.0, %v7542_v6  ;;  %7555 = verf.f32 %v3569_v52  ;;  %v9252_v25 = vadd.f32 %v7145_v24, %v9175_v31  ;;  %v3568_v39 = vmul.f32 0.70710677, %v9248_v45  ;;  %7182 = vmatmul.mubr.msk.f32.gmra.mxu1 %vm1179_vm1, %v3655_v19 }
 0x4ee   : > { %v7544_v49 = vpop.eup %7543  ;;  %v3459_v62 = vpop.f32.mrf.mxu0  ;;  %v3657_v44 = vmul.f32 %v3625_v14, %v3529_v60  ;;  %v3531_v19 = vmul.f32 0.5, %v9209_v15 }
 0x4ef   : > { %v3656_v12 = vmul.f32 %v3624_v8, %v3528_v23  ;;  %v3571_v56 = vmul.f32 0.70710677, %v9252_v25  ;;  %v3627_v3 = vadd.f32 1.0, %v7544_v49  ;;  %7557 = verf.f32 %v3568_v39 }
 0x4f0   : > { %v7546_v54 = vpop.eup %7545  ;;  %v9260_v53 = vadd.f32 %v9175_v31, %v3459_v62  ;;  %v7148_v33 = vpop.f32.mrf.mxu0 }
 0x4f1   : > { %v3626_v52 = vadd.f32 1.0, %v7546_v54  ;;  %7559 = verf.f32 %v3571_v56  ;;  %v9264_v38 = vadd.f32 %v7148_v33, %v9175_v31  ;;  %7184 = vmatprep.mubr.msk.f32.mxu1 %vm1179_vm1, %v3656_v12  ;;  %v3659_v55 = vmul.f32 %v3627_v3, %v3531_v19 }
 0x4f2   : > { %v7548_v6 = vpop.eup %7547  ;;  %v3570_v14 = vmul.f32 0.70710677, %v9260_v53  ;;  %v3469_v24 = vpop.f32.mrf.mxu0  ;;  %7185 = vmatmul.mubr.msk.f32.gmra.mxu1 %vm1179_vm1, %v3657_v44  ;;  %v3532_v12 = vmul.f32 0.5, %v9224_v2  ;;  %v3533_v44 = vmul.f32 0.5, %v9219_v27 }
 0x4f3   : > { %v3658_v23 = vmul.f32 %v3626_v52, %v3530_v16  ;;  %v3573_v8 = vmul.f32 0.70710677, %v9264_v38  ;;  %v3629_v60 = vadd.f32 1.0, %v7548_v6  ;;  %v9272_v39 = vadd.f32 %v9175_v31, %v3469_v24 }
 0x4f4   : > { %v7550_v49 = vpop.eup %7549  ;;  %7561 = verf.f32 %v3570_v14  ;;  %v7151_v62 = vpop.f32.mrf.mxu0 }
 0x4f5   : > { %v3628_v56 = vadd.f32 1.0, %v7550_v49  ;;  %7563 = verf.f32 %v3573_v8  ;;  %v9276_v15 = vadd.f32 %v7151_v62, %v9175_v31  ;;  %7187 = vmatprep.mubr.msk.f32.mxu1 %vm1179_vm1, %v3658_v23  ;;  %v3572_v3 = vmul.f32 0.70710677, %v9272_v39 }
 0x4f6   : > { %v7552_v54 = vpop.eup %7551  ;;  %v3479_v33 = vpop.f32.mrf.mxu0  ;;  %7188 = vmatmul.mubr.msk.f32.gmra.mxu1 %vm1179_vm1, %v3659_v55  ;;  %v3661_v6 = vmul.f32 %v3629_v60, %v3533_v44  ;;  %v3534_v8 = vmul.f32 0.5, %v9236_v61  ;;  %v3535_v62 = vmul.f32 0.5, %v9231_v36 }
 0x4f7   : > { %v3660_v16 = vmul.f32 %v3628_v56, %v3532_v12  ;;  %v3575_v52 = vmul.f32 0.70710677, %v9276_v15  ;;  %7565 = verf.f32 %v3572_v3  ;;  %v9284_v2 = vadd.f32 %v9175_v31, %v3479_v33 }
 0x4f8   : > { %v7154_v19 = vpop.f32.mrf.mxu0  ;;  %v7554_v14 = vpop.eup %7553  ;;  %v3631_v24 = vadd.f32 1.0, %v7552_v54 }
 0x4f9   : > { %7567 = verf.f32 %v3575_v52  ;;  %v9287_v23 = vadd.f32 %v7154_v19, %v9175_v31  ;;  %7190 = vmatprep.mubr.msk.f32.mxu1 %vm1179_vm1, %v3660_v16  ;;  %v3630_v49 = vadd.f32 1.0, %v7554_v14  ;;  %v3574_v55 = vmul.f32 0.70710677, %v9284_v2 }
 0x4fa   : > { %v7556_v27 = vpop.eup %7555  ;;  %v3489_v60 = vpop.f32.mrf.mxu0  ;;  %7191 = vmatmul.mubr.msk.f32.gmra.mxu1 %vm1179_vm1, %v3661_v6  ;;  %v3663_v33 = vmul.f32 %v3631_v24, %v3535_v62  ;;  %v3536_v19 = vmul.f32 0.5, %v9248_v45 }
 0x4fb   : > { %v3577_v12 = vmul.f32 0.70710677, %v9287_v23  ;;  %v9296_v56 = vadd.f32 %v9175_v31, %v3489_v60  ;;  %v3662_v54 = vmul.f32 %v3630_v49, %v3534_v8  ;;  %7569 = verf.f32 %v3574_v55 }
 0x4fc   : > { %v7157_v44 = vpop.f32.mrf.mxu0  ;;  %v7558_v3 = vpop.eup %7557  ;;  %v3633_v16 = vadd.f32 1.0, %v7556_v27  ;;  %v3537_v8 = vmul.f32 0.5, %v9241_v42 }
 0x4fd   : > { %7571 = verf.f32 %v3577_v12  ;;  %v3576_v61 = vmul.f32 0.70710677, %v9296_v56  ;;  %v3632_v6 = vadd.f32 1.0, %v7558_v3  ;;  %v9301_v36 = vadd.f32 %v7157_v44, %v9175_v31  ;;  %7193 = vmatprep.mubr.msk.f32.mxu1 %vm1179_vm1, %v3662_v54 }
 0x4fe   : > { %v7560_v52 = vpop.eup %7559  ;;  %v3499_v14 = vpop.f32.mrf.mxu0  ;;  %7194 = vmatmul.mubr.msk.f32.gmra.mxu1 %vm1179_vm1, %v3663_v33  ;;  %v3665_v45 = vmul.f32 %v3633_v16, %v3537_v8  ;;  %v3538_v54 = vmul.f32 0.5, %v9260_v53  ;;  %v3539_v33 = vmul.f32 0.5, %v9252_v25  ;;  %v3540_v53 = vmul.f32 0.5, %v9272_v39 }
 0x4ff   : > { %7573 = verf.f32 %v3576_v61  ;;  %v3500_v49 = vadd.f32 %v9175_v31, %v3499_v14  ;;  %v3664_v24 = vmul.f32 %v3632_v6, %v3536_v19  ;;  %v3579_v27 = vmul.f32 0.70710677, %v9301_v36 }
 0x500   : > { %v7160_v55 = vpop.f32.mrf.mxu0  ;;  %v3635_v62 = vadd.f32 1.0, %v7560_v52  ;;  %v3541_v25 = vmul.f32 0.5, %v9264_v38  ;;  %v3543_v39 = vmul.f32 0.5, %v9276_v15 }
 0x501   : > { %v7562_v60 = vpop.eup %7561  ;;  %v3578_v12 = vmul.f32 0.70710677, %v3500_v49  ;;  %v3515_v44 = vadd.f32 %v7160_v55, %v9175_v31  ;;  %7575 = verf.f32 %v3579_v27  ;;  %7196 = vmatprep.mubr.msk.f32.mxu1 %vm1179_vm1, %v3664_v24 }
 0x502   : > { %v7564_v3 = vpop.eup %7563  ;;  %v3634_v26 = vadd.f32 1.0, %v7562_v60  ;;  %v3509_v42 = vpop.f32.mrf.mxu0  ;;  %7197 = vmatmul.mubr.msk.f32.gmra.mxu1 %vm1179_vm1, %v3665_v45  ;;  %v3667_v6 = vmul.f32 %v3635_v62, %v3539_v33  ;;  %v3542_v62 = vmul.f32 0.5, %v9284_v2  ;;  %v3544_v33 = vmul.f32 0.5, %v9296_v56 }
 0x503   : > { %7577 = verf.f32 %v3578_v12  ;;  %v3581_v61 = vmul.f32 0.70710677, %v3515_v44  ;;  %v3510_v16 = vadd.f32 %v9175_v31, %v3509_v42  ;;  %v3637_v14 = vadd.f32 1.0, %v7564_v3 }
 0x504   : > { %v3666_v19 = vmul.f32 %v3634_v26, %v3538_v54  ;;  %v7566_v52 = vpop.eup %7565 }
 0x505   : > { %7579 = verf.f32 %v3581_v61  ;;  %v3636_v27 = vadd.f32 1.0, %v7566_v52  ;;  %v3580_v55 = vmul.f32 0.70710677, %v3510_v16  ;;  %v3669_v60 = vmul.f32 %v3637_v14, %v3541_v25 }
 0x506   : > { %v7568_v8 = vpop.eup %7567  ;;  %7199 = vmatprep.mubr.msk.f32.mxu1 %vm1179_vm1, %v3666_v19  ;;  %v3545_v52 = vmul.f32 0.5, %v9287_v23  ;;  %v3548_v23 = vmul.f32 0.5, %v3510_v16 }
 0x507   : > { %7200 = vmatmul.mubr.msk.f32.gmra.mxu1 %vm1179_vm1, %v3667_v6  ;;  %v3668_v24 = vmul.f32 %v3636_v27, %v3540_v53  ;;  %7581 = verf.f32 %v3580_v55  ;;  %v3639_v31 = vadd.f32 1.0, %v7568_v8  ;;  %v3546_v8 = vmul.f32 0.5, %v3500_v49 }
 0x508   : > { %v7570_v26 = vpop.eup %7569  ;;  %v3547_v55 = vmul.f32 0.5, %v9301_v36  ;;  %v9336_v36 = vld [vmem:[%s10904_s14] ss:$0 sm:$0xff] }
 0x509   : > { %v3638_v12 = vadd.f32 1.0, %v7570_v26  ;;  %7202 = vmatprep.mubr.msk.f32.mxu1 %vm1179_vm1, %v3668_v24  ;;  %v3671_v38 = vmul.f32 %v3639_v31, %v3543_v39  ;;  %v3549_v31 = vmul.f32 0.5, %v3515_v44 }
 0x50a   : > { %v7572_v45 = vpop.eup %7571 }
 0x50b   : > { %7203 = vmatmul.mubr.msk.f32.gmra.mxu1 %vm1179_vm1, %v3669_v60  ;;  %v3670_v54 = vmul.f32 %v3638_v12, %v3542_v62  ;;  %v3641_v42 = vadd.f32 1.0, %v7572_v45 }
 0x50c   : > { %v7574_v3 = vpop.eup %7573 }
 0x50d   : > { %v3640_v61 = vadd.f32 1.0, %v7574_v3  ;;  %7205 = vmatprep.mubr.msk.f32.mxu1 %vm1179_vm1, %v3670_v54  ;;  %v3673_v14 = vmul.f32 %v3641_v42, %v3545_v52 }
 0x50e   : > { %v7576_v19 = vpop.eup %7575 }
 0x50f   : > { %v3672_v2 = vmul.f32 %v3640_v61, %v3544_v33  ;;  %7206 = vmatmul.mubr.msk.f32.gmra.mxu1 %vm1179_vm1, %v3671_v38  ;;  %v3643_v15 = vadd.f32 1.0, %v7576_v19 }
 0x510   : > { %v7578_v6 = vpop.eup %7577 }
 0x511   : > { %v3642_v53 = vadd.f32 1.0, %v7578_v6  ;;  %7208 = vmatprep.mubr.msk.f32.mxu1 %vm1179_vm1, %v3672_v2  ;;  %v3675_v24 = vmul.f32 %v3643_v15, %v3547_v55 }
 0x512   : > { %v7580_v27 = vpop.eup %7579 }
 0x513   : > { %v3674_v56 = vmul.f32 %v3642_v53, %v3546_v8  ;;  %7209 = vmatmul.mubr.msk.f32.gmra.mxu1 %vm1179_vm1, %v3673_v14  ;;  %v3645_v26 = vadd.f32 1.0, %v7580_v27 }
 0x514   : > { %v7582_v25 = vpop.eup %7581 }
 0x515   : > { %7211 = vmatprep.mubr.msk.f32.mxu1 %vm1179_vm1, %v3674_v56  ;;  %v3644_v60 = vadd.f32 1.0, %v7582_v25  ;;  %v3677_v45 = vmul.f32 %v3645_v26, %v3549_v31 }
 0x517   : > { %7212 = vmatmul.mubr.msk.f32.gmra.mxu1 %vm1179_vm1, %v3675_v24  ;;  %v3676_v49 = vmul.f32 %v3644_v60, %v3548_v23 }
 0x519   : > { %7214 = vmatprep.mubr.msk.f32.mxu1 %vm1179_vm1, %v3676_v49 }
 0x51b   : > { %7215 = vmatmul.mubr.msk.f32.gmra.mxu1 %vm1179_vm1, %v3677_v45 }
 0x59d   : > { %v7171_v62 = vpop.f32.mrf.mxu1 }
 0x59e   : > { %v9339_v12 = vadd.f32 %v7171_v62, %v9336_v36 }
 0x59f   : > { %v3851_v16 = vpop.f32.mrf.mxu1 }
 0x5a0   : > { %11230 = vst [vmem:[#allocation82_spill] sm:$0xff] %v9339_v12  ;;  %v10972_v44 = vsub.f32 0.0, %v9339_v12  ;;  %v9343_v39 = vadd.f32 %v9336_v36, %v3851_v16 }
 0x5a1   : > { %v7174_v3 = vpop.f32.mrf.mxu1 }
 0x5a2   : > { %11231 = vst [vmem:[#allocation83_spill] sm:$0xff] %v9343_v39  ;;  %v4108_v54 = vmul.f32 1.442695, %v10972_v44  ;;  %v10971_v38 = vsub.f32 0.0, %v9343_v39  ;;  %v9349_v42 = vadd.f32 %v7174_v3, %v9336_v36 }
 0x5a3   : > { %v3861_v33 = vpop.f32.mrf.mxu1 }
 0x5a4   : > { %11232 = vst [vmem:[#allocation84_spill] sm:$0xff] %v9349_v42  ;;  %7583 = vpow2.f32 %v4108_v54  ;;  %v4106_v61 = vmul.f32 1.442695, %v10971_v38  ;;  %v9354_v19 = vadd.f32 %v9336_v36, %v3861_v33  ;;  %v10974_v52 = vsub.f32 0.0, %v9349_v42 }
 0x5a5   : > { %v7177_v2 = vpop.f32.mrf.mxu1 }
 0x5a6   : > { %11233 = vst [vmem:[#allocation85_spill] sm:$0xff] %v9354_v19  ;;  %7585 = vpow2.f32 %v4106_v61  ;;  %v4112_v14 = vmul.f32 1.442695, %v10974_v52  ;;  %v10973_v15 = vsub.f32 0.0, %v9354_v19  ;;  %v9361_v8 = vadd.f32 %v7177_v2, %v9336_v36 }
 0x5a7   : > { %v3871_v6 = vpop.f32.mrf.mxu1 }
 0x5a8   : > { %11234 = vst [vmem:[#allocation86_spill] sm:$0xff] %v9361_v8  ;;  %7587 = vpow2.f32 %v4112_v14  ;;  %v4110_v55 = vmul.f32 1.442695, %v10973_v15  ;;  %v10976_v56 = vsub.f32 0.0, %v9361_v8  ;;  %v9367_v25 = vadd.f32 %v9336_v36, %v3871_v6 }
 0x5a9   : > { %v7180_v53 = vpop.f32.mrf.mxu1 }
 0x5aa   : > { %11235 = vst [vmem:[#allocation87_spill] sm:$0xff] %v9367_v25  ;;  %7589 = vpow2.f32 %v4110_v55  ;;  %v4116_v26 = vmul.f32 1.442695, %v10976_v56  ;;  %v10975_v23 = vsub.f32 0.0, %v9367_v25  ;;  %v9373_v60 = vadd.f32 %v7180_v53, %v9336_v36 }
 0x5ab   : > { %v3881_v27 = vpop.f32.mrf.mxu1 }
 0x5ac   : > { %11236 = vst [vmem:[#allocation88_spill] sm:$0xff] %v9373_v60  ;;  %7591 = vpow2.f32 %v4116_v26  ;;  %v4114_v62 = vmul.f32 1.442695, %v10975_v23  ;;  %v10978_v16 = vsub.f32 0.0, %v9373_v60  ;;  %v9380_v3 = vadd.f32 %v9336_v36, %v3881_v27 }
 0x5ad   : > { %v7183_v24 = vpop.f32.mrf.mxu1 }
 0x5ae   : > { %11237 = vst [vmem:[#allocation89_spill] sm:$0xff] %v9380_v3  ;;  %v9384_v2 = vadd.f32 %v7183_v24, %v9336_v36  ;;  %7593 = vpow2.f32 %v4114_v62  ;;  %v4120_v6 = vmul.f32 1.442695, %v10978_v16  ;;  %v10977_v14 = vsub.f32 0.0, %v9380_v3 }
 0x5af   : > { %v3891_v31 = vpop.f32.mrf.mxu1 }
 0x5b0   : > { %11238 = vst [vmem:[#allocation90_spill] sm:$0xff] %v9384_v2  ;;  %v10979_v27 = vsub.f32 0.0, %v9384_v2  ;;  %7595 = vpow2.f32 %v4120_v6  ;;  %v4118_v24 = vmul.f32 1.442695, %v10977_v14 }
 0x5b1   : > { %v7584_v49 = vpop.eup %7583 }
 0x5b2   : > { %v7186_v45 = vpop.f32.mrf.mxu1  ;;  %4588 = vrot.lane.b32.xlu1 %v7584_v49, %s7839_s23  ;;  %v9392_v49 = vadd.f32 %v9336_v36, %v3891_v31  ;;  %v4124_v38 = vmul.f32 1.442695, %v10979_v27  ;;  %7597 = vpow2.f32 %v4118_v24 }
 0x5b3   : > { %v7586_v33 = vpop.eup %7585  ;;  %v9403_v15 = vadd.f32 %v7186_v45, %v9336_v36 }
 0x5b4   : > { %v3901_v54 = vpop.f32.mrf.mxu1  ;;  %11239 = vst [vmem:[#allocation91_spill] sm:$0xff] %v9392_v49  ;;  %v10980_v44 = vsub.f32 0.0, %v9392_v49  ;;  %7599 = vpow2.f32 %v4124_v38 }
 0x5b5   : > { %v7588_v55 = vpop.eup %7587  ;;  %11240 = vst [vmem:[#allocation92_spill] sm:$0xff] %v9403_v15  ;;  %v9417_v14 = vadd.f32 %v9336_v36, %v3901_v54 }
 0x5b6   : > { %v7189_v61 = vpop.f32.mrf.mxu1  ;;  %4586 = vrot.lane.b32.xlu1 %v7586_v33, %s7839_s23 }
 0x5b7   : > { %v7590_v33 = vpop.eup %7589  ;;  %11243 = vst [vmem:[#allocation95_spill] sm:$0xff] %v9417_v14  ;;  %v9436_v63 = vadd.f32 %v7189_v61, %v9336_v36 }
 0x5b8   : > { %v3911_v53 = vpop.f32.mrf.mxu1 }
 0x5b9   : > { %v7592_v6 = vpop.eup %7591  ;;  %11247 = vst [vmem:[#allocation98_spill] sm:$0xff] %v9436_v63  ;;  %v10991_v61 = vsub.f32 0.0, %v9436_v63  ;;  %v9449_v37 = vadd.f32 %v9336_v36, %v3911_v53 }
 0x5ba   : > { %v7192_v26 = vpop.f32.mrf.mxu1  ;;  %4592 = vrot.lane.b32.xlu1 %v7588_v55, %s7839_s23 }
 0x5bb   : > { %v7594_v27 = vpop.eup %7593  ;;  %11249 = vst [vmem:[#allocation100_spill] sm:$0xff] %v9449_v37  ;;  %v10993_v53 = vsub.f32 0.0, %v9449_v37 }
 0x5bc   : > { %v9396_v62 = vpop.f32.mrf.mxu1 }
 0x5be   : > { %4590 = vrot.lane.b32.xlu1 %v7590_v33, %s7839_s23  ;;  %v7195_v55 = vpop.f32.mrf.mxu1  ;;  %v4122_v33 = vmul.f32 1.442695, %v10980_v44 }
 0x5bf   : > { %v9406_v31 = vadd.f32 %v7195_v55, %v9336_v36 }
 0x5c0   : > { %v3931_v52 = vpop.f32.mrf.mxu1 }
 0x5c1   : > { %11241 = vst [vmem:[#allocation93_spill] sm:$0xff] %v9406_v31  ;;  %v10981_v23 = vsub.f32 0.0, %v9406_v31  ;;  %v9410_v56 = vadd.f32 %v9336_v36, %v3931_v52 }
 0x5c2   : > { %4596 = vrot.lane.b32.xlu1 %v7592_v6, %s7839_s23  ;;  %v7198_v24 = vpop.f32.mrf.mxu1 }
 0x5c3   : > { %11242 = vst [vmem:[#allocation94_spill] sm:$0xff] %v9410_v56  ;;  %v4140_v55 = vmul.f32 1.442695, %v10981_v23  ;;  %v10984_v16 = vsub.f32 0.0, %v9410_v56  ;;  %v9423_v52 = vadd.f32 %v7198_v24, %v9336_v36  ;;  %v11246_v23 = vsub.f32 0.0, %v9403_v15 }
 0x5c4   : > { %v3941_v6 = vpop.f32.mrf.mxu1  ;;  %v10988_v24 = vsub.f32 0.0, %v9417_v14 }
 0x5c5   : > { %11244 = vst [vmem:[#allocation96_spill] sm:$0xff] %v9423_v52  ;;  %7601 = vpow2.f32 %v4140_v55  ;;  %v4138_v38 = vmul.f32 1.442695, %v10984_v16  ;;  %v9428_v44 = vadd.f32 %v9336_v36, %v3941_v6  ;;  %v10986_v54 = vsub.f32 0.0, %v9423_v52  ;;  %v7596_v55 = vpop.eup %7595 }
 0x5c6   : > { %4594 = vrot.lane.b32.xlu1 %v7594_v27, %s7839_s23  ;;  %7603 = vpow2.f32 %v4122_v33  ;;  %v4128_v50 = vmul.f32 1.442695, %v11246_v23  ;;  %v4126_v23 = vmul.f32 1.442695, %v10988_v24  ;;  %v4132_v24 = vmul.f32 1.442695, %v10991_v61 }
 0x5c7   : > { %11245 = vst [vmem:[#allocation97_spill] sm:$0xff] %v9428_v44  ;;  %v7201_v45 = vpop.f32.mrf.mxu1  ;;  %7605 = vpow2.f32 %v4138_v38  ;;  %v4144_v6 = vmul.f32 1.442695, %v10986_v54  ;;  %v10989_v16 = vsub.f32 0.0, %v9428_v44  ;;  %v7598_v38 = vpop.eup %7597  ;;  %v4130_v61 = vmul.f32 1.442695, %v10993_v53 }
 0x5c8   : > { %v9442_v27 = vadd.f32 %v7201_v45, %v9336_v36  ;;  %7607 = vpow2.f32 %v4128_v50 }
 0x5c9   : > { %v3951_v33 = vpop.f32.mrf.mxu1  ;;  %7609 = vpow2.f32 %v4144_v6  ;;  %v4142_v54 = vmul.f32 1.442695, %v10989_v16  ;;  %v9462_v6 = vadd.f32 %v7192_v26, %v9336_v36 }
 0x5ca   : > { %11248 = vst [vmem:[#allocation99_spill] sm:$0xff] %v9442_v27  ;;  %4600 = vrot.lane.b32.xlu1 %v7596_v55, %s7839_s23  ;;  %v10992_v45 = vsub.f32 0.0, %v9442_v27  ;;  %v9455_v20 = vadd.f32 %v9336_v36, %v3951_v33  ;;  %v7600_v55 = vpop.eup %7599  ;;  %7611 = vpow2.f32 %v4126_v23 }
 0x5cb   : > { %v7204_v50 = vpop.f32.mrf.mxu1  ;;  %11251 = vst [vmem:[#allocation102_spill] sm:$0xff] %v9462_v6  ;;  %7613 = vpow2.f32 %v4142_v54  ;;  %v9476_v54 = vadd.f32 %v9336_v36, %v9396_v62  ;;  %v11255_v62 = vsub.f32 0.0, %v9462_v6 }
 0x5cc   : > { %11250 = vst [vmem:[#allocation101_spill] sm:$0xff] %v9455_v20  ;;  %v4148_v16 = vmul.f32 1.442695, %v10992_v45  ;;  %v10995_v33 = vsub.f32 0.0, %v9455_v20  ;;  %v9468_v29 = vadd.f32 %v7204_v50, %v9336_v36  ;;  %7615 = vpow2.f32 %v4132_v24 }
 0x5cd   : > { %11253 = vst [vmem:[#allocation104_spill] sm:$0xff] %v9476_v54  ;;  %v4136_v5 = vmul.f32 1.442695, %v11255_v62 }
 0x5ce   : > { %4598 = vrot.lane.b32.xlu1 %v7598_v38, %s7839_s23  ;;  %11252 = vst [vmem:[#allocation103_spill] sm:$0xff] %v9468_v29  ;;  %v3961_v38 = vpop.f32.mrf.mxu1  ;;  %7617 = vpow2.f32 %v4148_v16  ;;  %v4146_v50 = vmul.f32 1.442695, %v10995_v33 }
 0x5cf   : > { %v9483_v24 = vadd.f32 %v9336_v36, %v3961_v38  ;;  %7619 = vpow2.f32 %v4130_v61 }
 0x5d0   : > { %v7207_v26 = vpop.f32.mrf.mxu1  ;;  %7621 = vpow2.f32 %v4146_v50 }
 0x5d1   : > { %11254 = vst [vmem:[#allocation105_spill] sm:$0xff] %v9483_v24  ;;  %v10999_v38 = vsub.f32 0.0, %v9483_v24  ;;  %v9494_v40 = vadd.f32 %v7207_v26, %v9336_v36  ;;  %7623 = vpow2.f32 %v4136_v5 }
 0x5d2   : > { %4604 = vrot.lane.b32.xlu1 %v7600_v55, %s7839_s23  ;;  %v7602_v23 = vpop.eup %7601  ;;  %v10997_v55 = vsub.f32 0.0, %v9468_v29 }
 0x5d3   : > { %4620 = vrot.lane.b32.xlu0 %v7602_v23, %s7839_s23  ;;  %v7604_v45 = vpop.eup %7603  ;;  %v11000_v23 = vsub.f32 0.0, %v9476_v54  ;;  %11256 = vst [vmem:[#allocation106_spill] sm:$0xff] %v9494_v40  ;;  %v4150_v50 = vmul.f32 1.442695, %v10999_v38 }
 0x5d4   : > { %v7606_v53 = vpop.eup %7605  ;;  %v4152_v33 = vmul.f32 1.442695, %v10997_v55  ;;  %v11001_v55 = vsub.f32 0.0, %v9494_v40 }
 0x5d5   : > { %v7608_v16 = vpop.eup %7607  ;;  %v4134_v62 = vmul.f32 1.442695, %v11000_v23 }
 0x5d6   : > { %4602 = vrot.lane.b32.xlu1 %v7604_v45, %s7839_s23  ;;  %v7610_v61 = vpop.eup %7609  ;;  %v3971_v45 = vpop.f32.mrf.mxu1  ;;  %7625 = vpow2.f32 %v4152_v33  ;;  %v4156_v33 = vmul.f32 1.442695, %v11001_v55 }
 0x5d7   : > { %4618 = vrot.lane.b32.xlu0 %v7606_v53, %s7839_s23  ;;  %v7612_v53 = vpop.eup %7611  ;;  %v9504_v26 = vadd.f32 %v9336_v36, %v3971_v45  ;;  %7627 = vpow2.f32 %v4134_v62 }
 0x5d8   : > { %v7210_v21 = vpop.f32.mrf.mxu1  ;;  %7629 = vpow2.f32 %v4150_v50 }
 0x5d9   : > { %11257 = vst [vmem:[#allocation107_spill] sm:$0xff] %v9504_v26  ;;  %v9512_v38 = vadd.f32 %v7210_v21, %v9336_v36  ;;  %7631 = vpow2.f32 %v4156_v33 }
 0x5da   : > { %4608 = vrot.lane.b32.xlu1 %v7608_v16, %s7839_s23  ;;  %v7614_v16 = vpop.eup %7613  ;;  %v3981_v23 = vpop.f32.mrf.mxu1 }
 0x5db   : > { %4624 = vrot.lane.b32.xlu0 %v7610_v61, %s7839_s23  ;;  %v7616_v5 = vpop.eup %7615  ;;  %v11002_v61 = vsub.f32 0.0, %v9504_v26  ;;  %11258 = vst [vmem:[#allocation108_spill] sm:$0xff] %v9512_v38  ;;  %v11004_v50 = vsub.f32 0.0, %v9512_v38 }
 0x5dc   : > { %v7618_v45 = vpop.eup %7617  ;;  %v7213_v55 = vpop.f32.mrf.mxu1 }
 0x5dd   : > { %v4154_v62 = vmul.f32 1.442695, %v11002_v61  ;;  %v9528_v61 = vadd.f32 %v7213_v55, %v9336_v36 }
 0x5de   : > { %4606 = vrot.lane.b32.xlu1 %v7612_v53, %s7839_s23  ;;  %v7620_v53 = vpop.eup %7619  ;;  %v3991_v51 = vpop.f32.mrf.mxu1 }
 0x5df   : > { %4622 = vrot.lane.b32.xlu0 %v7614_v16, %s7839_s23  ;;  %v9520_v16 = vadd.f32 %v9336_v36, %v3981_v23  ;;  %v7622_v21 = vpop.eup %7621  ;;  %7633 = vpow2.f32 %v4154_v62  ;;  %11260 = vst [vmem:[#allocation110_spill] sm:$0xff] %v9528_v61  ;;  %v11008_v62 = vsub.f32 0.0, %v9528_v61 }
 0x5e0   : > { %v7216_v41 = vpop.f32.mrf.mxu1 }
 0x5e1   : > { %11259 = vst [vmem:[#allocation109_spill] sm:$0xff] %v9520_v16  ;;  %v11006_v33 = vsub.f32 0.0, %v9520_v16 }
 0x5e2   : > { %4612 = vrot.lane.b32.xlu1 %v7616_v5, %s7839_s23  ;;  %v7624_v5 = vpop.eup %7623  ;;  %v4001_v0 = vpop.f32.mrf.mxu1 }
 0x5e3   : > { %4628 = vrot.lane.b32.xlu0 %v7618_v45, %s7839_s23  ;;  %v4160_v45 = vmul.f32 1.442695, %v11004_v50  ;;  %v7626_v23 = vpop.eup %7625  ;;  %v9536_v50 = vadd.f32 %v9336_v36, %v3991_v51 }
 0x5e5   : > { %7635 = vpow2.f32 %v4160_v45  ;;  %11261 = vst [vmem:[#allocation111_spill] sm:$0xff] %v9536_v50  ;;  %v11012_v45 = vsub.f32 0.0, %v9536_v50 }
 0x5e6   : > { %4610 = vrot.lane.b32.xlu1 %v7620_v53, %s7839_s23  ;;  %v7628_v53 = vpop.eup %7627 }
 0x5e7   : > { %4626 = vrot.lane.b32.xlu0 %v7622_v21, %s7839_s23  ;;  %v4158_v21 = vmul.f32 1.442695, %v11006_v33  ;;  %v7630_v55 = vpop.eup %7629  ;;  %v4162_v51 = vmul.f32 1.442695, %v11012_v45  ;;  %v7744_v45 = vld [vmem:[%s7991_s27] sm:$0xff] }
 0x5e8   : > { %v7632_v33 = vpop.eup %7631 }
 0x5e9   : > { %7637 = vpow2.f32 %v4158_v21  ;;  %v9551_v21 = vadd.f32 %v9336_v36, %v4001_v0 }
 0x5ea   : > { %4616 = vrot.lane.b32.xlu1 %v7624_v5, %s7839_s23  ;;  %v4164_v5 = vmul.f32 1.442695, %v11008_v62 }
 0x5eb   : > { %4632 = vrot.lane.b32.xlu0 %v7626_v23, %s7839_s23  ;;  %v9544_v23 = vadd.f32 %v7216_v41, %v9336_v36  ;;  %11263 = vst [vmem:[#allocation113_spill] sm:$0xff] %v9551_v21  ;;  %v11010_v62 = vsub.f32 0.0, %v9551_v21 }
 0x5ec   : > { %7639 = vpow2.f32 %v4164_v5 }
 0x5ed   : > { %11262 = vst [vmem:[#allocation112_spill] sm:$0xff] %v9544_v23  ;;  %7641 = vpow2.f32 %v4162_v51 }
 0x5ee   : > { %4614 = vrot.lane.b32.xlu1 %v7628_v53, %s7839_s23  ;;  %v11011_v53 = vsub.f32 0.0, %v9544_v23 }
 0x5ef   : > { %4630 = vrot.lane.b32.xlu0 %v7630_v55, %s7839_s23  ;;  %v7634_v55 = vpop.eup %7633 }
 0x5f0   : > { %v4168_v41 = vmul.f32 1.442695, %v11011_v53 }
 0x5f2   : > { %v7636_v30 = vpop.eup %7635  ;;  %7643 = vpow2.f32 %v4168_v41 }
 0x5f3   : > { %4636 = vrot.lane.b32.xlu0 %v7632_v33, %s7839_s23  ;;  %v4166_v33 = vmul.f32 1.442695, %v11010_v62 }
 0x5f5   : > { %7645 = vpow2.f32 %v4166_v33 }
 0x5f6   : > { %v7638_v5 = vpop.eup %7637 }
 0x5f7   : > { %4634 = vrot.lane.b32.xlu0 %v7634_v55, %s7839_s23  ;;  %v9565_v55 = vpop.permute.xlu1 %2597 }
 0x5f8   : > { %11264 = vst [vmem:[#allocation114_spill] sm:$0xff] %v9565_v55 }
 0x5f9   : > { %v7640_v0 = vpop.eup %7639 }
 0x5fa   : > { %v7642_v36 = vpop.eup %7641 }
 0x5fb   : > { %4640 = vrot.lane.b32.xlu0 %v7636_v30, %s7839_s23  ;;  %v9567_v41 = vpop.permute.xlu1 %2595 }
 0x5fc   : > { %11265 = vst [vmem:[#allocation115_spill] sm:$0xff] %v9567_v41 }
 0x5ff   : > { %4638 = vrot.lane.b32.xlu0 %v7638_v5, %s7839_s23  ;;  %v7644_v51 = vpop.eup %7643  ;;  %v7743_v5 = vld [vmem:[%s7991_s27 + $0x8] sm:$0xff] }
 0x600   : > { %v4523_v33 = vsub.f32 %v7743_v5, %v9339_v12 }
 0x602   : > { %v7646_v30 = vpop.eup %7645 }
 0x603   : > { %4644 = vrot.lane.b32.xlu0 %v7640_v0, %s7839_s23 }
 0x607   : > { %4642 = vrot.lane.b32.xlu0 %v7642_v36, %s7839_s23  ;;  %v4522_v36 = vsub.f32 %v7744_v45, %v9343_v39 }
 0x60b   : > { %4648 = vrot.lane.b32.xlu0 %v7644_v51, %s7839_s23 }
 0x60f   : > { %4646 = vrot.lane.b32.xlu0 %v7646_v30, %s7839_s23  ;;  %v7745_v30 = vld [vmem:[%s7991_s27 + $0x18] sm:$0xff] }
 0x610   : > { %v4525_v41 = vsub.f32 %v7745_v30, %v9349_v42 }
 0x624   : > { %v4589_v62 = vpop.permute.xlu1 %4588 }
 0x625   : > { %v4683_v53 = vmul.f32 %v4589_v62, %v4523_v33  ;;  %v7746_v33 = vld [vmem:[%s7991_s27 + $0x10] sm:$0xff] }
 0x626   : > { %v4524_v45 = vsub.f32 %v7746_v33, %v9354_v19 }
 0x627   : > { %v4747_v0 = vmul.f32 0.5, %v4683_v53 }
 0x628   : > { %v4587_v4 = vpop.permute.xlu1 %4586 }
 0x629   : > { %v4779_v51 = vmul.f32 %v4747_v0, %v4683_v53  ;;  %v4682_v35 = vmul.f32 %v4587_v4, %v4522_v36 }
 0x62b   : > { %v4746_v1 = vmul.f32 0.5, %v4682_v35  ;;  %4844 = vrot.lane.b32.xlu1 %v4779_v51, %s7840_s25  ;;  %v7747_v51 = vld [vmem:[%s7991_s27 + $0x28] sm:$0xff] }
 0x62c   : > { %v4593_v55 = vpop.permute.xlu1 %4592  ;;  %v4527_v30 = vsub.f32 %v7747_v51, %v9361_v8  ;;  %v9588_v51 = vpop.permute.xlu0 %2629 }
 0x62d   : > { %v4778_v5 = vmul.f32 %v4746_v1, %v4682_v35  ;;  %v4685_v12 = vmul.f32 %v4593_v55, %v4525_v41  ;;  %v7748_v41 = vld [vmem:[%s7991_s27 + $0x20] sm:$0xff]  ;;  %11266 = vst [vmem:[#allocation116_spill] sm:$0xff] %v9588_v51 }
 0x62f   : > { %v4749_v62 = vmul.f32 0.5, %v4685_v12  ;;  %4842 = vrot.lane.b32.xlu0 %v4778_v5, %s7840_s25  ;;  %v4526_v5 = vsub.f32 %v7748_v41, %v9367_v25 }
 0x630   : > { %v4591_v53 = vpop.permute.xlu1 %4590 }
 0x631   : > { %v4781_v4 = vmul.f32 %v4749_v62, %v4685_v12  ;;  %v4684_v0 = vmul.f32 %v4591_v53, %v4524_v45  ;;  %v7749_v53 = vld [vmem:[%s7991_s27 + $0x38] sm:$0xff] }
 0x633   : > { %v4748_v36 = vmul.f32 0.5, %v4684_v0  ;;  %4848 = vrot.lane.b32.xlu1 %v4781_v4, %s7840_s25  ;;  %v4529_v4 = vsub.f32 %v7749_v53, %v9373_v60  ;;  %v7751_v53 = vld [vmem:[%s7991_s27 + $0x48] sm:$0xff] }
 0x634   : > { %v4597_v39 = vpop.permute.xlu1 %4596 }
 0x635   : > { %v4780_v35 = vmul.f32 %v4748_v36, %v4684_v0  ;;  %v4687_v1 = vmul.f32 %v4597_v39, %v4527_v30 }
 0x637   : > { %v4751_v55 = vmul.f32 0.5, %v4687_v1  ;;  %4846 = vrot.lane.b32.xlu1 %v4780_v35, %s7840_s25  ;;  %v7750_v35 = vld [vmem:[%s7991_s27 + $0x30] sm:$0xff] }
 0x638   : > { %v4595_v33 = vpop.permute.xlu1 %4594 }
 0x639   : > { %v4783_v12 = vmul.f32 %v4751_v55, %v4687_v1  ;;  %v4686_v62 = vmul.f32 %v4595_v33, %v4526_v5  ;;  %v4528_v1 = vsub.f32 %v7750_v35, %v9380_v3  ;;  %v9593_v33 = vpop.permute.xlu0 %2627 }
 0x63a   : > { %11267 = vst [vmem:[#allocation117_spill] sm:$0xff] %v9593_v33 }
 0x63b   : > { %v4750_v45 = vmul.f32 0.5, %v4686_v62  ;;  %4852 = vrot.lane.b32.xlu1 %v4783_v12, %s7840_s25 }
 0x63c   : > { %v4601_v39 = vpop.permute.xlu1 %4600 }
 0x63d   : > { %v4782_v0 = vmul.f32 %v4750_v45, %v4686_v62  ;;  %v4689_v36 = vmul.f32 %v4601_v39, %v4529_v4  ;;  %v4531_v62 = vsub.f32 %v7751_v53, %v9384_v2  ;;  %v7752_v39 = vld [vmem:[%s7991_s27 + $0x88] sm:$0xff]  ;;  %v7754_v53 = vld [vmem:[%s7991_s27 + $0x80] sm:$0xff] }
 0x63f   : > { %v4753_v30 = vmul.f32 0.5, %v4689_v36  ;;  %4850 = vrot.lane.b32.xlu1 %v4782_v0, %s7840_s25  ;;  %v4539_v0 = vsub.f32 %v7752_v39, %v9406_v31 }
 0x640   : > { %v4599_v55 = vpop.permute.xlu1 %4598 }
 0x641   : > { %v4785_v41 = vmul.f32 %v4753_v30, %v4689_v36  ;;  %v4688_v5 = vmul.f32 %v4599_v55, %v4528_v1  ;;  %v7753_v30 = vld [vmem:[%s7991_s27 + $0x40] sm:$0xff] }
 0x642   : > { %v4530_v1 = vsub.f32 %v7753_v30, %v9392_v49 }
 0x643   : > { %v4752_v12 = vmul.f32 0.5, %v4688_v5  ;;  %4856 = vrot.lane.b32.xlu1 %v4785_v41, %s7840_s25 }
 0x644   : > { %v4605_v45 = vpop.permute.xlu1 %4604 }
 0x645   : > { %v4784_v4 = vmul.f32 %v4752_v12, %v4688_v5  ;;  %v4691_v51 = vmul.f32 %v4605_v45, %v4531_v62  ;;  %v4621_v35 = vpop.permute.xlu0 %4620  ;;  %v4538_v5 = vsub.f32 %v7754_v53, %v9410_v56 }
 0x646   : > { %v4699_v19 = vmul.f32 %v4621_v35, %v4539_v0  ;;  %v7755_v0 = vld [vmem:[%s7991_s27 + $0x58] sm:$0xff] }
 0x647   : > { %v4755_v36 = vmul.f32 0.5, %v4691_v51  ;;  %4854 = vrot.lane.b32.xlu1 %v4784_v4, %s7840_s25  ;;  %v4533_v4 = vsub.f32 %v7755_v0, %v9403_v15 }
 0x648   : > { %v4603_v55 = vpop.permute.xlu1 %4602  ;;  %v4763_v41 = vmul.f32 0.5, %v4699_v19 }
 0x649   : > { %v4787_v33 = vmul.f32 %v4755_v36, %v4691_v51  ;;  %v4690_v12 = vmul.f32 %v4603_v55, %v4530_v1  ;;  %v4619_v42 = vpop.permute.xlu0 %4618  ;;  %v7756_v51 = vld [vmem:[%s7991_s27 + $0x98] sm:$0xff] }
 0x64a   : > { %v4795_v39 = vmul.f32 %v4763_v41, %v4699_v19  ;;  %v4698_v62 = vmul.f32 %v4619_v42, %v4538_v5  ;;  %v4541_v36 = vsub.f32 %v7756_v51, %v9423_v52 }
 0x64b   : > { %v4754_v45 = vmul.f32 0.5, %v4690_v12  ;;  %4860 = vrot.lane.b32.xlu1 %v4787_v33, %s7840_s25  ;;  %v7757_v33 = vld [vmem:[%s7991_s27 + $0x50] sm:$0xff] }
 0x64c   : > { %v4609_v35 = vpop.permute.xlu1 %4608  ;;  %v4762_v30 = vmul.f32 0.5, %v4698_v62  ;;  %4876 = vrot.lane.b32.xlu0 %v4795_v39, %s7840_s25  ;;  %v4532_v53 = vsub.f32 %v7757_v33, %v9417_v14  ;;  %v7758_v39 = vld [vmem:[%s7991_s27 + $0x90] sm:$0xff] }
 0x64d   : > { %v4786_v31 = vmul.f32 %v4754_v45, %v4690_v12  ;;  %v4693_v1 = vmul.f32 %v4609_v35, %v4533_v4  ;;  %v4625_v55 = vpop.permute.xlu0 %4624  ;;  %v4540_v45 = vsub.f32 %v7758_v39, %v9428_v44 }
 0x64e   : > { %v4794_v19 = vmul.f32 %v4762_v30, %v4698_v62  ;;  %v4701_v42 = vmul.f32 %v4625_v55, %v4541_v36 }
 0x64f   : > { %v4757_v41 = vmul.f32 0.5, %v4693_v1  ;;  %4858 = vrot.lane.b32.xlu1 %v4786_v31, %s7840_s25  ;;  %v7759_v31 = vld [vmem:[%s7991_s27 + $0x68] sm:$0xff] }
 0x650   : > { %v4607_v5 = vpop.permute.xlu1 %4606  ;;  %v4765_v0 = vmul.f32 0.5, %v4701_v42  ;;  %4874 = vrot.lane.b32.xlu0 %v4794_v19, %s7840_s25  ;;  %v4535_v36 = vsub.f32 %v7759_v31, %v9436_v63  ;;  %v7760_v19 = vld [vmem:[%s7991_s27 + $0xa8] sm:$0xff] }
 0x651   : > { %v4789_v12 = vmul.f32 %v4757_v41, %v4693_v1  ;;  %v4692_v4 = vmul.f32 %v4607_v5, %v4532_v53  ;;  %v4623_v35 = vpop.permute.xlu0 %4622  ;;  %v4543_v41 = vsub.f32 %v7760_v19, %v9442_v27 }
 0x652   : > { %v4797_v62 = vmul.f32 %v4765_v0, %v4701_v42  ;;  %v4700_v30 = vmul.f32 %v4623_v35, %v4540_v45 }
 0x653   : > { %v4756_v51 = vmul.f32 0.5, %v4692_v4  ;;  %4864 = vrot.lane.b32.xlu1 %v4789_v12, %s7840_s25  ;;  %v7761_v12 = vld [vmem:[%s7991_s27 + $0x60] sm:$0xff] }
 0x654   : > { %v4613_v55 = vpop.permute.xlu1 %4612  ;;  %v4764_v33 = vmul.f32 0.5, %v4700_v30  ;;  %4880 = vrot.lane.b32.xlu0 %v4797_v62, %s7840_s25  ;;  %v4534_v45 = vsub.f32 %v7761_v12, %v9449_v37  ;;  %v7762_v62 = vld [vmem:[%s7991_s27 + $0xa0] sm:$0xff] }
 0x655   : > { %v4788_v1 = vmul.f32 %v4756_v51, %v4692_v4  ;;  %v4695_v53 = vmul.f32 %v4613_v55, %v4535_v36  ;;  %v4629_v5 = vpop.permute.xlu0 %4628  ;;  %v4542_v51 = vsub.f32 %v7762_v62, %v9455_v20 }
 0x656   : > { %v4796_v42 = vmul.f32 %v4764_v33, %v4700_v30  ;;  %v4703_v0 = vmul.f32 %v4629_v5, %v4543_v41 }
 0x657   : > { %v4759_v39 = vmul.f32 0.5, %v4695_v53  ;;  %4862 = vrot.lane.b32.xlu1 %v4788_v1, %s7840_s25  ;;  %v7763_v1 = vld [vmem:[%s7991_s27 + $0x78] sm:$0xff] }
 0x658   : > { %v4611_v35 = vpop.permute.xlu1 %4610  ;;  %v4767_v31 = vmul.f32 0.5, %v4703_v0  ;;  %4878 = vrot.lane.b32.xlu0 %v4796_v42, %s7840_s25  ;;  %v4537_v41 = vsub.f32 %v7763_v1, %v9462_v6  ;;  %v7764_v42 = vld [vmem:[%s7991_s27 + $0xb8] sm:$0xff] }
 0x659   : > { %v4791_v4 = vmul.f32 %v4759_v39, %v4695_v53  ;;  %v4694_v36 = vmul.f32 %v4611_v35, %v4534_v45  ;;  %v4627_v55 = vpop.permute.xlu0 %4626  ;;  %v4545_v39 = vsub.f32 %v7764_v42, %v9468_v29 }
 0x65a   : > { %v4799_v30 = vmul.f32 %v4767_v31, %v4703_v0  ;;  %v4702_v33 = vmul.f32 %v4627_v55, %v4542_v51 }
 0x65b   : > { %v4758_v19 = vmul.f32 0.5, %v4694_v36  ;;  %4868 = vrot.lane.b32.xlu1 %v4791_v4, %s7840_s25  ;;  %v7765_v4 = vld [vmem:[%s7991_s27 + $0x70] sm:$0xff] }
 0x65c   : > { %v4617_v5 = vpop.permute.xlu1 %4616  ;;  %v4766_v12 = vmul.f32 0.5, %v4702_v33  ;;  %4884 = vrot.lane.b32.xlu0 %v4799_v30, %s7840_s25  ;;  %v4536_v51 = vsub.f32 %v7765_v4, %v9476_v54  ;;  %v7766_v30 = vld [vmem:[%s7991_s27 + $0xb0] sm:$0xff] }
 0x65d   : > { %v4790_v53 = vmul.f32 %v4758_v19, %v4694_v36  ;;  %v4697_v45 = vmul.f32 %v4617_v5, %v4537_v41  ;;  %v4633_v35 = vpop.permute.xlu0 %4632  ;;  %v4544_v19 = vsub.f32 %v7766_v30, %v9483_v24 }
 0x65e   : > { %v4798_v0 = vmul.f32 %v4766_v12, %v4702_v33  ;;  %v4705_v31 = vmul.f32 %v4633_v35, %v4545_v39  ;;  %v7767_v35 = vld [vmem:[%s7991_s27 + $0xc8] sm:$0xff] }
 0x65f   : > { %v4761_v62 = vmul.f32 0.5, %v4697_v45  ;;  %4866 = vrot.lane.b32.xlu1 %v4790_v53, %s7840_s25 }
 0x660   : > { %v4615_v55 = vpop.permute.xlu1 %4614  ;;  %v4769_v1 = vmul.f32 0.5, %v4705_v31  ;;  %4882 = vrot.lane.b32.xlu0 %v4798_v0, %s7840_s25 }
 0x661   : > { %v4793_v36 = vmul.f32 %v4761_v62, %v4697_v45  ;;  %v4696_v42 = vmul.f32 %v4615_v55, %v4536_v51  ;;  %v4631_v41 = vpop.permute.xlu0 %4630  ;;  %v4547_v45 = vsub.f32 %v7767_v35, %v9494_v40 }
 0x662   : > { %v4801_v33 = vmul.f32 %v4769_v1, %v4705_v31  ;;  %v4704_v5 = vmul.f32 %v4631_v41, %v4544_v19  ;;  %v7768_v31 = vld [vmem:[%s7991_s27 + $0xc0] sm:$0xff] }
 0x663   : > { %v4760_v12 = vmul.f32 0.5, %v4696_v42  ;;  %4872 = vrot.lane.b32.xlu1 %v4793_v36, %s7840_s25  ;;  %v4546_v55 = vsub.f32 %v7768_v31, %v9504_v26 }
 0x664   : > { %v4768_v53 = vmul.f32 0.5, %v4704_v5  ;;  %4888 = vrot.lane.b32.xlu0 %v4801_v33, %s7840_s25 }
 0x665   : > { %v4792_v39 = vmul.f32 %v4760_v12, %v4696_v42  ;;  %v4637_v0 = vpop.permute.xlu0 %4636  ;;  %v7769_v42 = vld [vmem:[%s7991_s27 + $0xd8] sm:$0xff] }
 0x666   : > { %v4800_v62 = vmul.f32 %v4768_v53, %v4704_v5  ;;  %v4707_v4 = vmul.f32 %v4637_v0, %v4547_v45  ;;  %v4549_v41 = vsub.f32 %v7769_v42, %v9512_v38 }
 0x667   : > { %4870 = vrot.lane.b32.xlu1 %v4792_v39, %s7840_s25  ;;  %v7770_v39 = vld [vmem:[%s7991_s27 + $0xd0] sm:$0xff] }
 0x668   : > { %v4771_v51 = vmul.f32 0.5, %v4707_v4  ;;  %4886 = vrot.lane.b32.xlu0 %v4800_v62, %s7840_s25 }
 0x669   : > { %v4635_v1 = vpop.permute.xlu0 %4634 }
 0x66a   : > { %v4803_v36 = vmul.f32 %v4771_v51, %v4707_v4  ;;  %v4706_v30 = vmul.f32 %v4635_v1, %v4546_v55  ;;  %v7771_v4 = vld [vmem:[%s7991_s27 + $0xe8] sm:$0xff] }
 0x66b   : > { %2593 = vrot.lane.b32.xlu1 %v8561_v11, %s11268_s19  ;;  %v4548_v11 = vsub.f32 %v7770_v39, %v9520_v16 }
 0x66c   : > { %v4770_v19 = vmul.f32 0.5, %v4706_v30  ;;  %4892 = vrot.lane.b32.xlu0 %v4803_v36, %s7840_s25  ;;  %v7772_v36 = vld [vmem:[%s7991_s27 + $0xe0] sm:$0xff] }
 0x66d   : > { %v4641_v33 = vpop.permute.xlu0 %4640 }
 0x66e   : > { %v4802_v5 = vmul.f32 %v4770_v19, %v4706_v30  ;;  %v4709_v12 = vmul.f32 %v4641_v33, %v4549_v41  ;;  %v7773_v33 = vld [vmem:[%s7991_s27 + $0xf8] sm:$0xff] }
 0x66f   : > { %2591 = vrot.lane.b32.xlu1 %v8566_v22, %s11268_s19  ;;  %v4551_v22 = vsub.f32 %v7771_v4, %v9528_v61 }
 0x670   : > { %v4773_v53 = vmul.f32 0.5, %v4709_v12  ;;  %4890 = vrot.lane.b32.xlu0 %v4802_v5, %s7840_s25  ;;  %v4553_v5 = vsub.f32 %v7773_v33, %v9544_v23 }
 0x671   : > { %v4639_v35 = vpop.permute.xlu0 %4638 }
 0x672   : > { %v4805_v45 = vmul.f32 %v4773_v53, %v4709_v12  ;;  %v4708_v0 = vmul.f32 %v4639_v35, %v4548_v11  ;;  %v7774_v11 = vld [vmem:[%s7991_s27 + $0xf0] sm:$0xff]  ;;  %s7841_s27 = smov 116  }
 0x673   : > { %2589 = vrot.lane.b32.xlu1 %v8547_v59, %s11268_s19  ;;  %v4550_v59 = vsub.f32 %v7772_v36, %v9536_v50  ;;  %v4552_v35 = vsub.f32 %v7774_v11, %v9551_v21  ;;  %v11270_v36 = vsub.f32 0.0, %v9392_v49 }
 0x674   : > { %v4772_v62 = vmul.f32 0.5, %v4708_v0  ;;  %4896 = vrot.lane.b32.xlu0 %v4805_v45, %s7840_s25 }
 0x675   : > { %v4645_v51 = vpop.permute.xlu0 %4644 }
 0x676   : > { %v4804_v31 = vmul.f32 %v4772_v62, %v4708_v0  ;;  %v4711_v55 = vmul.f32 %v4645_v51, %v4551_v22 }
 0x677   : > { %2587 = vrot.lane.b32.xlu1 %v8553_v10, %s11268_s19 }
 0x678   : > { %v4775_v1 = vmul.f32 0.5, %v4711_v55  ;;  %4894 = vrot.lane.b32.xlu0 %v4804_v31, %s7840_s25  ;;  %v11269_v31 = vsub.f32 0.0, %v9384_v2 }
 0x679   : > { %v4643_v30 = vpop.permute.xlu0 %4642 }
 0x67a   : > { %v4807_v19 = vmul.f32 %v4775_v1, %v4711_v55  ;;  %v4710_v42 = vmul.f32 %v4643_v30, %v4550_v59  ;;  %v6461_v59 = vadd.f32 -0.9189385, %v11270_v36 }
 0x67b   : > { %2585 = vrot.lane.b32.xlu1 %v8537_v58, %s11268_s19 }
 0x67c   : > { %v4774_v41 = vmul.f32 0.5, %v4710_v42  ;;  %4900 = vrot.lane.b32.xlu0 %v4807_v19, %s7840_s25 }
 0x67d   : > { %v4649_v10 = vpop.permute.xlu0 %4648 }
 0x67e   : > { %v4806_v12 = vmul.f32 %v4774_v41, %v4710_v42  ;;  %v4713_v53 = vmul.f32 %v4649_v10, %v4553_v5  ;;  %v11271_v41 = vsub.f32 0.0, %v9403_v15 }
 0x67f   : > { %2583 = vrot.lane.b32.xlu1 %v8542_v43, %s11268_s19 }
 0x680   : > { %v4777_v39 = vmul.f32 0.5, %v4713_v53  ;;  %4898 = vrot.lane.b32.xlu0 %v4806_v12, %s7840_s25  ;;  %v6464_v33 = vadd.f32 -0.9189385, %v11271_v41 }
 0x681   : > { %v4647_v45 = vpop.permute.xlu0 %4646 }
 0x682   : > { %v4809_v58 = vmul.f32 %v4777_v39, %v4713_v53  ;;  %v4712_v0 = vmul.f32 %v4647_v45, %v4552_v35  ;;  %v11272_v53 = vsub.f32 0.0, %v9417_v14 }
 0x684   : > { %v4776_v62 = vmul.f32 0.5, %v4712_v0  ;;  %4904 = vrot.lane.b32.xlu0 %v4809_v58, %s7840_s25  ;;  %v6463_v39 = vadd.f32 -0.9189385, %v11272_v53  ;;  %v11273_v58 = vsub.f32 0.0, %v9436_v63 }
 0x686   : > { %v4808_v4 = vmul.f32 %v4776_v62, %v4712_v0  ;;  %v6466_v0 = vadd.f32 -0.9189385, %v11273_v58  ;;  %v11277_v58 = vsub.f32 0.0, %v9494_v40  ;;  %v667_v40 = vld [vmem:[%s9890_s26 + $0xb0] sm:$0xff] }
 0x688   : > { %4902 = vrot.lane.b32.xlu0 %v4808_v4, %s7840_s25 }
 0x68c   : > { %2625 = vrot.lane.b32.xlu0 %v8666_v32, %s11268_s19 }
 0x690   : > { %2623 = vrot.lane.b32.xlu0 %v8670_v28, %s11268_s19 }
 0x694   : > { %2621 = vrot.lane.b32.xlu0 %v8655_v48, %s11268_s19 }
 0x698   : > { %2619 = vrot.lane.b32.xlu0 %v8659_v13, %s11268_s19 }
 0x69c   : > { %2617 = vrot.lane.b32.xlu0 %v8643_v34, %s11268_s19 }
 0x69d   : > { %v9691_v43 = vpop.permute.xlu1 %4844 }
 0x6a0   : > { %2615 = vrot.lane.b32.xlu0 %v8647_v57, %s11268_s19  ;;  %v6462_v57 = vadd.f32 -0.9189385, %v11269_v31 }
 0x6a1   : > { %v9709_v34 = vpop.permute.xlu0 %4842 }
 0x6a4   : > { %2613 = vrot.lane.b32.xlu0 %v8631_v17, %s11268_s19 }
 0x6a5   : > { %v9697_v32 = vpop.permute.xlu1 %4848 }
 0x6a9   : > { %v9699_v28 = vpop.permute.xlu1 %4846 }
 0x6ad   : > { %v9701_v22 = vpop.permute.xlu1 %4852 }
 0x6b1   : > { %v9703_v48 = vpop.permute.xlu1 %4850 }
 0x6b5   : > { %v9705_v13 = vpop.permute.xlu1 %4856 }
 0x6b9   : > { %v9707_v51 = vpop.permute.xlu1 %4854 }
 0x6bd   : > { %v4861_v55 = vpop.permute.xlu1 %4860 }
 0x6be   : > { %v4947_v1 = vsub.f32 %v6462_v57, %v4861_v55  ;;  %v9713_v17 = vpop.permute.xlu0 %4876  ;;  %v11274_v57 = vsub.f32 0.0, %v9449_v37 }
 0x6c0   : > { %5020 = vrot.lane.b32.xlu1 %v4947_v1, %s7841_s27  ;;  %v6465_v55 = vadd.f32 -0.9189385, %v11274_v57  ;;  %v11278_v57 = vsub.f32 0.0, %v9504_v26  ;;  %v11323_v26 = vld [vmem:[#allocation115_spill] sm:$0xff] }
 0x6c1   : > { %v4859_v30 = vpop.permute.xlu1 %4858 }
 0x6c2   : > { %v4946_v19 = vsub.f32 %v6461_v59, %v4859_v30  ;;  %v9718_v42 = vpop.permute.xlu0 %4874  ;;  %v11275_v30 = vsub.f32 0.0, %v9462_v6 }
 0x6c4   : > { %5018 = vrot.lane.b32.xlu1 %v4946_v19, %s7841_s27  ;;  %v6468_v19 = vadd.f32 -0.9189385, %v11275_v30  ;;  %v11279_v30 = vsub.f32 0.0, %v9512_v38  ;;  %v665_v38 = vld [vmem:[%s9890_s26 + $0xa0] sm:$0xff] }
 0x6c5   : > { %v4865_v5 = vpop.permute.xlu1 %4864 }
 0x6c6   : > { %v4949_v10 = vsub.f32 %v6464_v33, %v4865_v5  ;;  %v9723_v12 = vpop.permute.xlu0 %4880 }
 0x6c8   : > { %5024 = vrot.lane.b32.xlu1 %v4949_v10, %s7841_s27  ;;  %v11276_v10 = vsub.f32 0.0, %v9476_v54 }
 0x6c9   : > { %v4863_v11 = vpop.permute.xlu1 %4862 }
 0x6ca   : > { %v4948_v35 = vsub.f32 %v6463_v39, %v4863_v11  ;;  %v9728_v45 = vpop.permute.xlu0 %4878  ;;  %v6467_v53 = vadd.f32 -0.9189385, %v11276_v10  ;;  %v11280_v10 = vsub.f32 0.0, %v9520_v16  ;;  %v664_v16 = vld [vmem:[%s9890_s26 + $0x98] sm:$0xff] }
 0x6cc   : > { %5022 = vrot.lane.b32.xlu1 %v4948_v35, %s7841_s27 }
 0x6cd   : > { %v4869_v62 = vpop.permute.xlu1 %4868 }
 0x6ce   : > { %v4951_v4 = vsub.f32 %v6466_v0, %v4869_v62  ;;  %v9733_v31 = vpop.permute.xlu0 %4884  ;;  %v6478_v0 = vadd.f32 -0.9189385, %v11277_v58  ;;  %v11281_v58 = vsub.f32 0.0, %v9528_v61 }
 0x6d0   : > { %5028 = vrot.lane.b32.xlu1 %v4951_v4, %s7841_s27 }
 0x6d1   : > { %v4867_v1 = vpop.permute.xlu1 %4866 }
 0x6d2   : > { %v4950_v36 = vsub.f32 %v6465_v55, %v4867_v1  ;;  %v9738_v59 = vpop.permute.xlu0 %4882  ;;  %v6477_v55 = vadd.f32 -0.9189385, %v11278_v57  ;;  %v11282_v57 = vsub.f32 0.0, %v9536_v50 }
 0x6d4   : > { %5026 = vrot.lane.b32.xlu1 %v4950_v36, %s7841_s27 }
 0x6d5   : > { %v4873_v41 = vpop.permute.xlu1 %4872 }
 0x6d6   : > { %v4953_v33 = vsub.f32 %v6468_v19, %v4873_v41  ;;  %v4889_v5 = vpop.permute.xlu0 %4888  ;;  %v6480_v19 = vadd.f32 -0.9189385, %v11279_v30  ;;  %v11283_v30 = vsub.f32 0.0, %v9468_v29  ;;  %v11324_v29 = vld [vmem:[#allocation47_spill] sm:$0xff] }
 0x6d8   : > { %5032 = vrot.lane.b32.xlu1 %v4953_v33, %s7841_s27 }
 0x6d9   : > { %v4871_v39 = vpop.permute.xlu1 %4870 }
 0x6da   : > { %v4952_v11 = vsub.f32 %v6467_v53, %v4871_v39  ;;  %v4887_v35 = vpop.permute.xlu0 %4886  ;;  %v6479_v53 = vadd.f32 -0.9189385, %v11280_v10 }
 0x6dc   : > { %5030 = vrot.lane.b32.xlu1 %v4952_v11, %s7841_s27 }
 0x6de   : > { %v4893_v62 = vpop.permute.xlu0 %4892 }
 0x6df   : > { %v4963_v4 = vsub.f32 %v6478_v0, %v4893_v62  ;;  %v6482_v0 = vadd.f32 -0.9189385, %v11281_v58 }
 0x6e1   : > { %5052 = vrot.lane.b32.xlu0 %v4963_v4, %s7841_s27 }
 0x6e2   : > { %v4891_v1 = vpop.permute.xlu0 %4890 }
 0x6e3   : > { %v4962_v36 = vsub.f32 %v6477_v55, %v4891_v1  ;;  %v6481_v55 = vadd.f32 -0.9189385, %v11282_v57 }
 0x6e5   : > { %5050 = vrot.lane.b32.xlu0 %v4962_v36, %s7841_s27 }
 0x6e6   : > { %v4897_v41 = vpop.permute.xlu0 %4896 }
 0x6e7   : > { %v4965_v33 = vsub.f32 %v6480_v19, %v4897_v41  ;;  %v6476_v19 = vadd.f32 -0.9189385, %v11283_v30  ;;  %v11284_v41 = vsub.f32 0.0, %v9544_v23  ;;  %v11288_v30 = vsub.f32 0.0, %v9380_v3 }
 0x6e9   : > { %5056 = vrot.lane.b32.xlu0 %v4965_v33, %s7841_s27  ;;  %v6484_v33 = vadd.f32 -0.9189385, %v11284_v41 }
 0x6ea   : > { %v4895_v39 = vpop.permute.xlu0 %4894 }
 0x6eb   : > { %v4964_v11 = vsub.f32 %v6479_v53, %v4895_v39  ;;  %v4961_v53 = vsub.f32 %v6476_v19, %v4889_v5  ;;  %v6459_v19 = vadd.f32 -0.9189385, %v11288_v30 }
 0x6ed   : > { %5054 = vrot.lane.b32.xlu0 %v4964_v11, %s7841_s27  ;;  %v11285_v11 = vsub.f32 0.0, %v9551_v21  ;;  %v11321_v21 = vld [vmem:[#allocation48_spill] sm:$0xff] }
 0x6ee   : > { %v4901_v62 = vpop.permute.xlu0 %4900 }
 0x6ef   : > { %v4967_v4 = vsub.f32 %v6482_v0, %v4901_v62  ;;  %v6483_v58 = vadd.f32 -0.9189385, %v11285_v11  ;;  %v11294_v11 = vld [vmem:[#allocation12_spill] sm:$0xff] }
 0x6f1   : > { %5060 = vrot.lane.b32.xlu0 %v4967_v4, %s7841_s27  ;;  %v11286_v4 = vsub.f32 0.0, %v9373_v60 }
 0x6f2   : > { %v4899_v1 = vpop.permute.xlu0 %4898 }
 0x6f3   : > { %v4966_v36 = vsub.f32 %v6481_v55, %v4899_v1  ;;  %v6460_v57 = vadd.f32 -0.9189385, %v11286_v4  ;;  %v11287_v55 = vsub.f32 0.0, %v9483_v24  ;;  %v11325_v24 = vld [vmem:[#allocation45_spill] sm:$0xff] }
 0x6f5   : > { %5058 = vrot.lane.b32.xlu0 %v4966_v36, %s7841_s27  ;;  %v4945_v5 = vsub.f32 %v6460_v57, %v9705_v13  ;;  %v6475_v1 = vadd.f32 -0.9189385, %v11287_v55  ;;  %v11289_v13 = vsub.f32 0.0, %v9442_v27  ;;  %v11297_v57 = vld [vmem:[#allocation84_spill] sm:$0xff]  ;;  %v11327_v27 = vld [vmem:[#allocation78_spill] sm:$0xff] }
 0x6f6   : > { %v4905_v10 = vpop.permute.xlu0 %4904 }
 0x6f7   : > { %v4969_v39 = vsub.f32 %v6484_v33, %v4905_v10  ;;  %v4960_v36 = vsub.f32 %v6475_v1, %v4887_v35  ;;  %v6474_v41 = vadd.f32 -0.9189385, %v11289_v13  ;;  %v11290_v35 = vsub.f32 0.0, %v9361_v8  ;;  %v11299_v1 = vld [vmem:[#allocation10_spill] sm:$0xff]  ;;  %v11302_v13 = vld [vmem:[#allocation85_spill] sm:$0xff] }
 0x6f9   : > { %5048 = vrot.lane.b32.xlu0 %v4961_v53, %s7841_s27  ;;  %5064 = vrot.lane.b32.xlu1 %v4969_v39, %s7841_s27  ;;  %v6458_v33 = vadd.f32 -0.9189385, %v11290_v35  ;;  %v11292_v53 = vld [vmem:[#allocation17_spill] sm:$0xff]  ;;  %v11304_v35 = vld [vmem:[#allocation11_spill] sm:$0xff] }
 0x6fa   : > { %v4903_v0 = vpop.permute.xlu0 %4902 }
 0x6fb   : > { %v4968_v62 = vsub.f32 %v6483_v58, %v4903_v0  ;;  %v11295_v58 = vsub.f32 0.0, %v9423_v52  ;;  %v11331_v52 = vld [vmem:[#allocation44_spill] sm:$0xff] }
 0x6fd   : > { %5062 = vrot.lane.b32.xlu0 %v4968_v62, %s7841_s27  ;;  %2581 = vrot.lane.b32.xlu1 %v8527_v7, %s11268_s19  ;;  %v4944_v7 = vsub.f32 %v6459_v19, %v9707_v51  ;;  %v11291_v51 = vsub.f32 0.0, %v9455_v20  ;;  %v6472_v0 = vadd.f32 -0.9189385, %v11295_v58  ;;  %v11296_v62 = vld [vmem:[#allocation15_spill] sm:$0xff]  ;;  %v11301_v19 = vld [vmem:[#allocation16_spill] sm:$0xff] }
 0x6ff   : > { %v6473_v10 = vadd.f32 -0.9189385, %v11291_v51 }
 0x701   : > { %2611 = vrot.lane.b32.xlu0 %v8635_v9, %s11268_s19  ;;  %5016 = vrot.lane.b32.xlu1 %v4945_v5, %s7841_s27  ;;  %v4959_v9 = vsub.f32 %v6474_v41, %v9733_v31  ;;  %v11293_v31 = vsub.f32 0.0, %v9367_v25  ;;  %v11298_v5 = vsub.f32 0.0, %v11297_v57  ;;  %v11303_v41 = vsub.f32 0.0, %v11302_v13 }
 0x703   : > { %v6457_v39 = vadd.f32 -0.9189385, %v11293_v31  ;;  %v6456_v55 = vadd.f32 -0.9189385, %v11298_v5 }
 0x705   : > { %5046 = vrot.lane.b32.xlu0 %v4960_v36, %s7841_s27  ;;  %2579 = vrot.lane.b32.xlu1 %v8530_v46, %s11268_s19  ;;  %v4943_v46 = vsub.f32 %v6458_v33, %v9701_v22  ;;  %v4942_v22 = vsub.f32 %v6457_v39, %v9703_v48  ;;  %v4941_v48 = vsub.f32 %v6456_v55, %v9697_v32  ;;  %v11300_v36 = vsub.f32 0.0, %v9428_v44  ;;  %v9855_v39 = vpop.permute.xlu0 %2625 }
 0x707   : > { %v6471_v30 = vadd.f32 -0.9189385, %v11300_v36 }
 0x709   : > { %2609 = vrot.lane.b32.xlu0 %v8619_v18, %s11268_s19  ;;  %5014 = vrot.lane.b32.xlu1 %v4944_v7, %s7841_s27  ;;  %v4958_v18 = vsub.f32 %v6473_v10, %v9738_v59  ;;  %v4957_v59 = vsub.f32 %v6472_v0, %v9723_v12  ;;  %v4956_v7 = vsub.f32 %v6471_v30, %v9728_v45  ;;  %v7842_v45 = vmov -1.0   ;;  %v9878_v36 = vpop.permute.xlu0 %2623  ;;  %v11314_v30 = vld [vmem:[#allocation14_spill] sm:$0xff] }
 0x70d   : > { %5044 = vrot.lane.b32.xlu0 %v4959_v9, %s7841_s27  ;;  %2577 = vrot.lane.b32.xlu1 %v8515_v47, %s11268_s19  ;;  %v9813_v47 = vpop.permute.xlu1 %2593  ;;  %v6455_v9 = vadd.f32 -0.9189385, %v11303_v41  ;;  %v11316_v41 = vld [vmem:[#allocation83_spill] sm:$0xff] }
 0x70f   : > { %v4940_v32 = vsub.f32 %v6455_v9, %v9699_v28  ;;  %v11317_v9 = vsub.f32 0.0, %v11316_v41 }
 0x711   : > { %2607 = vrot.lane.b32.xlu0 %v11292_v53, %s11268_s19  ;;  %5012 = vrot.lane.b32.xlu1 %v4943_v46, %s7841_s27  ;;  %v9822_v4 = vpop.permute.xlu1 %2591  ;;  %v11305_v46 = vld [vmem:[#allocation93_spill] sm:$0xff] }
 0x712   : > { %v11306_v51 = vsub.f32 0.0, %v11305_v46  ;;  %v11307_v53 = vld [vmem:[#allocation13_spill] sm:$0xff] }
 0x713   : > { %v11343_v46 = vld [vmem:[#allocation41_spill] sm:$0xff] }
 0x714   : > { %v6470_v10 = vadd.f32 -0.9189385, %v11306_v51 }
 0x715   : > { %5042 = vrot.lane.b32.xlu0 %v4958_v18, %s7841_s27  ;;  %2575 = vrot.lane.b32.xlu1 %v11294_v11, %s11268_s19  ;;  %v9835_v12 = vpop.permute.xlu1 %2589  ;;  %v9852_v18 = vsel %vm2703_vm4, 5.0, %v7842_v45  ;;  %v647_v45 = vld [vmem:[%s9890_s26 + $0x10] sm:$0xff] }
 0x716   : > { %11308 = vst [vmem:[#allocation17_spill] sm:$0xff] %v9852_v18  ;;  %v4955_v31 = vsub.f32 %v6470_v10, %v9713_v17  ;;  %v5133_v28 = vsel %vm5131_vm5, %v9852_v18, 0  ;;  %6765 = vmatprep.mubr.msk.f32.mxu1 %vm5131_vm5, %v9852_v18  ;;  %v9902_v10 = vpop.permute.xlu0 %2621  ;;  %v11345_v18 = vld [vmem:[#allocation42_spill] sm:$0xff] }
 0x717   : > { %v9861_v11 = vsub.f32 %v5133_v28, %v5133_v28 }
 0x719   : > { %2605 = vrot.lane.b32.xlu0 %v11296_v62, %s11268_s19  ;;  %5010 = vrot.lane.b32.xlu1 %v4942_v22, %s7841_s27  ;;  %v9844_v33 = vpop.permute.xlu1 %2587  ;;  %v11309_v22 = vld [vmem:[#allocation82_spill] sm:$0xff]  ;;  %v11311_v62 = vld [vmem:[#allocation8_spill] sm:$0xff] }
 0x71a   : > { %v11310_v58 = vsub.f32 0.0, %v11309_v22  ;;  %v9910_v28 = vpop.permute.xlu0 %2619 }
 0x71c   : > { %v6454_v0 = vadd.f32 -0.9189385, %v11310_v58  ;;  %v649_v58 = vld [vmem:[%s9890_s26 + $0x20] sm:$0xff] }
 0x71d   : > { %5040 = vrot.lane.b32.xlu0 %v4957_v59, %s7841_s27  ;;  %2573 = vrot.lane.b32.xlu1 %v11299_v1, %s11268_s19  ;;  %v9868_v17 = vpop.permute.xlu1 %2585  ;;  %v9871_v59 = vand.u32 4294901760, %v9861_v11  ;;  %v11313_v1 = vsub.f32 0.0, %v9410_v56  ;;  %v11346_v56 = vld [vmem:[#allocation40_spill] sm:$0xff] }
 0x71e   : > { %v4939_v5 = vsub.f32 %v6454_v0, %v9691_v43  ;;  %v648_v0 = vld [vmem:[%s9890_s26 + $0x18] sm:$0xff] }
 0x71f   : > { %11312 = vst [vmem:[#allocation12_spill] sm:$0xff] %v9871_v59  ;;  %v5331_v55 = vsub.f32 %v9861_v11, %v9871_v59 }
 0x721   : > { %2603 = vrot.lane.b32.xlu0 %v11301_v19, %s11268_s19  ;;  %5008 = vrot.lane.b32.xlu1 %v4941_v48, %s7841_s27  ;;  %v6469_v48 = vadd.f32 -0.9189385, %v11313_v1  ;;  %v9883_v19 = vand.u32 4294901760, %v5331_v55  ;;  %v9892_v43 = vpop.permute.xlu1 %2583  ;;  %v9922_v55 = vpop.permute.xlu0 %2617 }
 0x723   : > { %6731 = vmatprep.mubr.f32.mxu0 %v9883_v19 }
 0x725   : > { %5038 = vrot.lane.b32.xlu0 %v4956_v7, %s7841_s27  ;;  %2571 = vrot.lane.b32.xlu1 %v11304_v35, %s11268_s19  ;;  %v4954_v7 = vsub.f32 %v6469_v48, %v9718_v42  ;;  %v6453_v35 = vadd.f32 -0.9189385, %v11317_v9  ;;  %v11318_v42 = vld [vmem:[#allocation9_spill] sm:$0xff]  ;;  %v653_v48 = vld [vmem:[%s9890_s26 + $0x40] sm:$0xff] }
 0x727   : > { %v4938_v51 = vsub.f32 %v6453_v35, %v9709_v34  ;;  %v655_v35 = vld [vmem:[%s9890_s26 + $0x50] sm:$0xff] }
 0x729   : > { %2601 = vrot.lane.b32.xlu0 %v11307_v53, %s11268_s19  ;;  %5006 = vrot.lane.b32.xlu1 %v4940_v32, %s7841_s27  ;;  %v645_v32 = vld [vmem:[%s9890_s26] sm:$0xff] }
 0x72d   : > { %5036 = vrot.lane.b32.xlu0 %v4955_v31, %s7841_s27  ;;  %2569 = vrot.lane.b32.xlu1 %v11311_v62, %s11268_s19  ;;  %v646_v31 = vld [vmem:[%s9890_s26 + $0x8] sm:$0xff]  ;;  %v651_v62 = vld [vmem:[%s9890_s26 + $0x30] sm:$0xff] }
 0x731   : > { %2599 = vrot.lane.b32.xlu0 %v11314_v30, %s11268_s19  ;;  %5004 = vrot.lane.b32.xlu1 %v4939_v5, %s7841_s27  ;;  %v650_v5 = vld [vmem:[%s9890_s26 + $0x28] sm:$0xff]  ;;  %v652_v30 = vld [vmem:[%s9890_s26 + $0x38] sm:$0xff] }
 0x732   : > { %v9904_v53 = vpop.permute.xlu1 %5020 }
 0x735   : > { %5034 = vrot.lane.b32.xlu0 %v4954_v7, %s7841_s27  ;;  %2567 = vrot.lane.b32.xlu1 %v11318_v42, %s11268_s19  ;;  %v9930_v7 = vpop.permute.xlu0 %2615  ;;  %v654_v42 = vld [vmem:[%s9890_s26 + $0x48] sm:$0xff] }
 0x736   : > { %v9914_v34 = vpop.permute.xlu1 %5018 }
 0x739   : > { %4202 = vrot.lane.b32.xlu0 %v645_v32, %s7840_s25  ;;  %5002 = vrot.lane.b32.xlu1 %v4938_v51, %s7841_s27  ;;  %v657_v32 = vld [vmem:[%s9890_s26 + $0x60] sm:$0xff]  ;;  %v656_v51 = vld [vmem:[%s9890_s26 + $0x58] sm:$0xff] }
 0x73a   : > { %v9924_v1 = vpop.permute.xlu1 %5024 }
 0x73d   : > { %4206 = vrot.lane.b32.xlu0 %v647_v45, %s7840_s25  ;;  %4204 = vrot.lane.b32.xlu1 %v646_v31, %s7840_s25  ;;  %v9942_v45 = vpop.permute.xlu0 %2613 }
 0x73e   : > { %v9934_v9 = vpop.permute.xlu1 %5022 }
 0x741   : > { %4210 = vrot.lane.b32.xlu0 %v649_v58, %s7840_s25  ;;  %4208 = vrot.lane.b32.xlu1 %v648_v0, %s7840_s25  ;;  %v659_v58 = vld [vmem:[%s9890_s26 + $0x70] sm:$0xff]  ;;  %v658_v0 = vld [vmem:[%s9890_s26 + $0x68] sm:$0xff] }
 0x742   : > { %v5029_v31 = vpop.permute.xlu1 %5028 }
 0x745   : > { %4214 = vrot.lane.b32.xlu0 %v651_v62, %s7840_s25  ;;  %4212 = vrot.lane.b32.xlu1 %v650_v5, %s7840_s25 }
 0x746   : > { %v5027_v5 = vpop.permute.xlu1 %5026 }
 0x749   : > { %4218 = vrot.lane.b32.xlu0 %v653_v48, %s7840_s25  ;;  %4216 = vrot.lane.b32.xlu1 %v652_v30, %s7840_s25  ;;  %v661_v48 = vld [vmem:[%s9890_s26 + $0x80] sm:$0xff]  ;;  %v660_v30 = vld [vmem:[%s9890_s26 + $0x78] sm:$0xff] }
 0x74a   : > { %v5033_v23 = vpop.permute.xlu1 %5032 }
 0x74d   : > { %4222 = vrot.lane.b32.xlu0 %v655_v35, %s7840_s25  ;;  %4220 = vrot.lane.b32.xlu1 %v654_v42, %s7840_s25  ;;  %v663_v42 = vld [vmem:[%s9890_s26 + $0x90] sm:$0xff] }
 0x751   : > { %4226 = vrot.lane.b32.xlu0 %v657_v32, %s7840_s25  ;;  %4224 = vrot.lane.b32.xlu1 %v656_v51, %s7840_s25  ;;  %v662_v32 = vld [vmem:[%s9890_s26 + $0x88] sm:$0xff] }
 0x753   : > { %v9948_v62 = vpop.permute.xlu0 %5052 }
 0x755   : > { %4230 = vrot.lane.b32.xlu0 %v659_v58, %s7840_s25  ;;  %4228 = vrot.lane.b32.xlu1 %v658_v0, %s7840_s25  ;;  %v11319_v58 = vld [vmem:[#allocation114_spill] sm:$0xff] }
 0x756   : > { %v11320_v0 = vld [vmem:[#allocation50_spill] sm:$0xff] }
 0x757   : > { %v9954_v35 = vpop.permute.xlu0 %5050  ;;  %v11322_v61 = vsub.f32 %v11320_v0, %v11321_v21  ;;  %v11326_v21 = vsub.f32 %v11324_v29, %v11325_v24 }
 0x759   : > { %4234 = vrot.lane.b32.xlu0 %v661_v48, %s7840_s25  ;;  %4232 = vrot.lane.b32.xlu1 %v660_v30, %s7840_s25  ;;  %v2678_v50 = vsub.f32 %v11322_v61, %v11319_v58  ;;  %v2677_v61 = vsub.f32 %v11326_v21, %v11323_v26  ;;  %v669_v26 = vld [vmem:[%s9890_s26 + $0xc0] sm:$0xff]  ;;  %v11334_v21 = vld [vmem:[#allocation117_spill] sm:$0xff] }
 0x75b   : > { %v5057_v51 = vpop.permute.xlu0 %5056  ;;  %v5113_v30 = vsel %vm2703_vm4, %v2678_v50, %v5033_v23  ;;  %v11328_v50 = vld [vmem:[#allocation76_spill] sm:$0xff] }
 0x75c   : > { %v5181_v58 = vsel %vm5131_vm5, %v5113_v30, 0  ;;  %v11329_v23 = vsub.f32 %v11327_v27, %v11328_v50  ;;  %v668_v30 = vld [vmem:[%s9890_s26 + $0xb8] sm:$0xff] }
 0x75d   : > { %4238 = vrot.lane.b32.xlu0 %v663_v42, %s7840_s25  ;;  %4236 = vrot.lane.b32.xlu1 %v662_v32, %s7840_s25  ;;  %v5031_v42 = vpop.permute.xlu1 %5030  ;;  %v666_v32 = vld [vmem:[%s9890_s26 + $0xa8] sm:$0xff]  ;;  %v9991_v29 = vand.u32 4294901760, %v5181_v58  ;;  %v11335_v27 = vld [vmem:[#allocation79_spill] sm:$0xff] }
 0x75e   : > { %v2692_v20 = vsub.f32 %v11329_v23, %v9855_v39  ;;  %v5112_v44 = vsel %vm2703_vm4, %v2677_v61, %v5031_v42  ;;  %v11336_v39 = vld [vmem:[#allocation77_spill] sm:$0xff]  ;;  %v11340_v61 = vld [vmem:[#allocation80_spill] sm:$0xff] }
 0x75f   : > { %v9968_v48 = vpop.permute.xlu0 %5054  ;;  %11333 = vst [vmem:[#allocation15_spill] sm:$0xff] %v9991_v29  ;;  %v11337_v50 = vsub.f32 %v11335_v27, %v11336_v39  ;;  %v11339_v42 = vld [vmem:[#allocation81_spill] sm:$0xff]  ;;  %v11347_v27 = vsub.f32 %v11345_v18, %v11346_v56  ;;  %v11357_v56 = vld [vmem:[#allocation35_spill] sm:$0xff] }
 0x761   : > { %4242 = vrot.lane.b32.xlu0 %v665_v38, %s7840_s25  ;;  %4240 = vrot.lane.b32.xlu1 %v664_v16, %s7840_s25  ;;  %v11330_v38 = vld [vmem:[#allocation46_spill] sm:$0xff]  ;;  %v2693_v23 = vsub.f32 %v11337_v50, %v11334_v21  ;;  %v2674_v21 = vsub.f32 %v11347_v27, %v9835_v12  ;;  %v11358_v12 = vld [vmem:[#allocation33_spill] sm:$0xff] }
 0x762   : > { %v11332_v16 = vsub.f32 %v11330_v38, %v11331_v52  ;;  %v11338_v38 = vld [vmem:[#allocation116_spill] sm:$0xff]  ;;  %v11359_v18 = vsub.f32 %v11357_v56, %v11358_v12 }
 0x763   : > { %v5061_v0 = vpop.permute.xlu0 %5060 }
 0x764   : > { %v2676_v59 = vsub.f32 %v11332_v16, %v9813_v47  ;;  %v5127_v24 = vsel %vm2703_vm4, %v2692_v20, %v5061_v0  ;;  %v11342_v16 = vld [vmem:[#allocation43_spill] sm:$0xff]  ;;  %v10030_v27 = vsub.f32 %v11359_v18, %v9892_v43  ;;  %v671_v43 = vld [vmem:[%s9890_s26 + $0xd0] sm:$0xff] }
 0x765   : > { %4246 = vrot.lane.b32.xlu0 %v667_v40, %s7840_s25  ;;  %4244 = vrot.lane.b32.xlu1 %v666_v32, %s7840_s25  ;;  %v11341_v40 = vsub.f32 %v11339_v42, %v11340_v61  ;;  %v11344_v20 = vsub.f32 %v11342_v16, %v11343_v46  ;;  %v5178_v42 = vsel %vm5131_vm5, %v5112_v44, 0  ;;  %v11352_v61 = vld [vmem:[#allocation37_spill] sm:$0xff]  ;;  %v11354_v46 = vld [vmem:[#allocation38_spill] sm:$0xff] }
 0x766   : > { %v5111_v52 = vsel %vm2703_vm4, %v2676_v59, %v5029_v31  ;;  %v11348_v59 = vld [vmem:[#allocation75_spill] sm:$0xff]  ;;  %v11349_v31 = vld [vmem:[#allocation73_spill] sm:$0xff]  ;;  %v11360_v44 = vld [vmem:[#allocation74_spill] sm:$0xff]  ;;  %v10060_v18 = vand.u32 4294901760, %v5178_v42 }
 0x767   : > { %v5059_v47 = vpop.permute.xlu0 %5058  ;;  %v2694_v32 = vsub.f32 %v11341_v40, %v11338_v38  ;;  %v2675_v0 = vsub.f32 %v11344_v20, %v9822_v4  ;;  %v11350_v39 = vsub.f32 %v11348_v59, %v11349_v31  ;;  %v11351_v38 = vld [vmem:[#allocation39_spill] sm:$0xff]  ;;  %v11355_v4 = vld [vmem:[#allocation36_spill] sm:$0xff] }
 0x768   : > { %v11353_v40 = vsub.f32 %v11351_v38, %v11352_v61  ;;  %v11356_v16 = vsub.f32 %v11354_v46, %v11355_v4  ;;  %v670_v61 = vld [vmem:[%s9890_s26 + $0xc8] sm:$0xff]  ;;  %11372 = vst [vmem:[#allocation10_spill] sm:$0xff] %v10060_v18 }
 0x769   : > { %v2691_v50 = vsub.f32 %v11350_v39, %v9878_v36  ;;  %v5223_v36 = vsel %vm5131_vm5, %v5127_v24, 0  ;;  %4250 = vrot.lane.b32.xlu0 %v669_v26, %s7840_s25  ;;  %4248 = vrot.lane.b32.xlu1 %v668_v30, %s7840_s25  ;;  %v5175_v39 = vsel %vm5131_vm5, %v5111_v52, 0  ;;  %v11363_v24 = vld [vmem:[#allocation71_spill] sm:$0xff]  ;;  %v11366_v30 = vld [vmem:[#allocation70_spill] sm:$0xff]  ;;  %v11367_v4 = vld [vmem:[#allocation68_spill] sm:$0xff] }
 0x76a   : > { %v2673_v6 = vsub.f32 %v11353_v40, %v9844_v33  ;;  %v2672_v20 = vsub.f32 %v11356_v16, %v9868_v17  ;;  %v11361_v33 = vld [vmem:[#allocation72_spill] sm:$0xff]  ;;  %v10041_v17 = vsub.f32 %v5181_v58, %v9991_v29  ;;  %v11364_v40 = vld [vmem:[#allocation69_spill] sm:$0xff]  ;;  %v11368_v16 = vsub.f32 %v11366_v30, %v11367_v4 }
 0x76b   : > { %v11362_v59 = vsub.f32 %v11360_v44, %v11361_v33  ;;  %v5126_v38 = vsel %vm2703_vm4, %v2691_v50, %v5059_v47  ;;  %v11365_v26 = vsub.f32 %v11363_v24, %v11364_v40  ;;  %v11370_v52 = vld [vmem:[#allocation65_spill] sm:$0xff]  ;;  %v10062_v47 = vpop.permute.xlu0 %5048  ;;  %v5065_v50 = vpop.permute.xlu1 %5064  ;;  %v10066_v33 = vand.u32 4294901760, %v5223_v36  ;;  %v11375_v24 = vld [vmem:[#allocation64_spill] sm:$0xff] }
 0x76c   : > { %v2688_v56 = vsub.f32 %v11368_v16, %v9922_v55  ;;  %v5129_v55 = vsel %vm2703_vm4, %v2694_v32, %v5065_v50  ;;  %v5220_v30 = vsel %vm5131_vm5, %v5126_v38, 0  ;;  %v11062_v32 = vand.u32 4294901760, %v10041_v17 }
 0x76d   : > { %v2690_v31 = vsub.f32 %v11362_v59, %v9902_v10  ;;  %v2689_v46 = vsub.f32 %v11365_v26, %v9910_v28  ;;  %v11369_v10 = vld [vmem:[#allocation67_spill] sm:$0xff]  ;;  %v5110_v28 = vsel %vm2703_vm4, %v2675_v0, %v5027_v5  ;;  %11373 = vst [vmem:[#allocation16_spill] sm:$0xff] %v10066_v33  ;;  %v11374_v59 = vld [vmem:[#allocation66_spill] sm:$0xff]  ;;  %v10075_v26 = vand.u32 4294901760, %v5175_v39  ;;  %4254 = vrot.lane.b32.xlu0 %v671_v43, %s7840_s25 }
 0x76e   : > { %v11371_v12 = vsub.f32 %v11369_v10, %v11370_v52  ;;  %v5229_v4 = vsel %vm5131_vm5, %v5129_v55, 0  ;;  %4252 = vrot.lane.b32.xlu1 %v670_v61, %s7840_s25  ;;  %v5107_v5 = vsel %vm2703_vm4, %v2672_v20, %v9904_v53  ;;  %v673_v0 = vld [vmem:[%s9890_s26 + $0xe0] sm:$0xff]  ;;  %v5172_v38 = vsel %vm5131_vm5, %v5110_v28, 0  ;;  %v674_v28 = vld [vmem:[%s9890_s26 + $0xe8] sm:$0xff] }
 0x76f   : > { %v5125_v44 = vsel %vm2703_vm4, %v2690_v31, %v5057_v51  ;;  %11377 = vst [vmem:[#allocation11_spill] sm:$0xff] %v10075_v26  ;;  %v5109_v51 = vsel %vm2703_vm4, %v2674_v21, %v9924_v1  ;;  %v672_v31 = vld [vmem:[%s9890_s26 + $0xd8] sm:$0xff]  ;;  %v10092_v16 = vsub.f32 %v5178_v42, %v10060_v18  ;;  %v5124_v61 = vsel %vm2703_vm4, %v2689_v46, %v9968_v48  ;;  %v5063_v53 = vpop.permute.xlu0 %5062  ;;  %v10097_v20 = vpop.permute.xlu1 %2581 }
 0x770   : > { %v10058_v58 = vsub.f32 %v11371_v12, %v9930_v7  ;;  %v11376_v7 = vsub.f32 %v11374_v59, %v11375_v24  ;;  %v5217_v43 = vsel %vm5131_vm5, %v5125_v44, 0  ;;  %v10100_v1 = vsub.f32 %v5223_v36, %v10066_v33 }
 0x771   : > { %v10102_v21 = vand.u32 4294901760, %v5220_v30  ;;  %v5128_v42 = vsel %vm2703_vm4, %v2693_v23, %v5063_v53  ;;  %v5169_v52 = vsel %vm5131_vm5, %v5109_v51, 0  ;;  %v5108_v48 = vsel %vm2703_vm4, %v2673_v6, %v9934_v9  ;;  %4258 = vrot.lane.b32.xlu0 %v673_v0, %s7840_s25  ;;  %v675_v23 = vld [vmem:[%s9890_s26 + $0xf0] sm:$0xff] }
 0x772   : > { %v10073_v40 = vsub.f32 %v11376_v7, %v9942_v45  ;;  %v10086_v45 = vand.u32 4294901760, %v5229_v4  ;;  %v10113_v46 = vsub.f32 %v5175_v39, %v10075_v26  ;;  %v5226_v36 = vsel %vm5131_vm5, %v5128_v42, 0  ;;  %4256 = vrot.lane.b32.xlu1 %v672_v31, %s7840_s25 }
 0x773   : > { %11378 = vst [vmem:[#allocation13_spill] sm:$0xff] %v10102_v21  ;;  %v10118_v12 = vand.u32 4294901760, %v5172_v38  ;;  %v10120_v50 = vand.u32 4294901760, %v5226_v36  ;;  %v5343_v6 = vsub.f32 %v10041_v17, %v11062_v32  ;;  %v11066_v9 = vand.u32 4294901760, %v10092_v16  ;;  %v10135_v24 = vpop.permute.xlu0 %2611  ;;  %v10137_v7 = vpop.permute.xlu1 %5016 }
 0x774   : > { %v10105_v10 = vsub.f32 %v5229_v4, %v10086_v45  ;;  %6699 = vmatprep.subr.mxu0 %v10086_v45  ;;  %v5123_v39 = vsel %vm2703_vm4, %v2688_v56, %v9948_v62  ;;  %v10132_v55 = vand.u32 4294901760, %v5217_v43  ;;  %v5214_v59 = vsel %vm5131_vm5, %v5124_v61, 0 }
 0x775   : > { %11379 = vst [vmem:[#allocation8_spill] sm:$0xff] %v10118_v12  ;;  %11380 = vst [vmem:[#allocation14_spill] sm:$0xff] %v10120_v50  ;;  %6700 = vmatpush3.xpose.msra.mxu0 %v9991_v29  ;;  %v10140_v4 = vsub.f32 %v5220_v30, %v10102_v21  ;;  %v10143_v51 = vsub.f32 %v5226_v36, %v10120_v50  ;;  %v11069_v56 = vand.u32 4294901760, %v10100_v1  ;;  %v5163_v0 = vsel %vm5131_vm5, %v5107_v5, 0  ;;  %v676_v36 = vld [vmem:[%s9890_s26 + $0xf8] sm:$0xff]  ;;  %s6131_s26 = scalar_lea.hbm %s10906_s16, %s7981_s28 }
 0x776   : > { %v11063_v44 = vand.u32 4294901760, %v10105_v10  ;;  %11381 = vst [vmem:[#allocation9_spill] sm:$0xff] %v10132_v55  ;;  %6701 = vmatprep.subr.mxu0 %v10120_v50  ;;  %v10151_v31 = vand.u32 4294901760, %v5169_v52  ;;  %v5166_v61 = vsel %vm5131_vm5, %v5108_v48, 0  ;;  %4262 = vrot.lane.b32.xlu0 %v675_v23, %s7840_s25  ;;  %v10158_v53 = vsub.f32 %v5172_v38, %v10118_v12 }
 0x777   : > { %11382 = vst [vmem:[#allocation114_spill] sm:$0xff] %v10140_v4  ;;  %4260 = vrot.lane.b32.xlu1 %v674_v28, %s7840_s25  ;;  %v5344_v32 = vand.u32 4294901760, %v5343_v6  ;;  %v11070_v5 = vand.u32 4294901760, %v10143_v51  ;;  %v10165_v48 = vsub.f32 %v5217_v43, %v10132_v55  ;;  %v10167_v30 = vand.u32 4294901760, %v5214_v59  ;;  %v5047_v23 = vpop.permute.xlu0 %5046  ;;  %v2580_v28 = vpop.permute.xlu1 %2579 }
 0x778   : > { %v5455_v62 = vsub.f32 %v10105_v10, %v11063_v44  ;;  %11383 = vst [vmem:[#allocation50_spill] sm:$0xff] %v10151_v31  ;;  %v5211_v44 = vsel %vm5131_vm5, %v5123_v39, 0  ;;  %v5350_v38 = vsub.f32 %v10092_v16, %v11066_v9  ;;  %v5122_v6 = vsel %vm2703_vm4, %v10058_v58, %v9954_v35 }
 0x779   : > { %6702 = vmatpush3.xpose.msra.mxu0 %v10060_v18  ;;  %11384 = vst [vmem:[#allocation48_spill] sm:$0xff] %v10165_v48  ;;  %11385 = vst [vmem:[#allocation115_spill] sm:$0xff] %v10167_v30  ;;  %v5462_v43 = vsub.f32 %v10143_v51, %v11070_v5  ;;  %v5469_v39 = vsub.f32 %v10100_v1, %v11069_v56  ;;  %v5106_v9 = vsel %vm2703_vm4, %v10030_v27, %v9914_v34 }
 0x77a   : > { %v5456_v42 = vand.u32 4294901760, %v5455_v62  ;;  %6703 = vmatprep.subr.mxu0 %v10066_v33  ;;  %v10183_v33 = vand.u32 4294901760, %v5163_v0  ;;  %v10189_v18 = vsub.f32 %v5169_v52, %v10151_v31  ;;  %v10191_v35 = vand.u32 4294901760, %v5166_v61 }
 0x77b   : > { %4264 = vrot.lane.b32.xlu1 %v676_v36, %s7840_s25  ;;  %v5463_v56 = vand.u32 4294901760, %v5462_v43  ;;  %v11389_v5 = vand.u32 4294901760, %v10113_v46  ;;  %v5208_v34 = vsel %vm5131_vm5, %v5122_v6, 0  ;;  %v10203_v27 = vsub.f32 %v5214_v59, %v10167_v30  ;;  %v2610_v52 = vpop.permute.xlu0 %2609 }
 0x77c   : > { %6733 = vmatprep.subr.mxu1 %v5456_v42  ;;  %11386 = vst [vmem:[#allocation47_spill] sm:$0xff] %v10183_v33  ;;  %11387 = vst [vmem:[#allocation45_spill] sm:$0xff] %v10191_v35  ;;  %v10195_v42 = vand.u32 4294901760, %v5211_v44  ;;  %v5351_v36 = vand.u32 4294901760, %v5350_v38  ;;  %v5470_v50 = vand.u32 4294901760, %v5469_v39  ;;  %v11390_v43 = vand.u32 4294901760, %v10140_v4 }
 0x77d   : > { %6734 = vmatpush3.xpose.msra.mxu1 %v5344_v32  ;;  %6704 = vmatpush3.xpose.msra.mxu0 %v10075_v26  ;;  %v5357_v62 = vsub.f32 %v10113_v46, %v11389_v5  ;;  %v5015_v32 = vpop.permute.xlu1 %5014  ;;  %v10211_v5 = vsub.f32 %v5163_v0, %v10183_v33  ;;  %v10215_v59 = vsub.f32 %v5166_v61, %v10191_v35  ;;  %v10224_v58 = vand.u32 4294901760, %v5208_v34  ;;  %v11393_v0 = vld [vmem:[#allocation34_spill] sm:$0xff] }
 0x77e   : > { %11388 = vst [vmem:[#allocation78_spill] sm:$0xff] %v10195_v42  ;;  %6705 = vmatprep.subr.mxu0 %v10102_v21  ;;  %6735 = vmatprep.subr.mxu1 %v5463_v56  ;;  %v5476_v26 = vsub.f32 %v10140_v4, %v11390_v43  ;;  %v5121_v38 = vsel %vm2703_vm4, %v10073_v40, %v10062_v47  ;;  %v5160_v56 = vsel %vm5131_vm5, %v5106_v9, 0  ;;  %v11394_v43 = vld [vmem:[#allocation32_spill] sm:$0xff]  ;;  %v11396_v9 = vand.u32 4294901760, %v10158_v53 }
 0x77f   : > { %v10222_v39 = vsub.f32 %v5211_v44, %v10195_v42  ;;  %11392 = vst [vmem:[#allocation46_spill] sm:$0xff] %v10224_v58  ;;  %v11395_v21 = vsub.f32 %v11393_v0, %v11394_v43  ;;  %v5045_v61 = vpop.permute.xlu0 %5044  ;;  %v5358_v40 = vand.u32 4294901760, %v5357_v62 }
 0x780   : > { %v5364_v44 = vsub.f32 %v10158_v53, %v11396_v9  ;;  %v11408_v9 = vld [vmem:[#allocation60_spill] sm:$0xff] }
 0x781   : > { %6736 = vmatpush3.xpose.msra.mxu1 %v5351_v36  ;;  %11391 = vst [vmem:[#allocation76_spill] sm:$0xff] %v10222_v39  ;;  %v2670_v6 = vsub.f32 %v11395_v21, %v10097_v20  ;;  %6706 = vmatpush3.xpose.msra.mxu0 %v10118_v12  ;;  %v2578_v47 = vpop.permute.xlu1 %2577  ;;  %v11397_v36 = vand.u32 4294901760, %v10165_v48  ;;  %v5205_v20 = vsel %vm5131_vm5, %v5121_v38, 0  ;;  %v11398_v21 = vld [vmem:[#allocation63_spill] sm:$0xff]  ;;  %v10246_v12 = vand.u32 4294901760, %v5160_v56 }
 0x782   : > { %6737 = vmatprep.subr.mxu1 %v5470_v50  ;;  %6707 = vmatprep.subr.mxu0 %v10132_v55  ;;  %v11399_v50 = vld [vmem:[#allocation61_spill] sm:$0xff]  ;;  %v5477_v55 = vand.u32 4294901760, %v5476_v26  ;;  %v10253_v38 = vsub.f32 %v5208_v34, %v10224_v58 }
 0x783   : > { %v5483_v4 = vsub.f32 %v10165_v48, %v11397_v36  ;;  %v11400_v0 = vsub.f32 %v11398_v21, %v11399_v50  ;;  %v5105_v62 = vsel %vm2703_vm4, %v2670_v6, %v10137_v7  ;;  %11401 = vst [vmem:[#allocation44_spill] sm:$0xff] %v10246_v12  ;;  %v11402_v36 = vand.u32 4294901760, %v10189_v18  ;;  %v11403_v21 = vld [vmem:[#allocation30_spill] sm:$0xff]  ;;  %v2608_v34 = vpop.permute.xlu0 %2607 }
 0x784   : > { %v10262_v6 = vand.u32 4294901760, %v5205_v20  ;;  %v10274_v26 = vsub.f32 %v5160_v56, %v10246_v12 }
 0x785   : > { %v2685_v43 = vsub.f32 %v11400_v0, %v10135_v24  ;;  %6738 = vmatpush3.xpose.msra.mxu1 %v5358_v40  ;;  %v5371_v29 = vsub.f32 %v10189_v18, %v11402_v36  ;;  %v11404_v24 = vld [vmem:[#allocation29_spill] sm:$0xff]  ;;  %6708 = vmatpush3.xpose.msra.mxu0 %v10151_v31  ;;  %v5157_v40 = vsel %vm5131_vm5, %v5105_v62, 0  ;;  %v5013_v36 = vpop.permute.xlu1 %5012 }
 0x786   : > { %v11405_v50 = vsub.f32 %v11403_v21, %v11404_v24  ;;  %6739 = vmatprep.subr.mxu1 %v5477_v55  ;;  %11406 = vst [vmem:[#allocation117_spill] sm:$0xff] %v10262_v6  ;;  %6709 = vmatprep.subr.mxu0 %v10167_v30  ;;  %v5484_v55 = vand.u32 4294901760, %v5483_v4  ;;  %v11413_v4 = vand.u32 4294901760, %v10222_v39 }
 0x787   : > { %v5120_v48 = vsel %vm2703_vm4, %v2685_v43, %v5047_v23  ;;  %v5365_v23 = vand.u32 4294901760, %v5364_v44  ;;  %v11407_v43 = vld [vmem:[#allocation62_spill] sm:$0xff]  ;;  %v5372_v30 = vand.u32 4294901760, %v5371_v29  ;;  %v11411_v44 = vand.u32 4294901760, %v10215_v59 }
 0x788   : > { %v2669_v0 = vsub.f32 %v11405_v50, %v2580_v28  ;;  %v11409_v21 = vsub.f32 %v11407_v43, %v11408_v9  ;;  %v11410_v50 = vand.u32 4294901760, %v10203_v27  ;;  %v5202_v62 = vsel %vm5131_vm5, %v5120_v48, 0 }
 0x789   : > { %6740 = vmatpush3.xpose.msra.mxu1 %v5365_v23  ;;  %v5378_v31 = vsub.f32 %v10215_v59, %v11411_v44  ;;  %v10280_v9 = vand.u32 4294901760, %v5157_v40  ;;  %6710 = vmatpush3.xpose.msra.mxu0 %v10191_v35  ;;  %v10289_v48 = vsub.f32 %v5205_v20, %v10262_v6  ;;  %v11415_v23 = vld [vmem:[#allocation28_spill] sm:$0xff]  ;;  %v2576_v35 = vpop.permute.xlu1 %2575 }
 0x78a   : > { %v2684_v28 = vsub.f32 %v11409_v21, %v2610_v52  ;;  %v5104_v24 = vsel %vm2703_vm4, %v2669_v0, %v5015_v32  ;;  %v5490_v7 = vsub.f32 %v10203_v27, %v11410_v50  ;;  %6741 = vmatprep.subr.mxu1 %v5484_v55  ;;  %v5497_v32 = vsub.f32 %v10222_v39, %v11413_v4  ;;  %v11414_v0 = vld [vmem:[#allocation31_spill] sm:$0xff]  ;;  %v5043_v55 = vpop.permute.xlu0 %5042 }
 0x78b   : > { %11412 = vst [vmem:[#allocation79_spill] sm:$0xff] %v10280_v9  ;;  %v5154_v29 = vsel %vm5131_vm5, %v5104_v24, 0  ;;  %v11416_v43 = vsub.f32 %v11414_v0, %v11415_v23  ;;  %v11417_v50 = vld [vmem:[#allocation59_spill] sm:$0xff]  ;;  %6711 = vmatprep.subr.mxu0 %v10195_v42  ;;  %v10299_v4 = vand.u32 4294901760, %v5202_v62  ;;  %v10309_v23 = vsub.f32 %v5157_v40, %v10280_v9 }
 0x78c   : > { %v5119_v52 = vsel %vm2703_vm4, %v2684_v28, %v5045_v61  ;;  %v11418_v61 = vld [vmem:[#allocation57_spill] sm:$0xff]  ;;  %v5491_v56 = vand.u32 4294901760, %v5490_v7  ;;  %v5379_v7 = vand.u32 4294901760, %v5378_v31 }
 0x78d   : > { %v2668_v21 = vsub.f32 %v11416_v43, %v2578_v47  ;;  %v11419_v28 = vsub.f32 %v11417_v50, %v11418_v61  ;;  %11420 = vst [vmem:[#allocation77_spill] sm:$0xff] %v10299_v4  ;;  %v5199_v20 = vsel %vm5131_vm5, %v5119_v52, 0  ;;  %6742 = vmatpush3.xpose.msra.mxu1 %v5372_v30  ;;  %v11421_v47 = vand.u32 4294901760, %v10211_v5  ;;  %6712 = vmatpush3.xpose.msra.mxu0 %v10183_v33  ;;  %v11423_v52 = vld [vmem:[#allocation26_spill] sm:$0xff]  ;;  %v5011_v61 = vpop.permute.xlu1 %5010 }
 0x78e   : > { %v10311_v43 = vand.u32 4294901760, %v5154_v29  ;;  %6743 = vmatprep.subr.mxu1 %v5491_v56  ;;  %6713 = vmatprep.subr.mxu0 %v10224_v58  ;;  %v2606_v30 = vpop.permute.xlu0 %2605  ;;  %v10325_v56 = vand.u32 4294901760, %v5199_v20 }
 0x78f   : > { %v2683_v44 = vsub.f32 %v11419_v28, %v2608_v34  ;;  %v5103_v39 = vsel %vm2703_vm4, %v2668_v21, %v5013_v36  ;;  %v5385_v0 = vsub.f32 %v10211_v5, %v11421_v47  ;;  %v11424_v36 = vld [vmem:[#allocation25_spill] sm:$0xff]  ;;  %v5498_v28 = vand.u32 4294901760, %v5497_v32 }
 0x790   : > { %11422 = vst [vmem:[#allocation116_spill] sm:$0xff] %v10311_v43  ;;  %v11425_v21 = vsub.f32 %v11423_v52, %v11424_v36  ;;  %v10323_v47 = vsub.f32 %v5202_v62, %v10299_v4  ;;  %11428 = vst [vmem:[#allocation80_spill] sm:$0xff] %v10325_v56  ;;  %v5151_v31 = vsel %vm5131_vm5, %v5103_v39, 0  ;;  %v11433_v39 = vand.u32 4294901760, %v10274_v26 }
 0x791   : > { %v5118_v24 = vsel %vm2703_vm4, %v2683_v44, %v5043_v55  ;;  %v11426_v44 = vand.u32 4294901760, %v10253_v38  ;;  %6744 = vmatpush3.xpose.msra.mxu1 %v5379_v7  ;;  %v5386_v36 = vand.u32 4294901760, %v5385_v0  ;;  %v11431_v55 = vld [vmem:[#allocation56_spill] sm:$0xff]  ;;  %6714 = vmatpush3.xpose.msra.mxu0 %v10246_v12  ;;  %v10341_v58 = vand.u32 4294901760, %v5151_v31 }
 0x792   : > { %v2667_v50 = vsub.f32 %v11425_v21, %v2576_v35  ;;  %11427 = vst [vmem:[#allocation81_spill] sm:$0xff] %v10323_v47  ;;  %v5196_v35 = vsel %vm5131_vm5, %v5118_v24, 0  ;;  %v10332_v21 = vsub.f32 %v5154_v29, %v10311_v43  ;;  %6745 = vmatprep.subr.mxu1 %v5498_v28  ;;  %v5392_v24 = vsub.f32 %v10274_v26, %v11433_v39  ;;  %v5041_v0 = vpop.permute.xlu0 %5040  ;;  %v2574_v29 = vpop.permute.xlu1 %2573 }
 0x793   : > { %v5504_v40 = vsub.f32 %v10253_v38, %v11426_v44  ;;  %v11430_v44 = vld [vmem:[#allocation58_spill] sm:$0xff]  ;;  %11434 = vst [vmem:[#allocation41_spill] sm:$0xff] %v10341_v58  ;;  %v10343_v7 = vand.u32 4294901760, %v5196_v35  ;;  %6715 = vmatprep.subr.mxu0 %v10262_v6  ;;  %v11438_v6 = vld [vmem:[#allocation27_spill] sm:$0xff] }
 0x794   : > { %v5102_v52 = vsel %vm2703_vm4, %v2667_v50, %v5011_v61  ;;  %11429 = vst [vmem:[#allocation43_spill] sm:$0xff] %v10332_v21  ;;  %v11432_v34 = vsub.f32 %v11430_v44, %v11431_v55  ;;  %v11436_v61 = vand.u32 4294901760, %v10289_v48  ;;  %v11107_v44 = vand.u32 4294901760, %v10323_v47 }
 0x795   : > { %11435 = vst [vmem:[#allocation42_spill] sm:$0xff] %v10343_v7  ;;  %v5505_v50 = vand.u32 4294901760, %v5504_v40  ;;  %v5148_v28 = vsel %vm5131_vm5, %v5102_v52, 0  ;;  %6746 = vmatpush3.xpose.msra.mxu1 %v5386_v36  ;;  %v11439_v40 = vld [vmem:[#allocation24_spill] sm:$0xff]  ;;  %6716 = vmatpush3.xpose.msra.mxu0 %v10280_v9  ;;  %v11446_v9 = vand.u32 4294901760, %v10332_v21 }
 0x796   : > { %v2682_v62 = vsub.f32 %v11432_v34, %v2606_v30  ;;  %v5511_v34 = vsub.f32 %v10289_v48, %v11436_v61  ;;  %v10350_v30 = vsub.f32 %v5199_v20, %v10325_v56  ;;  %v11440_v12 = vsub.f32 %v11438_v6, %v11439_v40  ;;  %6717 = vmatprep.subr.mxu0 %v10299_v4  ;;  %v2604_v6 = vpop.permute.xlu0 %2603  ;;  %v11443_v40 = vld [vmem:[#allocation55_spill] sm:$0xff] }
 0x797   : > { %6747 = vmatprep.subr.mxu1 %v5505_v50  ;;  %v5393_v20 = vand.u32 4294901760, %v5392_v24  ;;  %v11441_v61 = vand.u32 4294901760, %v10309_v23  ;;  %v10370_v36 = vand.u32 4294901760, %v5148_v28  ;;  %v5518_v50 = vsub.f32 %v10323_v47, %v11107_v44 }
 0x798   : > { %11437 = vst [vmem:[#allocation40_spill] sm:$0xff] %v10350_v30  ;;  %v5117_v55 = vsel %vm2703_vm4, %v2682_v62, %v5041_v0  ;;  %v2666_v33 = vsub.f32 %v11440_v12, %v2574_v29  ;;  %v10365_v62 = vsub.f32 %v5151_v31, %v10341_v58  ;;  %v10368_v0 = vsub.f32 %v5196_v35, %v10343_v7  ;;  %v5009_v12 = vpop.permute.xlu1 %5008 }
 0x799   : > { %v5193_v39 = vsel %vm5131_vm5, %v5117_v55, 0  ;;  %v5399_v52 = vsub.f32 %v10309_v23, %v11441_v61  ;;  %v5512_v29 = vand.u32 4294901760, %v5511_v34  ;;  %6748 = vmatpush3.xpose.msra.mxu1 %v5393_v20  ;;  %v11444_v61 = vld [vmem:[#allocation53_spill] sm:$0xff]  ;;  %6718 = vmatpush3.xpose.msra.mxu0 %v10311_v43  ;;  %v10390_v44 = vsub.f32 %v5148_v28, %v10370_v36  ;;  %v11450_v43 = vld [vmem:[#allocation20_spill] sm:$0xff] }
 0x79a   : > { %11442 = vst [vmem:[#allocation75_spill] sm:$0xff] %v10368_v0  ;;  %v10373_v55 = vand.u32 4294901760, %v5193_v39  ;;  %v5101_v24 = vsel %vm2703_vm4, %v2666_v33, %v5009_v12  ;;  %v11445_v32 = vsub.f32 %v11443_v40, %v11444_v61  ;;  %v5406_v33 = vsub.f32 %v10332_v21, %v11446_v9  ;;  %6719 = vmatprep.subr.mxu0 %v10325_v56  ;;  %v5039_v20 = vpop.permute.xlu0 %5038  ;;  %v11449_v56 = vld [vmem:[#allocation22_spill] sm:$0xff] }
 0x79b   : > { %v5145_v35 = vsel %vm5131_vm5, %v5101_v24, 0  ;;  %6749 = vmatprep.subr.mxu1 %v5512_v29  ;;  %v5400_v34 = vand.u32 4294901760, %v5399_v52  ;;  %v5519_v29 = vand.u32 4294901760, %v5518_v50  ;;  %v11448_v9 = vand.u32 4294901760, %v10350_v30 }
 0x79c   : > { %v2681_v4 = vsub.f32 %v11445_v32, %v2604_v6  ;;  %v10392_v31 = vand.u32 4294901760, %v5145_v35  ;;  %v2572_v24 = vpop.permute.xlu1 %2571  ;;  %v10397_v6 = vsub.f32 %v5193_v39, %v10373_v55  ;;  %v4010_v28 = vmul.f32 1.442695, %v11316_v41 }
 0x79d   : > { %v5525_v40 = vsub.f32 %v10350_v30, %v11448_v9  ;;  %6750 = vmatpush3.xpose.msra.mxu1 %v5400_v34  ;;  %v11451_v32 = vsub.f32 %v11449_v56, %v11450_v43  ;;  %6720 = vmatpush3.xpose.msra.mxu0 %v10341_v58  ;;  %v11452_v34 = vand.u32 4294901760, %v10365_v62  ;;  %v11453_v43 = vand.u32 4294901760, %v10368_v0 }
 0x79e   : > { %11447 = vst [vmem:[#allocation73_spill] sm:$0xff] %v10397_v6  ;;  %v5116_v52 = vsel %vm2703_vm4, %v2681_v4, %v5039_v20  ;;  %6751 = vmatprep.subr.mxu1 %v5519_v29  ;;  %v5407_v4 = vand.u32 4294901760, %v5406_v33  ;;  %v10413_v50 = vsub.f32 %v5145_v35, %v10392_v31  ;;  %6721 = vmatprep.subr.mxu0 %v10343_v7  ;;  %v2602_v20 = vpop.permute.xlu0 %2601  ;;  %v4012_v29 = vmul.f32 1.442695, %v11309_v22  ;;  %v11454_v7 = vld [vmem:[#allocation54_spill] sm:$0xff] }
 0x79f   : > { %v5190_v61 = vsel %vm5131_vm5, %v5116_v52, 0  ;;  %v2665_v21 = vsub.f32 %v11451_v32, %v2572_v24  ;;  %v5413_v9 = vsub.f32 %v10365_v62, %v11452_v34  ;;  %v5532_v56 = vsub.f32 %v10368_v0, %v11453_v43  ;;  %v11455_v43 = vld [vmem:[#allocation52_spill] sm:$0xff] }
 0x7a0   : > { %v10405_v12 = vand.u32 4294901760, %v5190_v61  ;;  %v5007_v52 = vpop.permute.xlu1 %5006  ;;  %v5526_v32 = vand.u32 4294901760, %v5525_v40  ;;  %7647 = vpow2.f32 %v4010_v28  ;;  %v4016_v34 = vmul.f32 1.442695, %v11297_v57 }
 0x7a1   : > { %v5100_v33 = vsel %vm2703_vm4, %v2665_v21, %v5007_v52  ;;  %6752 = vmatpush3.xpose.msra.mxu1 %v5407_v4  ;;  %v4014_v41 = vmul.f32 1.442695, %v11302_v13  ;;  %v11456_v58 = vsub.f32 %v11454_v7, %v11455_v43  ;;  %6722 = vmatpush3.xpose.msra.mxu0 %v10370_v36  ;;  %v5414_v4 = vand.u32 4294901760, %v5413_v9 }
 0x7a2   : > { %v10423_v24 = vsub.f32 %v5190_v61, %v10405_v12  ;;  %v5142_v39 = vsel %vm5131_vm5, %v5100_v33, 0  ;;  %6753 = vmatprep.subr.mxu1 %v5526_v32  ;;  %6723 = vmatprep.subr.mxu0 %v10373_v55  ;;  %v5037_v40 = vpop.permute.xlu0 %5036  ;;  %v5533_v52 = vand.u32 4294901760, %v5532_v56  ;;  %v11457_v33 = vand.u32 4294901760, %v10390_v44 }
 0x7a3   : > { %v2680_v61 = vsub.f32 %v11456_v58, %v2602_v20  ;;  %v10434_v0 = vand.u32 4294901760, %v5142_v39  ;;  %v11458_v20 = vand.u32 4294901760, %v10397_v6  ;;  %7649 = vpow2.f32 %v4012_v29 }
 0x7a4   : > { %v2570_v28 = vpop.permute.xlu1 %2569  ;;  %v5420_v35 = vsub.f32 %v10390_v44, %v11457_v33  ;;  %v11124_v43 = vand.u32 4294901760, %v10423_v24  ;;  %v4018_v21 = vmul.f32 1.442695, %v9367_v25  ;;  %7651 = vpow2.f32 %v4014_v41  ;;  %v11459_v33 = vld [vmem:[#allocation23_spill] sm:$0xff] }
 0x7a5   : > { %v10443_v7 = vsub.f32 %v5142_v39, %v10434_v0  ;;  %v5115_v58 = vsel %vm2703_vm4, %v2680_v61, %v5037_v40  ;;  %v5539_v32 = vsub.f32 %v10397_v6, %v11458_v20  ;;  %6754 = vmatpush3.xpose.msra.mxu1 %v5414_v4  ;;  %v11460_v39 = vld [vmem:[#allocation21_spill] sm:$0xff]  ;;  %6724 = vmatpush3.xpose.msra.mxu0 %v10392_v31  ;;  %7653 = vpow2.f32 %v4016_v34 }
 0x7a6   : > { %v5187_v9 = vsel %vm5131_vm5, %v5115_v58, 0  ;;  %v11461_v57 = vsub.f32 %v11459_v33, %v11460_v39  ;;  %6755 = vmatprep.subr.mxu1 %v5533_v52  ;;  %6725 = vmatprep.subr.mxu0 %v10405_v12  ;;  %v2600_v29 = vpop.permute.xlu0 %2599  ;;  %v5421_v20 = vand.u32 4294901760, %v5420_v35  ;;  %v11462_v4 = vand.u32 4294901760, %v10413_v50  ;;  %v11463_v39 = vld [vmem:[#allocation51_spill] sm:$0xff] }
 0x7a7   : > { %v10452_v56 = vand.u32 4294901760, %v5187_v9  ;;  %v5546_v34 = vsub.f32 %v10423_v24, %v11124_v43  ;;  %v4020_v52 = vmul.f32 1.442695, %v9361_v8  ;;  %7655 = vpow2.f32 %v4018_v21 }
 0x7a8   : > { %v2664_v22 = vsub.f32 %v11461_v57, %v2570_v28  ;;  %v5005_v40 = vpop.permute.xlu1 %5004  ;;  %v5427_v41 = vsub.f32 %v10413_v50, %v11462_v4  ;;  %v5540_v28 = vand.u32 4294901760, %v5539_v32  ;;  %v4022_v35 = vmul.f32 1.442695, %v9380_v3  ;;  %v11464_v4 = vld [vmem:[#allocation49_spill] sm:$0xff]  ;;  %v11468_v3 = vld [vmem:[#allocation18_spill] sm:$0xff] }
 0x7a9   : > { %v10464_v58 = vsub.f32 %v5187_v9, %v10452_v56  ;;  %6756 = vmatpush3.xpose.msra.mxu1 %v5421_v20  ;;  %v11465_v61 = vsub.f32 %v11463_v39, %v11464_v4  ;;  %6726 = vmatpush3.xpose.msra.mxu0 %v10434_v0  ;;  %v4024_v32 = vmul.f32 1.442695, %v9373_v60  ;;  %v5547_v39 = vand.u32 4294901760, %v5546_v34 }
 0x7aa   : > { %v5099_v57 = vsel %vm2703_vm4, %v2664_v22, %v5005_v40  ;;  %6757 = vmatprep.subr.mxu1 %v5540_v28  ;;  %6727 = vmatprep.subr.mxu0 %v10452_v56  ;;  %v5035_v21 = vpop.permute.xlu0 %5034  ;;  %v5428_v20 = vand.u32 4294901760, %v5427_v41  ;;  %7657 = vpow2.f32 %v4020_v52  ;;  %v4026_v4 = vmul.f32 1.442695, %v9392_v49 }
 0x7ab   : > { %v5139_v33 = vsel %vm5131_vm5, %v5099_v57, 0  ;;  %v2679_v9 = vsub.f32 %v11465_v61, %v2600_v29  ;;  %v11128_v22 = vand.u32 4294901760, %v10464_v58  ;;  %v11466_v57 = vand.u32 4294901760, %v10443_v7 }
 0x7ac   : > { %v10476_v25 = vand.u32 4294901760, %v5139_v33  ;;  %v2568_v40 = vpop.permute.xlu1 %2567  ;;  %7659 = vpow2.f32 %v4022_v35 }
 0x7ad   : > { %v5434_v43 = vsub.f32 %v10443_v7, %v11466_v57  ;;  %v5114_v29 = vsel %vm2703_vm4, %v2679_v9, %v5035_v21  ;;  %v5553_v28 = vsub.f32 %v10464_v58, %v11128_v22  ;;  %6758 = vmatpush3.xpose.msra.mxu1 %v5428_v20  ;;  %v7648_v41 = vpop.eup %7647  ;;  %7661 = vpow2.f32 %v4024_v32 }
 0x7ae   : > { %v10486_v61 = vsub.f32 %v5139_v33, %v10476_v25  ;;  %v5184_v60 = vsel %vm5131_vm5, %v5114_v29, 0  ;;  %v11467_v33 = vld [vmem:[#allocation19_spill] sm:$0xff]  ;;  %6728 = vmatpush3.xpose.msra.mxu0 %v10476_v25  ;;  %6759 = vmatprep.subr.mxu1 %v5547_v39  ;;  %v4203_v52 = vpop.permute.xlu0 %4202  ;;  %7663 = vpow2.f32 %v4026_v4  ;;  %v4030_v39 = vmul.f32 1.442695, %v9417_v14 }
 0x7af   : > { %v10495_v8 = vand.u32 4294901760, %v5184_v60  ;;  %v11469_v9 = vsub.f32 %v11467_v33, %v11468_v3  ;;  %v5435_v22 = vand.u32 4294901760, %v5434_v43  ;;  %v5554_v49 = vand.u32 4294901760, %v5553_v28 }
 0x7b0   : > { %v11132_v57 = vand.u32 4294901760, %v10486_v61  ;;  %v5003_v21 = vpop.permute.xlu1 %5002  ;;  %v4298_v35 = vmul.f32 %v7648_v41, %v4203_v52  ;;  %v7650_v43 = vpop.eup %7649 }
 0x7b1   : > { %v2663_v34 = vsub.f32 %v11469_v9, %v2568_v40  ;;  %v10502_v20 = vsub.f32 %v5184_v60, %v10495_v8  ;;  %6729 = vmatprep.subr.mxu0 %v10495_v8  ;;  %v4028_v40 = vmul.f32 1.442695, %v9384_v2  ;;  %6760 = vmatpush3.xpose.msra.mxu1 %v5435_v22  ;;  %v7652_v33 = vpop.eup %7651 }
 0x7b2   : > { %v5441_v3 = vsub.f32 %v10486_v61, %v11132_v57  ;;  %4362 = vrot.lane.b32.xlu0 %v4298_v35, %s7839_s23  ;;  %6761 = vmatprep.subr.mxu1 %v5554_v49  ;;  %v4207_v9 = vpop.permute.xlu0 %4206  ;;  %v7654_v52 = vpop.eup %7653  ;;  %v4032_v49 = vmul.f32 1.442695, %v9403_v15  ;;  %v11476_v57 = vld [vmem:[#allocation14_spill] sm:$0xff] }
 0x7b3   : > { %v5098_v29 = vsel %vm2703_vm4, %v2663_v34, %v5003_v21  ;;  %v11131_v41 = vand.u32 4294901760, %v10502_v20  ;;  %v4300_v21 = vmul.f32 %v7652_v33, %v4207_v9  ;;  %7665 = vpow2.f32 %v4028_v40 }
 0x7b4   : > { %v5136_v32 = vsel %vm5131_vm5, %v5098_v29, 0  ;;  %v5442_v28 = vand.u32 4294901760, %v5441_v3  ;;  %v4205_v34 = vpop.permute.xlu1 %4204  ;;  %v7656_v35 = vpop.eup %7655  ;;  %7667 = vpow2.f32 %v4030_v39  ;;  %v4034_v3 = vmul.f32 1.442695, %v9449_v37 }
 0x7b5   : > { %v10512_v60 = vand.u32 4294901760, %v5136_v32  ;;  %v4299_v22 = vmul.f32 %v7650_v43, %v4205_v34  ;;  %v5560_v29 = vsub.f32 %v10502_v20, %v11131_v41  ;;  %7669 = vpow2.f32 %v4032_v49  ;;  %v11475_v41 = vld [vmem:[#allocation114_spill] sm:$0xff] }
 0x7b6   : > { %6762 = vmatpush3.xpose.msra.mxu1 %v5442_v28  ;;  %4366 = vrot.lane.b32.xlu0 %v4300_v21, %s7839_s23  ;;  %v4211_v33 = vpop.permute.xlu0 %4210  ;;  %v4036_v28 = vmul.f32 1.442695, %v9436_v63  ;;  %7671 = vpow2.f32 %v4034_v3  ;;  %v11480_v63 = vld [vmem:[#allocation96_spill] sm:$0xff] }
 0x7b7   : > { %v10517_v4 = vsub.f32 %v5136_v32, %v10512_v60  ;;  %6730 = vmatpush3.xpose.msra.mxu0 %v10512_v60  ;;  %4364 = vrot.lane.b32.xlu1 %v4299_v22, %s7839_s23  ;;  %v5561_v43 = vand.u32 4294901760, %v5560_v29  ;;  %v4302_v40 = vmul.f32 %v7656_v35, %v4211_v33  ;;  %v7658_v21 = vpop.eup %7657 }
 0x7b8   : > { %6767 = vmatprep.subr.mxu0 %v10105_v10  ;;  %v4209_v9 = vpop.permute.xlu1 %4208  ;;  %7673 = vpow2.f32 %v4036_v28 }
 0x7b9   : > { %v11130_v32 = vand.u32 4294901760, %v10517_v4  ;;  %v4301_v34 = vmul.f32 %v7654_v52, %v4209_v9  ;;  %6763 = vmatprep.subr.mxu1 %v5561_v43  ;;  %v7660_v22 = vpop.eup %7659  ;;  %v11470_v9 = vld [vmem:[#allocation102_spill] sm:$0xff] }
 0x7ba   : > { %6732 = vmatmul.mubr.f32.vlgmr.msra.gmra.mxu0 %v9883_v19  ;;  %v4038_v19 = vmul.f32 1.442695, %v9476_v54  ;;  %4370 = vrot.lane.b32.xlu0 %v4302_v40, %s7839_s23  ;;  %v4215_v29 = vpop.permute.xlu0 %4214  ;;  %v7662_v43 = vpop.eup %7661  ;;  %v11471_v40 = vld [vmem:[#allocation94_spill] sm:$0xff]  ;;  %v11481_v54 = vld [vmem:[#allocation48_spill] sm:$0xff] }
 0x7bb   : > { %6768 = vmatpush3.xpose.msra.mxu0 %v10041_v17  ;;  %v5448_v39 = vsub.f32 %v10517_v4, %v11130_v32  ;;  %6799 = vmatprep.mubr.f32.mxu0 %v9861_v11  ;;  %v4304_v49 = vmul.f32 %v7660_v22, %v4215_v29  ;;  %v4040_v32 = vmul.f32 1.442695, %v11470_v9  ;;  %v7664_v3 = vpop.eup %7663  ;;  %v11473_v29 = vld [vmem:[#allocation15_spill] sm:$0xff] }
 0x7bc   : > { %6769 = vmatprep.subr.mxu0 %v10143_v51  ;;  %4368 = vrot.lane.b32.xlu1 %v4301_v34, %s7839_s23  ;;  %v4213_v35 = vpop.permute.xlu1 %4212  ;;  %7675 = vpow2.f32 %v4038_v19  ;;  %v4042_v34 = vmul.f32 1.442695, %v11471_v40 }
 0x7bd   : > { %v5449_v52 = vand.u32 4294901760, %v5448_v39  ;;  %v4303_v33 = vmul.f32 %v7658_v21, %v4213_v35  ;;  %v11472_v21 = vld [vmem:[#allocation17_spill] sm:$0xff]  ;;  %7677 = vpow2.f32 %v4040_v32 }
 0x7be   : > { %4374 = vrot.lane.b32.xlu0 %v4304_v49, %s7839_s23  ;;  %v4219_v39 = vpop.permute.xlu0 %4218  ;;  %v11474_v35 = vld [vmem:[#allocation93_spill] sm:$0xff]  ;;  %7679 = vpow2.f32 %v4042_v34  ;;  %v4048_v34 = vmul.f32 1.442695, %v11480_v63  ;;  %v11485_v63 = vld [vmem:[#allocation99_spill] sm:$0xff] }
 0x7bf   : > { %6764 = vmatpush3.xpose.msra.mxu1 %v5449_v52  ;;  %6770 = vmatpush3.xpose.msra.mxu0 %v10092_v16  ;;  %v4306_v28 = vmul.f32 %v7664_v3, %v4219_v39  ;;  %v4044_v19 = vmul.f32 1.442695, %v11474_v35  ;;  %v11479_v35 = vld [vmem:[#allocation10_spill] sm:$0xff]  ;;  %v4052_v2 = vmul.f32 1.442695, %v11485_v63  ;;  %v11489_v63 = vld [vmem:[#allocation103_spill] sm:$0xff] }
 0x7c0   : > { %6771 = vmatprep.subr.mxu0 %v10100_v1  ;;  %6801 = vmatprep.subr.mxu1 %v10086_v45  ;;  %v4217_v52 = vpop.permute.xlu1 %4216  ;;  %v7666_v49 = vpop.eup %7665  ;;  %v4056_v13 = vmul.f32 1.442695, %v11489_v63  ;;  %v11494_v63 = vld [vmem:[#allocation106_spill] sm:$0xff] }
 0x7c1   : > { %4372 = vrot.lane.b32.xlu1 %v4303_v33, %s7839_s23  ;;  %v4305_v22 = vmul.f32 %v7662_v43, %v4217_v52  ;;  %v11477_v33 = vld [vmem:[#allocation97_spill] sm:$0xff]  ;;  %v7668_v43 = vpop.eup %7667  ;;  %v11478_v52 = vld [vmem:[#allocation12_spill] sm:$0xff]  ;;  %7681 = vpow2.f32 %v4044_v19  ;;  %v11484_v19 = vld [vmem:[#allocation11_spill] sm:$0xff] }
 0x7c2   : > { %6766 = vmatmul.mubr.msk.f32.vlgmr.msra.gmra.mxu1 %vm5131_vm5, %v11472_v21  ;;  %v4046_v9 = vmul.f32 1.442695, %v11477_v33  ;;  %4378 = vrot.lane.b32.xlu0 %v4306_v28, %s7839_s23  ;;  %v4223_v3 = vpop.permute.xlu0 %4222  ;;  %v11482_v33 = vld [vmem:[#allocation16_spill] sm:$0xff]  ;;  %v7670_v28 = vpop.eup %7669 }
 0x7c3   : > { %6772 = vmatpush3.xpose.msra.mxu0 %v10113_v46  ;;  %6802 = vmatpush3.xpose.msra.mxu1 %v11473_v29  ;;  %v4308_v32 = vmul.f32 %v7668_v43, %v4223_v3 }
 0x7c4   : > { %6773 = vmatprep.subr.mxu0 %v11475_v41  ;;  %6803 = vmatprep.subr.mxu1 %v11476_v57  ;;  %v4221_v39 = vpop.permute.xlu1 %4220  ;;  %7683 = vpow2.f32 %v4046_v9  ;;  %v11486_v9 = vld [vmem:[#allocation13_spill] sm:$0xff] }
 0x7c5   : > { %4376 = vrot.lane.b32.xlu1 %v4305_v22, %s7839_s23  ;;  %6833 = vmatprep.mubr.f32.mxu1 %v11478_v52  ;;  %v4307_v40 = vmul.f32 %v7666_v49, %v4221_v39  ;;  %v11483_v22 = vld [vmem:[#allocation101_spill] sm:$0xff]  ;;  %v7672_v49 = vpop.eup %7671  ;;  %7685 = vpow2.f32 %v4048_v34  ;;  %v11488_v34 = vld [vmem:[#allocation8_spill] sm:$0xff] }
 0x7c6   : > { %v4050_v15 = vmul.f32 1.442695, %v11483_v22  ;;  %4382 = vrot.lane.b32.xlu0 %v4308_v32, %s7839_s23  ;;  %v4227_v43 = vpop.permute.xlu0 %4226  ;;  %v7674_v22 = vpop.eup %7673  ;;  %v11487_v32 = vld [vmem:[#allocation105_spill] sm:$0xff] }
 0x7c7   : > { %6774 = vmatpush3.xpose.msra.mxu0 %v10158_v53  ;;  %6804 = vmatpush3.xpose.msra.mxu1 %v11479_v35  ;;  %v4310_v39 = vmul.f32 %v7672_v49, %v4227_v43 }
 0x7c8   : > { %6775 = vmatprep.subr.mxu0 %v11481_v54  ;;  %6805 = vmatprep.subr.mxu1 %v11482_v33  ;;  %v4225_v3 = vpop.permute.xlu1 %4224  ;;  %7687 = vpow2.f32 %v4050_v15  ;;  %v11491_v15 = vld [vmem:[#allocation9_spill] sm:$0xff] }
 0x7c9   : > { %4380 = vrot.lane.b32.xlu1 %v4307_v40, %s7839_s23  ;;  %v4309_v37 = vmul.f32 %v7670_v28, %v4225_v3  ;;  %v4054_v40 = vmul.f32 1.442695, %v11487_v32  ;;  %v7676_v28 = vpop.eup %7675  ;;  %7689 = vpow2.f32 %v4052_v2  ;;  %v11493_v2 = vld [vmem:[#allocation50_spill] sm:$0xff] }
 0x7ca   : > { %4386 = vrot.lane.b32.xlu0 %v4310_v39, %s7839_s23  ;;  %v4231_v49 = vpop.permute.xlu0 %4230  ;;  %v7678_v32 = vpop.eup %7677  ;;  %v11492_v39 = vld [vmem:[#allocation107_spill] sm:$0xff] }
 0x7cb   : > { %6776 = vmatpush3.xpose.msra.mxu0 %v10189_v18  ;;  %6806 = vmatpush3.xpose.msra.mxu1 %v11484_v19  ;;  %v4312_v3 = vmul.f32 %v7676_v28, %v4231_v49  ;;  %7691 = vpow2.f32 %v4054_v40  ;;  %v11495_v40 = vld [vmem:[#allocation115_spill] sm:$0xff] }
 0x7cc   : > { %6777 = vmatprep.subr.mxu0 %v10203_v27  ;;  %6807 = vmatprep.subr.mxu1 %v11486_v9  ;;  %v4229_v43 = vpop.permute.xlu1 %4228  ;;  %v11490_v9 = vld [vmem:[#allocation76_spill] sm:$0xff]  ;;  %7693 = vpow2.f32 %v4056_v13  ;;  %v11497_v13 = vld [vmem:[#allocation45_spill] sm:$0xff] }
 0x7cd   : > { %4384 = vrot.lane.b32.xlu1 %v4309_v37, %s7839_s23  ;;  %v4311_v14 = vmul.f32 %v7674_v22, %v4229_v43  ;;  %v4058_v37 = vmul.f32 1.442695, %v11492_v39  ;;  %v7680_v22 = vpop.eup %7679 }
 0x7ce   : > { %4390 = vrot.lane.b32.xlu0 %v4312_v3, %s7839_s23  ;;  %v4235_v28 = vpop.permute.xlu0 %4234  ;;  %v7682_v39 = vpop.eup %7681  ;;  %v11496_v3 = vld [vmem:[#allocation109_spill] sm:$0xff] }
 0x7cf   : > { %6778 = vmatpush3.xpose.msra.mxu0 %v10215_v59  ;;  %6808 = vmatpush3.xpose.msra.mxu1 %v11488_v34  ;;  %v4314_v43 = vmul.f32 %v7680_v22, %v4235_v28  ;;  %7695 = vpow2.f32 %v4058_v37 }
 0x7d0   : > { %6779 = vmatprep.subr.mxu0 %v11490_v9  ;;  %6809 = vmatprep.subr.mxu1 %v11491_v15  ;;  %v4233_v49 = vpop.permute.xlu1 %4232  ;;  %v4060_v15 = vmul.f32 1.442695, %v11494_v63  ;;  %v11498_v63 = vld [vmem:[#allocation108_spill] sm:$0xff] }
 0x7d1   : > { %4388 = vrot.lane.b32.xlu1 %v4311_v14, %s7839_s23  ;;  %v4313_v34 = vmul.f32 %v7678_v32, %v4233_v49  ;;  %v4062_v14 = vmul.f32 1.442695, %v11496_v3  ;;  %v7684_v32 = vpop.eup %7683 }
 0x7d2   : > { %4394 = vrot.lane.b32.xlu0 %v4314_v43, %s7839_s23  ;;  %v4239_v22 = vpop.permute.xlu0 %4238  ;;  %7697 = vpow2.f32 %v4060_v15  ;;  %v7686_v37 = vpop.eup %7685  ;;  %v11499_v43 = vld [vmem:[#allocation111_spill] sm:$0xff] }
 0x7d3   : > { %6780 = vmatpush3.xpose.msra.mxu0 %v10211_v5  ;;  %6810 = vmatpush3.xpose.msra.mxu1 %v11493_v2  ;;  %v4316_v49 = vmul.f32 %v7684_v32, %v4239_v22  ;;  %7699 = vpow2.f32 %v4062_v14  ;;  %v11500_v15 = vld [vmem:[#allocation47_spill] sm:$0xff]  ;;  %v11502_v14 = vld [vmem:[#allocation46_spill] sm:$0xff] }
 0x7d4   : > { %6781 = vmatprep.subr.mxu0 %v10253_v38  ;;  %6811 = vmatprep.subr.mxu1 %v11495_v40  ;;  %v4237_v28 = vpop.permute.xlu1 %4236  ;;  %v4064_v40 = vmul.f32 1.442695, %v11498_v63  ;;  %v11501_v63 = vld [vmem:[#allocation110_spill] sm:$0xff] }
 0x7d5   : > { %4392 = vrot.lane.b32.xlu1 %v4313_v34, %s7839_s23  ;;  %v4315_v2 = vmul.f32 %v7682_v39, %v4237_v28  ;;  %v4066_v34 = vmul.f32 1.442695, %v11499_v43  ;;  %v7688_v39 = vpop.eup %7687 }
 0x7d6   : > { %4398 = vrot.lane.b32.xlu0 %v4316_v49, %s7839_s23  ;;  %v4243_v32 = vpop.permute.xlu0 %4242  ;;  %7701 = vpow2.f32 %v4064_v40  ;;  %v7690_v43 = vpop.eup %7689  ;;  %v11503_v49 = vld [vmem:[#allocation113_spill] sm:$0xff]  ;;  %v11504_v40 = vld [vmem:[#allocation43_spill] sm:$0xff] }
 0x7d7   : > { %6782 = vmatpush3.xpose.msra.mxu0 %v10274_v26  ;;  %6812 = vmatpush3.xpose.msra.mxu1 %v11497_v13  ;;  %v4318_v28 = vmul.f32 %v7688_v39, %v4243_v32  ;;  %7703 = vpow2.f32 %v4066_v34 }
 0x7d8   : > { %6783 = vmatprep.subr.mxu0 %v10289_v48  ;;  %6813 = vmatprep.subr.mxu1 %v10195_v42  ;;  %v4241_v22 = vpop.permute.xlu1 %4240  ;;  %v4068_v42 = vmul.f32 1.442695, %v11501_v63  ;;  %v11505_v63 = vld [vmem:[#allocation44_spill] sm:$0xff] }
 0x7d9   : > { %4396 = vrot.lane.b32.xlu1 %v4315_v2, %s7839_s23  ;;  %v4317_v3 = vmul.f32 %v7686_v37, %v4241_v22  ;;  %v4070_v2 = vmul.f32 1.442695, %v11503_v49  ;;  %v7692_v37 = vpop.eup %7691  ;;  %v11507_v49 = vld [vmem:[#allocation112_spill] sm:$0xff] }
 0x7da   : > { %4402 = vrot.lane.b32.xlu0 %v4318_v28, %s7839_s23  ;;  %v4247_v39 = vpop.permute.xlu0 %4246  ;;  %7705 = vpow2.f32 %v4068_v42  ;;  %v7694_v34 = vpop.eup %7693  ;;  %v11508_v42 = vld [vmem:[#allocation79_spill] sm:$0xff] }
 0x7db   : > { %6784 = vmatpush3.xpose.msra.mxu0 %v10309_v23  ;;  %6814 = vmatpush3.xpose.msra.mxu1 %v11500_v15  ;;  %v4320_v22 = vmul.f32 %v7692_v37, %v4247_v39  ;;  %7707 = vpow2.f32 %v4070_v2 }
 0x7dc   : > { %6785 = vmatprep.subr.mxu0 %v10323_v47  ;;  %6815 = vmatprep.subr.mxu1 %v11502_v14  ;;  %v4245_v32 = vpop.permute.xlu1 %4244  ;;  %v11506_v14 = vld [vmem:[#allocation117_spill] sm:$0xff]  ;;  %v4072_v47 = vmul.f32 1.442695, %v11507_v49 }
 0x7dd   : > { %4400 = vrot.lane.b32.xlu1 %v4317_v3, %s7839_s23  ;;  %v4319_v15 = vmul.f32 %v7690_v43, %v4245_v32  ;;  %v7696_v3 = vpop.eup %7695  ;;  %v11509_v32 = vld [vmem:[#allocation75_spill] sm:$0xff] }
 0x7de   : > { %4406 = vrot.lane.b32.xlu0 %v4320_v22, %s7839_s23  ;;  %v4251_v28 = vpop.permute.xlu0 %4250  ;;  %7709 = vpow2.f32 %v4072_v47 }
 0x7df   : > { %6786 = vmatpush3.xpose.msra.mxu0 %v11504_v40  ;;  %6816 = vmatpush3.xpose.msra.mxu1 %v11505_v63  ;;  %v4322_v37 = vmul.f32 %v7696_v3, %v4251_v28  ;;  %v11512_v28 = vld [vmem:[#allocation80_spill] sm:$0xff] }
 0x7e0   : > { %6787 = vmatprep.subr.mxu0 %v10350_v30  ;;  %6817 = vmatprep.subr.mxu1 %v11506_v14  ;;  %v4249_v43 = vpop.permute.xlu1 %4248  ;;  %v11510_v14 = vld [vmem:[#allocation77_spill] sm:$0xff]  ;;  %v7698_v30 = vpop.eup %7697 }
 0x7e1   : > { %4404 = vrot.lane.b32.xlu1 %v4319_v15, %s7839_s23  ;;  %v4321_v39 = vmul.f32 %v7694_v34, %v4249_v43  ;;  %v7700_v15 = vpop.eup %7699  ;;  %v11511_v34 = vld [vmem:[#allocation116_spill] sm:$0xff] }
 0x7e2   : > { %4410 = vrot.lane.b32.xlu0 %v4322_v37, %s7839_s23  ;;  %v4255_v2 = vpop.permute.xlu0 %4254 }
 0x7e3   : > { %6788 = vmatpush3.xpose.msra.mxu0 %v10365_v62  ;;  %6818 = vmatpush3.xpose.msra.mxu1 %v11508_v42  ;;  %v4324_v49 = vmul.f32 %v7700_v15, %v4255_v2  ;;  %v7702_v43 = vpop.eup %7701  ;;  %v11514_v15 = vld [vmem:[#allocation42_spill] sm:$0xff] }
 0x7e4   : > { %6789 = vmatprep.subr.mxu0 %v11509_v32  ;;  %6819 = vmatprep.subr.mxu1 %v11510_v14  ;;  %v4253_v22 = vpop.permute.xlu1 %4252  ;;  %v7704_v47 = vpop.eup %7703 }
 0x7e5   : > { %4408 = vrot.lane.b32.xlu1 %v4321_v39, %s7839_s23  ;;  %v4323_v3 = vmul.f32 %v7698_v30, %v4253_v22  ;;  %v11513_v30 = vld [vmem:[#allocation41_spill] sm:$0xff] }
 0x7e6   : > { %4414 = vrot.lane.b32.xlu0 %v4324_v49, %s7839_s23  ;;  %v4259_v37 = vpop.permute.xlu0 %4258 }
 0x7e7   : > { %6790 = vmatpush3.xpose.msra.mxu0 %v10390_v44  ;;  %6820 = vmatpush3.xpose.msra.mxu1 %v11511_v34  ;;  %v4326_v14 = vmul.f32 %v7704_v47, %v4259_v37  ;;  %v7706_v2 = vpop.eup %7705  ;;  %v11517_v47 = vand.u32 4294901760, %v10143_v51  ;;  %v11521_v51 = vand.u32 4294901760, %v11475_v41  ;;  %v11528_v41 = vld [vmem:[#allocation8_spill] sm:$0xff] }
 0x7e8   : > { %6791 = vmatprep.subr.mxu0 %v10397_v6  ;;  %6821 = vmatprep.subr.mxu1 %v11512_v28  ;;  %v4257_v39 = vpop.permute.xlu1 %4256  ;;  %v7708_v49 = vpop.eup %7707 }
 0x7e9   : > { %4412 = vrot.lane.b32.xlu1 %v4323_v3, %s7839_s23  ;;  %v4325_v32 = vmul.f32 %v7702_v43, %v4257_v39  ;;  %v11542_v39 = vld [vmem:[#allocation46_spill] sm:$0xff] }
 0x7ea   : > { %4418 = vrot.lane.b32.xlu0 %v4326_v14, %s7839_s23  ;;  %v4263_v22 = vpop.permute.xlu0 %4262 }
 0x7eb   : > { %6792 = vmatpush3.xpose.msra.mxu0 %v10413_v50  ;;  %6822 = vmatpush3.xpose.msra.mxu1 %v11513_v30  ;;  %v4328_v28 = vmul.f32 %v7708_v49, %v4263_v22  ;;  %v7710_v14 = vpop.eup %7709  ;;  %v11548_v49 = vld [vmem:[#allocation75_spill] sm:$0xff] }
 0x7ec   : > { %6793 = vmatprep.subr.mxu0 %v10423_v24  ;;  %6823 = vmatprep.subr.mxu1 %v11514_v15  ;;  %v4261_v3 = vpop.permute.xlu1 %4260  ;;  %v11549_v22 = vand.u32 4294901760, %v11548_v49  ;;  %v11578_v49 = vld [vmem:[#allocation102_spill] sm:$0xff] }
 0x7ed   : > { %4416 = vrot.lane.b32.xlu1 %v4325_v32, %s7839_s23  ;;  %v4327_v6 = vmul.f32 %v7706_v2, %v4261_v3  ;;  %v11546_v2 = vld [vmem:[#allocation117_spill] sm:$0xff] }
 0x7ee   : > { %4422 = vrot.lane.b32.xlu0 %v4328_v28, %s7839_s23  ;;  %v11516_v28 = vand.u32 4294901760, %v10041_v17  ;;  %v11520_v17 = vand.u32 4294901760, %v10113_v46  ;;  %v11525_v46 = vand.u32 4294901760, %v10203_v27  ;;  %v11533_v27 = vand.u32 4294901760, %v10253_v38  ;;  %v11540_v38 = vld [vmem:[#allocation81_spill] sm:$0xff] }
 0x7ef   : > { %6794 = vmatpush3.xpose.msra.mxu0 %v10443_v7  ;;  %6824 = vmatpush3.xpose.msra.mxu1 %v10370_v36  ;;  %v11541_v37 = vand.u32 4294901760, %v11540_v38  ;;  %v11550_v3 = vld [vmem:[#allocation77_spill] sm:$0xff] }
 0x7f0   : > { %6795 = vmatprep.subr.mxu0 %v10464_v58  ;;  %6825 = vmatprep.subr.mxu1 %v10373_v55  ;;  %v4265_v43 = vpop.permute.xlu1 %4264 }
 0x7f1   : > { %4420 = vrot.lane.b32.xlu1 %v4327_v6, %s7839_s23  ;;  %v4329_v32 = vmul.f32 %v7710_v14, %v4265_v43  ;;  %v11515_v6 = vand.u32 4294901760, %v10105_v10  ;;  %v11518_v10 = vand.u32 4294901760, %v10092_v16  ;;  %v11522_v16 = vand.u32 4294901760, %v10158_v53  ;;  %v11553_v14 = vld [vmem:[#allocation73_spill] sm:$0xff] }
 0x7f2   : > { %v11527_v53 = vand.u32 4294901760, %v10215_v59  ;;  %v11535_v59 = vand.u32 4294901760, %v10274_v26  ;;  %v11543_v26 = vand.u32 4294901760, %v11504_v40  ;;  %v11551_v40 = vand.u32 4294901760, %v10390_v44 }
 0x7f3   : > { %6796 = vmatpush3.xpose.msra.mxu0 %v10486_v61  ;;  %6826 = vmatpush3.xpose.msra.mxu1 %v10392_v31  ;;  %v11554_v43 = vand.u32 4294901760, %v11553_v14 }
 0x7f4   : > { %6797 = vmatprep.subr.mxu0 %v10502_v20  ;;  %6827 = vmatprep.subr.mxu1 %v10405_v12 }
 0x7f5   : > { %4424 = vrot.lane.b32.xlu1 %v4329_v32, %s7839_s23  ;;  %s10723_s23 = scalar_lea.vmem %s10905_s15, %s7985_s30  ;;  %v11555_v32 = vld [vmem:[#allocation80_spill] sm:$0xff]  ;;  %s553_s30 = sand.u32 1, %s7827_s22  }
 0x7f6   : > { %s6245_s25 = sshll.u32 %s553_s30, 1  ;;  %s6115_s3 = scalar_lea.sflag [#allocation3], %s553_s30 }
 0x7f7   : > { %6798 = vmatpush3.xpose.msra.mxu0 %v10517_v4  ;;  %6828 = vmatpush3.xpose.msra.mxu1 %v10434_v0  ;;  %s555_s19 = scalar_lea.vmem [#allocation2], %s6245_s25 }
 0x7f8   : > { %6829 = vmatprep.subr.mxu1 %v10452_v56  ;;  %6835 = vmatprep.subr.mxu0 %v11515_v6  ;;  %s6133_s27 = sshll.u32 %s555_s19, 4  ;;  %s6134_s27 = int_to_ptr.vmem [resolvable:$true] %s6133_s27 }
 0x7f9   : > { %s7775_s29 = scalar_lea.vmem %s6134_s27, 32 }
 0x7fa   : > { %6800 = vmatmul.mubr.f32.vlgmr.msra.gmra.mxu0 %v9861_v11  ;;  %v11519_v11 = vand.u32 4294901760, %v10100_v1  ;;  %v11524_v1 = vand.u32 4294901760, %v10189_v18  ;;  %v11531_v18 = vand.u32 4294901760, %v10211_v5  ;;  %v11538_v5 = vand.u32 4294901760, %v10309_v23  ;;  %p7776_p11 = scmp.ne.s32.totalorder %s6134_s27, %s7775_s29 }
 0x7fb   : > { %6830 = vmatpush3.xpose.msra.mxu1 %v10476_v25  ;;  %6836 = vmatpush3.xpose.msra.mxu0 %v11516_v28  ;;  %v11547_v23 = vand.u32 4294901760, %v10365_v62  ;;  %v11552_v62 = vld [vmem:[#allocation83_spill] sm:$0xff]  ;;  %v11556_v28 = vand.u32 4294901760, %v10413_v50 }
 0x7fc   : > { %6831 = vmatprep.subr.mxu1 %v10495_v8  ;;  %6837 = vmatprep.subr.mxu0 %v11517_v47  ;;  %v11557_v47 = vld [vmem:[#allocation85_spill] sm:$0xff]  ;;  %p7777_p12 = pnand %p7776_p11, %p7965_p5 }
 0x7fd   : > { %6867 = vmatprep.mubr.msk.f32.mxu0 %vm5131_vm5, %v11472_v21 }
 0x7fe   : > { %p7778_p13 = pneg %p7777_p12 }
 0x7ff   : > { %6832 = vmatpush3.xpose.msra.mxu1 %v10512_v60  ;;  %6838 = vmatpush3.xpose.msra.mxu0 %v11518_v10  ;;  %v11558_v10 = vld [vmem:[#allocation82_spill] sm:$0xff] }
 0x800   : > { %6839 = vmatprep.subr.mxu0 %v11519_v11  ;;  %6869 = vmatprep.subr.mxu1 %v10086_v45  ;;  %v11523_v45 = vand.u32 4294901760, %v11481_v54  ;;  %v11529_v54 = vand.u32 4294901760, %v11490_v9  ;;  %v11539_v9 = vld [vmem:[#allocation47_spill] sm:$0xff] }
 0x802   : > { %6834 = vmatmul.mubr.f32.vlgmr.msra.gmra.mxu1 %v11478_v52  ;;  %v11536_v52 = vand.u32 4294901760, %v10289_v48 }
 0x803   : > { %6840 = vmatpush3.xpose.msra.mxu0 %v11520_v17  ;;  %6870 = vmatpush3.xpose.msra.mxu1 %v11473_v29  ;;  %v11530_v29 = vld [vmem:[#allocation9_spill] sm:$0xff]  ;;  %v11559_v17 = vand.u32 4294901760, %v10423_v24 }
 0x804   : > { %6841 = vmatprep.subr.mxu0 %v11521_v51  ;;  %6871 = vmatprep.subr.mxu1 %v11476_v57  ;;  %v11526_v57 = vld [vmem:[#allocation13_spill] sm:$0xff]  ;;  %v11560_v51 = vand.u32 4294901760, %v10443_v7 }
 0x805   : > { %6901 = vmatprep.mubr.msk.f32.mxu1 %vm5131_vm5, %v11472_v21 }
 0x807   : > { %6842 = vmatpush3.xpose.msra.mxu0 %v11522_v16  ;;  %6872 = vmatpush3.xpose.msra.mxu1 %v11479_v35  ;;  %v11532_v35 = vld [vmem:[#allocation50_spill] sm:$0xff]  ;;  %v11561_v16 = vld [vmem:[#allocation87_spill] sm:$0xff] }
 0x808   : > { %6843 = vmatprep.subr.mxu0 %v11523_v45  ;;  %6873 = vmatprep.subr.mxu1 %v11482_v33  ;;  %v11534_v33 = vld [vmem:[#allocation115_spill] sm:$0xff] }
 0x80b   : > { %6844 = vmatpush3.xpose.msra.mxu0 %v11524_v1  ;;  %6874 = vmatpush3.xpose.msra.mxu1 %v11484_v19  ;;  %v11537_v19 = vld [vmem:[#allocation78_spill] sm:$0xff]  ;;  %v11562_v1 = vld [vmem:[#allocation84_spill] sm:$0xff] }
 0x80c   : > { %6845 = vmatprep.subr.mxu0 %v11525_v46  ;;  %6875 = vmatprep.subr.mxu1 %v11526_v57  ;;  %v11563_v46 = vand.u32 4294901760, %v10464_v58  ;;  %v11565_v57 = vld [vmem:[#allocation89_spill] sm:$0xff] }
 0x80f   : > { %6846 = vmatpush3.xpose.msra.mxu0 %v11527_v53  ;;  %6876 = vmatpush3.xpose.msra.mxu1 %v11528_v41  ;;  %v11566_v41 = vld [vmem:[#allocation86_spill] sm:$0xff] }
 0x810   : > { %6847 = vmatprep.subr.mxu0 %v11529_v54  ;;  %6877 = vmatprep.subr.mxu1 %v11530_v29  ;;  %v11567_v54 = vand.u32 4294901760, %v10502_v20  ;;  %v11569_v29 = vld [vmem:[#allocation91_spill] sm:$0xff] }
 0x813   : > { %6848 = vmatpush3.xpose.msra.mxu0 %v11531_v18  ;;  %6878 = vmatpush3.xpose.msra.mxu1 %v11532_v35  ;;  %v11570_v35 = vld [vmem:[#allocation88_spill] sm:$0xff] }
 0x814   : > { %6849 = vmatprep.subr.mxu0 %v11533_v27  ;;  %6879 = vmatprep.subr.mxu1 %v11534_v33  ;;  %v11572_v33 = vld [vmem:[#allocation90_spill] sm:$0xff] }
 0x817   : > { %6850 = vmatpush3.xpose.msra.mxu0 %v11535_v59  ;;  %6880 = vmatpush3.xpose.msra.mxu1 %v11497_v13  ;;  %v11544_v13 = vld [vmem:[#allocation40_spill] sm:$0xff] }
 0x818   : > { %6851 = vmatprep.subr.mxu0 %v11536_v52  ;;  %6881 = vmatprep.subr.mxu1 %v11537_v19  ;;  %v11545_v48 = vand.u32 4294901760, %v11544_v13  ;;  %v11573_v19 = vld [vmem:[#allocation100_spill] sm:$0xff] }
 0x81b   : > { %6852 = vmatpush3.xpose.msra.mxu0 %v11538_v5  ;;  %6882 = vmatpush3.xpose.msra.mxu1 %v11539_v9  ;;  %v11574_v5 = vld [vmem:[#allocation92_spill] sm:$0xff] }
 0x81c   : > { %6853 = vmatprep.subr.mxu0 %v11541_v37  ;;  %6883 = vmatprep.subr.mxu1 %v11542_v39  ;;  %v11575_v37 = vld [vmem:[#allocation104_spill] sm:$0xff]  ;;  %v11576_v39 = vld [vmem:[#allocation98_spill] sm:$0xff] }
 0x81f   : > { %6854 = vmatpush3.xpose.msra.mxu0 %v11543_v26  ;;  %6884 = vmatpush3.xpose.msra.mxu1 %v11505_v63 }
 0x820   : > { %6855 = vmatprep.subr.mxu0 %v11545_v48  ;;  %6885 = vmatprep.subr.mxu1 %v11546_v2  ;;  %v11577_v2 = vld [vmem:[#allocation94_spill] sm:$0xff] }
 0x823   : > { %6856 = vmatpush3.xpose.msra.mxu0 %v11547_v23  ;;  %6886 = vmatpush3.xpose.msra.mxu1 %v11508_v42 }
 0x824   : > { %6857 = vmatprep.subr.mxu0 %v11549_v22  ;;  %6887 = vmatprep.subr.mxu1 %v11550_v3  ;;  %v4363_v63 = vpop.permute.xlu0 %4362 }
 0x825   : > { %v4458_v42 = vadd.f32 %v4363_v63, %v11552_v62  ;;  %v11579_v63 = vld [vmem:[#allocation97_spill] sm:$0xff] }
 0x826   : > { %v11580_v62 = vld [vmem:[#allocation93_spill] sm:$0xff] }
 0x827   : > { %6858 = vmatpush3.xpose.msra.mxu0 %v11551_v40  ;;  %6888 = vmatpush3.xpose.msra.mxu1 %v11511_v34  ;;  %4490 = vst.msk [vmem:[%s10723_s23] sm:$0xff] %vm686_vm0, %v4458_v42 }
 0x828   : > { %6859 = vmatprep.subr.mxu0 %v11554_v43  ;;  %6889 = vmatprep.subr.mxu1 %v11555_v32  ;;  %v4367_v6 = vpop.permute.xlu0 %4366  ;;  %v11581_v32 = vld [vmem:[#allocation101_spill] sm:$0xff] }
 0x829   : > { %v4365_v44 = vpop.permute.xlu1 %4364  ;;  %v4460_v34 = vadd.f32 %v4367_v6, %v11557_v47 }
 0x82a   : > { %v4459_v11 = vadd.f32 %v4365_v44, %v11558_v10  ;;  %v11583_v10 = vld [vmem:[#allocation105_spill] sm:$0xff] }
 0x82b   : > { %6860 = vmatpush3.xpose.msra.mxu0 %v11556_v28  ;;  %6890 = vmatpush3.xpose.msra.mxu1 %v11513_v30  ;;  %4492 = vst.msk [vmem:[%s10723_s23 + $0x10] sm:$0xff] %vm686_vm0, %v4460_v34  ;;  %v11582_v28 = vld [vmem:[#allocation96_spill] sm:$0xff] }
 0x82c   : > { %6861 = vmatprep.subr.mxu0 %v11559_v17  ;;  %6891 = vmatprep.subr.mxu1 %v11514_v15  ;;  %4491 = vst.msk [vmem:[%s10723_s23 + $0x8] sm:$0xff] %vm686_vm0, %v4459_v11  ;;  %v4371_v50 = vpop.permute.xlu0 %4370  ;;  %v11564_v15 = vand.u32 4294901760, %v10486_v61  ;;  %v11568_v61 = vand.u32 4294901760, %v10517_v4  ;;  %v11571_v4 = vld [vmem:[#allocation95_spill] sm:$0xff] }
 0x82d   : > { %v4462_v45 = vadd.f32 %v4371_v50, %v11561_v16  ;;  %v11584_v17 = vld [vmem:[#allocation99_spill] sm:$0xff] }
 0x82e   : > { %v4369_v30 = vpop.permute.xlu1 %4368  ;;  %v11585_v16 = vld [vmem:[#allocation107_spill] sm:$0xff] }
 0x82f   : > { %6862 = vmatpush3.xpose.msra.mxu0 %v11560_v51  ;;  %6892 = vmatpush3.xpose.msra.mxu1 %v10370_v36  ;;  %v4461_v24 = vadd.f32 %v4369_v30, %v11562_v1  ;;  %4494 = vst.msk [vmem:[%s10723_s23 + $0x20] sm:$0xff] %vm686_vm0, %v4462_v45  ;;  %v11586_v1 = vld [vmem:[#allocation103_spill] sm:$0xff] }
 0x830   : > { %6863 = vmatprep.subr.mxu0 %v11563_v46  ;;  %6893 = vmatprep.subr.mxu1 %v10373_v55  ;;  %v4375_v7 = vpop.permute.xlu0 %4374 }
 0x831   : > { %4493 = vst.msk [vmem:[%s10723_s23 + $0x18] sm:$0xff] %vm686_vm0, %v4461_v24  ;;  %v4464_v53 = vadd.f32 %v4375_v7, %v11565_v57  ;;  %v11588_v57 = vld [vmem:[#allocation106_spill] sm:$0xff] }
 0x833   : > { %6864 = vmatpush3.xpose.msra.mxu0 %v11564_v15  ;;  %6894 = vmatpush3.xpose.msra.mxu1 %v10392_v31  ;;  %v4373_v36 = vpop.permute.xlu1 %4372  ;;  %4496 = vst.msk [vmem:[%s10723_s23 + $0x30] sm:$0xff] %vm686_vm0, %v4464_v53  ;;  %v11587_v15 = vld [vmem:[#allocation109_spill] sm:$0xff] }
 0x834   : > { %v4463_v58 = vadd.f32 %v4373_v36, %v11566_v41  ;;  %6865 = vmatprep.subr.mxu0 %v11567_v54  ;;  %6895 = vmatprep.subr.mxu1 %v10405_v12  ;;  %v4379_v55 = vpop.permute.xlu0 %4378  ;;  %v11589_v54 = vld [vmem:[#allocation111_spill] sm:$0xff] }
 0x835   : > { %v4466_v18 = vadd.f32 %v4379_v55, %v11569_v29 }
 0x836   : > { %4495 = vst.msk [vmem:[%s10723_s23 + $0x28] sm:$0xff] %vm686_vm0, %v4463_v58 }
 0x837   : > { %6866 = vmatpush3.xpose.msra.mxu0 %v11568_v61  ;;  %6896 = vmatpush3.xpose.msra.mxu1 %v10434_v0  ;;  %v4377_v31 = vpop.permute.xlu1 %4376  ;;  %4498 = vst.msk [vmem:[%s10723_s23 + $0x40] sm:$0xff] %vm686_vm0, %v4466_v18  ;;  %v11590_v61 = vld [vmem:[#allocation108_spill] sm:$0xff] }
 0x838   : > { %v4465_v20 = vadd.f32 %v4377_v31, %v11570_v35  ;;  %6897 = vmatprep.subr.mxu1 %v10452_v56  ;;  %v4383_v12 = vpop.permute.xlu0 %4382  ;;  %v11591_v35 = vld [vmem:[#allocation113_spill] sm:$0xff] }
 0x839   : > { %v4468_v27 = vadd.f32 %v4383_v12, %v11571_v4  ;;  %v11592_v12 = vld [vmem:[#allocation110_spill] sm:$0xff] }
 0x83a   : > { %4497 = vst.msk [vmem:[%s10723_s23 + $0x38] sm:$0xff] %vm686_vm0, %v4465_v20  ;;  %6868 = vmatmul.mubr.msk.f32.vlgmr.msra.gmra.mxu0 %vm5131_vm5, %v11472_v21 }
 0x83b   : > { %6898 = vmatpush3.xpose.msra.mxu1 %v10476_v25  ;;  %v4381_v0 = vpop.permute.xlu1 %4380  ;;  %4500 = vst.msk [vmem:[%s10723_s23 + $0x50] sm:$0xff] %vm686_vm0, %v4468_v27  ;;  %v11593_v27 = vld [vmem:[#allocation112_spill] sm:$0xff] }
 0x83c   : > { %v4467_v59 = vadd.f32 %v4381_v0, %v11572_v33  ;;  %6899 = vmatprep.subr.mxu1 %v10495_v8  ;;  %v4387_v56 = vpop.permute.xlu0 %4386 }
 0x83d   : > { %v4470_v25 = vadd.f32 %v4387_v56, %v11573_v19 }
 0x83e   : > { %4499 = vst.msk [vmem:[%s10723_s23 + $0x48] sm:$0xff] %vm686_vm0, %v4467_v59 }
 0x83f   : > { %6900 = vmatpush3.xpose.msra.mxu1 %v10512_v60  ;;  %v4385_v52 = vpop.permute.xlu1 %4384  ;;  %4502 = vst.msk [vmem:[%s10723_s23 + $0x60] sm:$0xff] %vm686_vm0, %v4470_v25 }
 0x840   : > { %v4469_v9 = vadd.f32 %v4385_v52, %v11574_v5  ;;  %v4391_v8 = vpop.permute.xlu0 %4390 }
 0x841   : > { %v4472_v60 = vadd.f32 %v4391_v8, %v11575_v37 }
 0x842   : > { %4501 = vst.msk [vmem:[%s10723_s23 + $0x58] sm:$0xff] %vm686_vm0, %v4469_v9  ;;  %6902 = vmatmul.mubr.msk.f32.vlgmr.msra.gmra.mxu1 %vm5131_vm5, %v11472_v21 }
 0x843   : > { %v4389_v38 = vpop.permute.xlu1 %4388  ;;  %4504 = vst.msk [vmem:[%s10723_s23 + $0x70] sm:$0xff] %vm686_vm0, %v4472_v60  ;;  %v7843_v60 = vmov 1966171168  }
 0x844   : > { %v4471_v26 = vadd.f32 %v4389_v38, %v11576_v39  ;;  %v4395_v13 = vpop.permute.xlu0 %4394  ;;  %v6090_v39 = vunpack.c.l.s4 %v7843_v60 }
 0x845   : > { %v4474_v23 = vadd.f32 %v4395_v13, %v11577_v2 }
 0x846   : > { %4503 = vst.msk [vmem:[%s10723_s23 + $0x68] sm:$0xff] %vm686_vm0, %v4471_v26  ;;  %v6092_v26 = vlaneseq }
 0x847   : > { %v4393_v48 = vpop.permute.xlu1 %4392  ;;  %4506 = vst.msk [vmem:[%s10723_s23 + $0x80] sm:$0xff] %vm686_vm0, %v4474_v23 }
 0x848   : > { %v4473_v21 = vadd.f32 %v4393_v48, %v11578_v49  ;;  %v4399_v22 = vpop.permute.xlu0 %4398  ;;  %vm6106_vm6 = vcmp.lt.s32.totalorder %v6092_v26, 256 }
 0x849   : > { %v4476_v40 = vadd.f32 %v4399_v22, %v11579_v63  ;;  %v6091_v22 = vunpack.c.0.s8 %v6090_v39 }
 0x84a   : > { %4505 = vst.msk [vmem:[%s10723_s23 + $0x78] sm:$0xff] %vm686_vm0, %v4473_v21 }
 0x84b   : > { %v4397_v3 = vpop.permute.xlu1 %4396  ;;  %4508 = vst.msk [vmem:[%s10723_s23 + $0x90] sm:$0xff] %vm686_vm0, %v4476_v40 }
 0x84c   : > { %v4475_v42 = vadd.f32 %v4397_v3, %v11580_v62  ;;  %v4403_v14 = vpop.permute.xlu0 %4402  ;;  %v6093_v3 = vshrl.u32 %v6092_v26, 7 }
 0x84d   : > { %v4478_v6 = vadd.f32 %v4403_v14, %v11581_v32 }
 0x84e   : > { %4507 = vst.msk [vmem:[%s10723_s23 + $0x88] sm:$0xff] %vm686_vm0, %v4475_v42  ;;  %v6094_v32 = vsub.s32 %v6091_v22, %v6093_v3 }
 0x84f   : > { %v4401_v43 = vpop.permute.xlu1 %4400  ;;  %4510 = vst.msk [vmem:[%s10723_s23 + $0xa0] sm:$0xff] %vm686_vm0, %v4478_v6 }
 0x850   : > { %v4477_v44 = vadd.f32 %v4401_v43, %v11582_v28  ;;  %v4407_v47 = vpop.permute.xlu0 %4406 }
 0x851   : > { %v4480_v11 = vadd.f32 %v4407_v47, %v11583_v10 }
 0x852   : > { %4509 = vst.msk [vmem:[%s10723_s23 + $0x98] sm:$0xff] %vm686_vm0, %v4477_v44 }
 0x853   : > { %v4405_v34 = vpop.permute.xlu1 %4404  ;;  %4512 = vst.msk [vmem:[%s10723_s23 + $0xb0] sm:$0xff] %vm686_vm0, %v4480_v11 }
 0x854   : > { %v4479_v50 = vadd.f32 %v4405_v34, %v11584_v17  ;;  %v4411_v51 = vpop.permute.xlu0 %4410 }
 0x855   : > { %v4482_v45 = vadd.f32 %v4411_v51, %v11585_v16 }
 0x856   : > { %4511 = vst.msk [vmem:[%s10723_s23 + $0xa8] sm:$0xff] %vm686_vm0, %v4479_v50 }
 0x857   : > { %v4409_v30 = vpop.permute.xlu1 %4408  ;;  %4514 = vst.msk [vmem:[%s10723_s23 + $0xc0] sm:$0xff] %vm686_vm0, %v4482_v45 }
 0x858   : > { %v4481_v24 = vadd.f32 %v4409_v30, %v11586_v1  ;;  %v4415_v46 = vpop.permute.xlu0 %4414 }
 0x859   : > { %v4484_v36 = vadd.f32 %v4415_v46, %v11587_v15 }
 0x85a   : > { %4513 = vst.msk [vmem:[%s10723_s23 + $0xb8] sm:$0xff] %vm686_vm0, %v4481_v24 }
 0x85b   : > { %v4413_v7 = vpop.permute.xlu1 %4412  ;;  %4516 = vst.msk [vmem:[%s10723_s23 + $0xd0] sm:$0xff] %vm686_vm0, %v4484_v36 }
 0x85c   : > { %v4483_v53 = vadd.f32 %v4413_v7, %v11588_v57  ;;  %v4419_v41 = vpop.permute.xlu0 %4418 }
 0x85d   : > { %v4486_v55 = vadd.f32 %v4419_v41, %v11589_v54 }
 0x85e   : > { %4515 = vst.msk [vmem:[%s10723_s23 + $0xc8] sm:$0xff] %vm686_vm0, %v4483_v53 }
 0x85f   : > { %v4417_v58 = vpop.permute.xlu1 %4416  ;;  %4518 = vst.msk [vmem:[%s10723_s23 + $0xe0] sm:$0xff] %vm686_vm0, %v4486_v55 }
 0x860   : > { %v4485_v31 = vadd.f32 %v4417_v58, %v11590_v61  ;;  %v4423_v29 = vpop.permute.xlu0 %4422 }
 0x861   : > { %v4488_v20 = vadd.f32 %v4423_v29, %v11591_v35 }
 0x862   : > { %4517 = vst.msk [vmem:[%s10723_s23 + $0xd8] sm:$0xff] %vm686_vm0, %v4485_v31 }
 0x863   : > { %v4421_v18 = vpop.permute.xlu1 %4420  ;;  %4520 = vst.msk [vmem:[%s10723_s23 + $0xf0] sm:$0xff] %vm686_vm0, %v4488_v20 }
 0x864   : > { %v4487_v0 = vadd.f32 %v4421_v18, %v11592_v12 }
 0x866   : > { %4519 = vst.msk [vmem:[%s10723_s23 + $0xe8] sm:$0xff] %vm686_vm0, %v4487_v0 }
 0x867   : > { %v4425_v4 = vpop.permute.xlu1 %4424 }
 0x868   : > { %v4489_v33 = vadd.f32 %v4425_v4, %v11593_v27 }
 0x86a   : > { %4521 = vst.msk [vmem:[%s10723_s23 + $0xf8] sm:$0xff] %vm686_vm0, %v4489_v33  ;;  %s7844_s23 = smov [#allocation2]  }
 0x86b   : > { %s7779_s1 = sshll.u32 %s7844_s23, 4  ;;  %s7780_s1 = int_to_ptr.vmem [resolvable:$false] %s7779_s1 }
 0x86c   : > { %s7781_s25 = scalar_lea.vmem %s7780_s1, 64  ;;  %p7782_p0 = scmp.lt.s32.totalorder %s6134_s27, %s7780_s1 }
 0x86d   : > { %p7783_p1 = scmp.lt.s32.totalorder %s7781_s25, %s7775_s29 }
 0x86f   : > { %p7784_p2 = por %p7783_p1, %p7782_p0 }
 0x871   : > { %p7785_p3 = pnand %p7784_p2, %p7778_p13 }
 0x87a   : > { %v5334_v59 = vpop.f32.mrf.mxu0 }
 0x87c   : > { %v5336_v56 = vpop.f32.mrf.mxu0 }
 0x882   : > { %v5566_v52 = vpop.f32.mrf.mxu1 }
 0x883   : > { %v5567_v38 = vadd.f32 %v5566_v52, %v5334_v59 }
 0x884   : > { %v5568_v25 = vpop.f32.mrf.mxu1 }
 0x885   : > { %v5569_v37 = vadd.f32 %v5568_v25, %v5336_v56 }
 0x8ba   : > { %v5703_v19 = vpop.f32.mrf.mxu0 }
 0x8bb   : > { %v5704_v48 = vadd.f32 %v5703_v19, %v5567_v38 }
 0x8bc   : > { %v5705_v5 = vpop.f32.mrf.mxu0 }
 0x8bd   : > { %v5706_v2 = vadd.f32 %v5705_v5, %v5569_v37 }
 0x8c2   : > { %v5809_v9 = vpop.f32.mrf.mxu1 }
 0x8c3   : > { %v5810_v49 = vadd.f32 %v5809_v9, %v5704_v48 }
 0x8c4   : > { %v5811_v13 = vpop.f32.mrf.mxu1 }
 0x8c5   : > { %v5812_v21 = vadd.f32 %v5811_v13, %v5706_v2 }
 0x8fa   : > { %v5977_v8 = vpop.f32.mrf.mxu0 }
 0x8fb   : > { %v5978_v40 = vadd.f32 %v5977_v8, %v5810_v49 }
 0x8fc   : > { %v5979_v23 = vpop.f32.mrf.mxu0 }
 0x8fd   : > { %v5980_v62 = vadd.f32 %v5979_v23, %v5812_v21 }
 0x902   : > { %v6081_v63 = vpop.f32.mrf.mxu1 }
 0x903   : > { %v6082_v14 = vadd.f32 %v6081_v63, %v5978_v40 }
 0x904   : > { %v6083_v42 = vpop.f32.mrf.mxu1 }
 0x905   : > { %v6084_v43 = vadd.f32 %v6083_v42, %v5980_v62 }
 0x907   : > { %v6088_v6 = vcombine.low %v6082_v14, %v6084_v43 }
 0x909   : > { %v6095_v28 = vrot.slane %v6088_v6, %v6094_v32 }
 0x90b   : > { %v6102_v44 = vrot.slane %v6095_v28, %v6094_v32 }
 0x90d   : > { %6108 = vst.msk [vmem:[%s555_s19] sm:$0x3] %vm6106_vm6, %v6102_v44 }
 0x90e   : > { %7788 = shalt.err (!%p7785_p3)
}
 0x90f   : > { %s7789_s2 = scalar_lea.hbm %s6131_s26, 32  ;;  %s7793_s19 = scalar_lea.hbm %s10906_s16, 64 }
 0x910   : > { %p7790_p4 = scmp.ne.s32.totalorder %s6131_s26, %s7789_s2  ;;  %p7794_p9 = scmp.lt.s32.totalorder %s6131_s26, %s10906_s16 }
 0x911   : > { %p7795_p10 = scmp.lt.s32.totalorder %s7793_s19, %s7789_s2 }
 0x912   : > { %p7791_p7 = pnand %p7790_p4, %p7965_p5 }
 0x913   : > { %p7796_p11 = por %p7795_p10, %p7794_p9 }
 0x914   : > { %p7792_p8 = pneg %p7791_p7 }
 0x916   : > { %p7797_p12 = pnand %p7796_p11, %p7792_p8 }
 0x918   : > { %7800 = shalt.err (!%p7797_p12)
}
 0x919   : > { %7217 = dma.vmem_to_hbm [thread:$0]  (%p7965_p5), %s6134_s27, 32, %s6131_s26, %s6115_s3  }
 0x91a PF: > { %p7223_p13 = scmp.ge.s32.totalorder %s7835_s24, 2  ;;  %s6153_s1 = sand.u32 1, %s7823_s21  }
 0x91b   : > { %s6154_s29 = scalar_lea.sflag [#allocation3], %s6153_s1 }
 0x91c   : > { %p7220_p0 = pnand %p7223_p13, %p7969_p6 }
 0x91e   : > { %p7221_p1 = pneg %p7220_p0 }
 0x920   : > { %7818 = dma.done.wait (%p7221_p1), %s6154_s29, 32  }
 0x921   : > { %7820 = vsyncadd (%p7221_p1), %s6154_s29, 4294967264  ;;  %s11594_s24 = sld [smem:[#allocation6_spill]]  ;;  %s11597_s21 = smov %s7827_s22 }
 0x922   : > { %s11595_s2 = sld [smem:[#allocation5_spill]] }
 0x923   : > { %s11596_s23 = sld [smem:[#allocation7_spill]] }
 0x927   : > { %p27_p2 = scmp.ge.s32.totalorder %s11594_s24, 4  }
 0x928   : > { %s11598_s22 = smov %s11595_s2 }
 0x929   :  { %29 = sbr.rel (!%p27_p2) target bundleno = 8 (0x8), region = 133 }
 0x92e   :  { %6159 = vsyncpa [#allocation3], 1 }
 0x92f   :  { %6161 = vsyncpa [#allocation3 + $0x1], 1 }

</bundles_post_ra>
